<compile_context>
chip_gen: v5e
topology: v5e:2x2
jax: 0.10.0
libtpu: 0.0.40
codegen_flags: <defaults>
</compile_context>

<pallas_src>
import math

import jax
import jax.numpy as jnp
from jax.experimental import pallas as pl
from jax.experimental.pallas import tpu as pltpu

INPUT_DIM = 28 * 28          # 784
LATENT_DIM = 20
NUM_CLASSES = 10

# padded (lane / sublane friendly) sizes
LATENT_PAD = 128             # mu / log_var / z lane width (>= 20, lane-dense)
OUT_PAD = 896                # 7 * 128 >= 784; also the padded x / x_recon width
Y_IN_Z_OFF = 32              # lanes 32..41 of the 128-wide z carry the one-hot y
H0, H1 = 512, 256            # hidden sizes (decoder mirrors them)
TM_DEFAULT = 256             # batch tile (re-derived per call for tiny batches)


# ----------------------------------------------------------------------------
# Fused Pallas kernel: whole forward for one batch tile, everything in VMEM.
# ----------------------------------------------------------------------------
def _cvae_kernel(
    x_ref, eps_ref,
    w_e0_ref, b_e0_ref,
    w_e1_ref, b_e1_ref,
    w_h_ref, b_h_ref,
    w_d0_ref, b_d0_ref,
    w_d1_ref, b_d1_ref,
    w_d2_ref, b_d2_ref,
    xrec_ref, mu_ref, lv_ref,
):
    f32 = jnp.float32
    bf16 = jnp.bfloat16

    # ---- encoder layer 0: x (bf16, 896 lanes) already carries y in lanes 784..793 ----
    h = jnp.dot(x_ref[...], w_e0_ref[...], preferred_element_type=f32) + b_e0_ref[...]
    h = jnp.maximum(h, 0.0)                                   # ReLU, f32

    # ---- encoder layer 1 ----
    h = jnp.dot(h.astype(bf16), w_e1_ref[...], preferred_element_type=f32) + b_e1_ref[...]
    h = jnp.maximum(h, 0.0)

    # ---- encoder layer 2: merged mu|log_var head, one 256-wide MXU pass ----
    heads = jnp.dot(h.astype(bf16), w_h_ref[...], preferred_element_type=f32) + b_h_ref[...]
    mu = heads[:, :LATENT_PAD]                                # 128-aligned slices (free)
    lv = heads[:, LATENT_PAD:]
    mu_ref[...] = mu                                          # lane-dense [TM, 128] store
    lv_ref[...] = lv

    # ---- reparameterize (fused epilogue): z = exp(0.5*log_var)*eps + mu ----
    # Padded head columns are zero => mu = lv = 0 in lanes 20..127, so there
    # z = exp(0)*eps + 0 = eps.  The wrapper writes the one-hot y into eps lanes
    # 32..41, so z automatically carries y for the merged decoder-0 weight.
    z = jnp.exp(0.5 * lv) * eps_ref[...] + mu                 # f32 (EUP + VPU)

    # ---- decoder layer 0: merged [z | y] weight (z rows 0..19, y rows 32..41) ----
    d = jnp.dot(z.astype(bf16), w_d0_ref[...], preferred_element_type=f32) + b_d0_ref[...]
    d = jnp.maximum(d, 0.0)

    # ---- decoder layer 1 ----
    d = jnp.dot(d.astype(bf16), w_d1_ref[...], preferred_element_type=f32) + b_d1_ref[...]
    d = jnp.maximum(d, 0.0)

    # ---- decoder layer 2 + sigmoid (output padded 784 -> 896 lanes) ----
    out = jnp.dot(d.astype(bf16), w_d2_ref[...], preferred_element_type=f32) + b_d2_ref[...]
    xrec_ref[...] = jax.nn.sigmoid(out)                       # lane-dense [TM, 896] store


# ----------------------------------------------------------------------------
# Parameter init (mimics nn.Linear default U(-1/sqrt(fan_in), 1/sqrt(fan_in)))
# and packing into merged / transposed / padded / bf16 layout the kernel uses.
# ----------------------------------------------------------------------------
def _init_linear(key, in_dim, out_dim):
    kw, kb = jax.random.split(key)
    bound = 1.0 / math.sqrt(in_dim)
    w = jax.random.uniform(kw, (in_dim, out_dim), jnp.float32, -bound, bound)  # [in, out]
    b = jax.random.uniform(kb, (1, out_dim), jnp.float32, -bound, bound)
    return w, b


def init_cvae_params(key):
    keys = jax.random.split(key, 6)
    w_e0, b_e0 = _init_linear(keys[0], INPUT_DIM + NUM_CLASSES, H0)   # [794, 512]
    w_e1, b_e1 = _init_linear(keys[1], H0, H1)                        # [512, 256]
    w_e2, b_e2 = _init_linear(keys[2], H1, 2 * LATENT_DIM)            # [256, 40]
    w_d0, b_d0 = _init_linear(keys[3], LATENT_DIM + NUM_CLASSES, H1)  # [30, 256]
    w_d1, b_d1 = _init_linear(keys[4], H1, H0)                        # [256, 512]
    w_d2, b_d2 = _init_linear(keys[5], H0, INPUT_DIM)                 # [512, 784]

    bf = jnp.bfloat16

    # encoder layer 0: merged [x | y] weight; x rows 0..783, y rows 784..793, rest zero
    w_e0m = jnp.zeros((OUT_PAD, H0), jnp.float32)
    w_e0m = w_e0m.at[:INPUT_DIM].set(w_e0[:INPUT_DIM])
    w_e0m = w_e0m.at[INPUT_DIM:INPUT_DIM + NUM_CLASSES].set(w_e0[INPUT_DIM:])

    # encoder layer 2: merged head [256, 256]; mu cols 0..19, log_var cols 128..147
    w_h = jnp.zeros((H1, 2 * LATENT_PAD), jnp.float32)
    w_h = w_h.at[:, :LATENT_DIM].set(w_e2[:, :LATENT_DIM])
    w_h = w_h.at[:, LATENT_PAD:LATENT_PAD + LATENT_DIM].set(w_e2[:, LATENT_DIM:])
    b_h = jnp.zeros((1, 2 * LATENT_PAD), jnp.float32)
    b_h = b_h.at[:, :LATENT_DIM].set(b_e2[:, :LATENT_DIM])
    b_h = b_h.at[:, LATENT_PAD:LATENT_PAD + LATENT_DIM].set(b_e2[:, LATENT_DIM:])

    # decoder layer 0: merged [z | y] weight over 128 rows; z rows 0..19, y rows 32..41
    w_d0m = jnp.zeros((LATENT_PAD, H1), jnp.float32)
    w_d0m = w_d0m.at[:LATENT_DIM].set(w_d0[:LATENT_DIM])
    w_d0m = w_d0m.at[Y_IN_Z_OFF:Y_IN_Z_OFF + NUM_CLASSES].set(w_d0[LATENT_DIM:])

    # decoder layer 2: pad output lanes 784 -> 896
    w_d2p = jnp.zeros((H0, OUT_PAD), jnp.float32).at[:, :INPUT_DIM].set(w_d2)
    b_d2p = jnp.zeros((1, OUT_PAD), jnp.float32).at[:, :INPUT_DIM].set(b_d2)

    return dict(
        w_e0=w_e0m.astype(bf), b_e0=b_e0,
        w_e1=w_e1.astype(bf), b_e1=b_e1,
        w_h=w_h.astype(bf), b_h=b_h,
        w_d0=w_d0m.astype(bf), b_d0=b_d0,
        w_d1=w_d1.astype(bf), b_d1=b_d1,
        w_d2=w_d2p.astype(bf), b_d2=b_d2p,
    )


def _round_up(n, m):
    return ((n + m - 1) // m) * m


# ----------------------------------------------------------------------------
# Wrapper: batch-tiled pallas_call, then slice the padded outputs.
# ----------------------------------------------------------------------------
def cvae_forward(params, x, y, eps, tm=TM_DEFAULT):
    """x: [B, 784] f32, y: [B, 10] one-hot f32, eps: [B, 20] f32 ~ N(0,1)."""
    B = x.shape[0]
    tm = max(16, min(tm, _round_up(B, 16)))        # don't over-tile tiny batches
    Bp = _round_up(B, tm)
    n_tiles = Bp // tm

    # x carries the one-hot y in lanes 784..793 (merged encoder-0 weight); bf16 input.
    x_pad = jnp.zeros((Bp, OUT_PAD), jnp.bfloat16)
    x_pad = x_pad.at[:B, :INPUT_DIM].set(x.astype(jnp.bfloat16))
    x_pad = x_pad.at[:B, INPUT_DIM:INPUT_DIM + NUM_CLASSES].set(y.astype(jnp.bfloat16))

    # eps carries y in lanes 32..41 so z (= eps there) feeds the merged decoder-0 weight.
    eps_pad = jnp.zeros((Bp, LATENT_PAD), jnp.float32)
    eps_pad = eps_pad.at[:B, :LATENT_DIM].set(eps)
    eps_pad = eps_pad.at[:B, Y_IN_Z_OFF:Y_IN_Z_OFF + NUM_CLASSES].set(y)

    row_map = lambda i: (i, 0)
    const_map = lambda i: (0, 0)

    in_specs = [
        pl.BlockSpec((tm, OUT_PAD), row_map),                 # x_pad (batch-tiled)
        pl.BlockSpec((tm, LATENT_PAD), row_map),              # eps_pad (batch-tiled)
        pl.BlockSpec((OUT_PAD, H0), const_map),               # w_e0 (resident)
        pl.BlockSpec((1, H0), const_map),                     # b_e0
        pl.BlockSpec((H0, H1), const_map),                    # w_e1
        pl.BlockSpec((1, H1), const_map),                     # b_e1
        pl.BlockSpec((H1, 2 * LATENT_PAD), const_map),        # w_h (merged mu|lv)
        pl.BlockSpec((1, 2 * LATENT_PAD), const_map),         # b_h
        pl.BlockSpec((LATENT_PAD, H1), const_map),            # w_d0 (merged z|y)
        pl.BlockSpec((1, H1), const_map),                     # b_d0
        pl.BlockSpec((H1, H0), const_map),                    # w_d1
        pl.BlockSpec((1, H0), const_map),                     # b_d1
        pl.BlockSpec((H0, OUT_PAD), const_map),               # w_d2
        pl.BlockSpec((1, OUT_PAD), const_map),                # b_d2
    ]
    out_specs = (
        pl.BlockSpec((tm, OUT_PAD), row_map),                 # x_recon (padded)
        pl.BlockSpec((tm, LATENT_PAD), row_map),              # mu      (padded)
        pl.BlockSpec((tm, LATENT_PAD), row_map),              # log_var (padded)
    )
    out_shapes = (
        jax.ShapeDtypeStruct((Bp, OUT_PAD), jnp.float32),
        jax.ShapeDtypeStruct((Bp, LATENT_PAD), jnp.float32),
        jax.ShapeDtypeStruct((Bp, LATENT_PAD), jnp.float32),
    )

    # advisory cost estimate (lets XLA schedule the surrounding pad/slice sanely)
    weight_elems = (OUT_PAD * H0 + H0 * H1 + H1 * 2 * LATENT_PAD
                    + LATENT_PAD * H1 + H1 * H0 + H0 * OUT_PAD)
    bias_elems = H0 + H1 + 2 * LATENT_PAD + H1 + H0 + OUT_PAD
    cost = pl.CostEstimate(
        flops=2 * weight_elems * Bp,
        transcendentals=Bp * (LATENT_PAD + OUT_PAD),
        bytes_accessed=(weight_elems * 2 + bias_elems * 4
                        + Bp * (OUT_PAD * 2 + LATENT_PAD * 4          # x, eps in
                                + OUT_PAD * 4 + 2 * LATENT_PAD * 4)), # xrec, mu, lv out
    )

    x_recon_p, mu_p, lv_p = pl.pallas_call(
        _cvae_kernel,
        out_shape=out_shapes,
        grid=(n_tiles,),
        in_specs=in_specs,
        out_specs=out_specs,
        compiler_params=pltpu.CompilerParams(
            dimension_semantics=("parallel",),                # v7x: split batch over 2 TCs
            vmem_limit_bytes=32 * 1024 * 1024,
        ),
        cost_estimate=cost,
    )(
        x_pad, eps_pad,
        params["w_e0"], params["b_e0"],
        params["w_e1"], params["b_e1"],
        params["w_h"], params["b_h"],
        params["w_d0"], params["b_d0"],
        params["w_d1"], params["b_d1"],
        params["w_d2"], params["b_d2"],
    )

    return (
        x_recon_p[:B, :INPUT_DIM],
        mu_p[:B, :LATENT_DIM],
        lv_p[:B, :LATENT_DIM],
    )


# ----------------------------------------------------------------------------
# Pure-JAX reference with the identical packed (bf16) params, for verification.
# ----------------------------------------------------------------------------
def cvae_forward_ref(params, x, y, eps):
    bf, f32 = jnp.bfloat16, jnp.float32
    B = x.shape[0]

    xc = jnp.zeros((B, OUT_PAD), f32)
    xc = xc.at[:, :INPUT_DIM].set(x)
    xc = xc.at[:, INPUT_DIM:INPUT_DIM + NUM_CLASSES].set(y)

    h = jnp.dot(xc.astype(bf), params["w_e0"], preferred_element_type=f32) + params["b_e0"]
    h = jnp.maximum(h, 0.0)
    h = jnp.dot(h.astype(bf), params["w_e1"], preferred_element_type=f32) + params["b_e1"]
    h = jnp.maximum(h, 0.0)
    heads = jnp.dot(h.astype(bf), params["w_h"], preferred_element_type=f32) + params["b_h"]
    mu, lv = heads[:, :LATENT_PAD], heads[:, LATENT_PAD:]

    eps_pad = jnp.zeros((B, LATENT_PAD), f32)
    eps_pad = eps_pad.at[:, :LATENT_DIM].set(eps)
    eps_pad = eps_pad.at[:, Y_IN_Z_OFF:Y_IN_Z_OFF + NUM_CLASSES].set(y)
    z = jnp.exp(0.5 * lv) * eps_pad + mu

    d = jnp.dot(z.astype(bf), params["w_d0"], preferred_element_type=f32) + params["b_d0"]
    d = jnp.maximum(d, 0.0)
    d = jnp.dot(d.astype(bf), params["w_d1"], preferred_element_type=f32) + params["b_d1"]
    d = jnp.maximum(d, 0.0)
    out = jnp.dot(d.astype(bf), params["w_d2"], preferred_element_type=f32) + params["b_d2"]
    x_recon = jax.nn.sigmoid(out)
    return x_recon[:, :INPUT_DIM], mu[:, :LATENT_DIM], lv[:, :LATENT_DIM]


# ----------------------------------------------------------------------------
# main
# ----------------------------------------------------------------------------
if __name__ == "__main__":
    B = 2
    key = jax.random.PRNGKey(0)
    k_params, k_x, k_y, k_eps = jax.random.split(key, 4)

    params = init_cvae_params(k_params)

    # deterministic example inputs
    x = jax.random.uniform(k_x, (B, INPUT_DIM), jnp.float32)          # image in [0,1)
    labels = jax.random.randint(k_y, (B,), 0, NUM_CLASSES)
    y = jax.nn.one_hot(labels, NUM_CLASSES, dtype=jnp.float32)        # [B, 10]
    eps = jax.random.normal(k_eps, (B, LATENT_DIM), jnp.float32)      # reparam noise

    x_recon, mu, log_var = jax.jit(cvae_forward)(params, x, y, eps)
    jax.block_until_ready((x_recon, mu, log_var))

    # shape / range sanity
    assert x_recon.shape == (B, INPUT_DIM)
    assert mu.shape == (B, LATENT_DIM)
    assert log_var.shape == (B, LATENT_DIM)
    assert bool(jnp.all((x_recon >= 0.0) & (x_recon <= 1.0)))
    assert bool(jnp.all(jnp.isfinite(x_recon)))
    assert bool(jnp.all(jnp.isfinite(mu)))
    assert bool(jnp.all(jnp.isfinite(log_var)))

    # numerical parity against a pure-JAX reference using the same bf16 params
    xr_r, mu_r, lv_r = jax.jit(cvae_forward_ref)(params, x, y, eps)
    assert bool(jnp.allclose(x_recon, xr_r, rtol=2e-2, atol=2e-2))
    assert bool(jnp.allclose(mu, mu_r, rtol=2e-2, atol=2e-2))
    assert bool(jnp.allclose(log_var, lv_r, rtol=2e-2, atol=2e-2))

    print("KERNEL_OK")
</pallas_src>

<mosaic_0001>
module attributes {stable_mosaic.version = 11 : i64} {
  func.func @_cvae_kernel(%arg0: i32, %arg1: memref<16x896xbf16, #tpu.memory_space<vmem>>, %arg2: memref<16x128xf32, #tpu.memory_space<vmem>>, %arg3: memref<896x512xbf16, #tpu.memory_space<vmem>>, %arg4: memref<1x512xf32, #tpu.memory_space<vmem>>, %arg5: memref<512x256xbf16, #tpu.memory_space<vmem>>, %arg6: memref<1x256xf32, #tpu.memory_space<vmem>>, %arg7: memref<256x256xbf16, #tpu.memory_space<vmem>>, %arg8: memref<1x256xf32, #tpu.memory_space<vmem>>, %arg9: memref<128x256xbf16, #tpu.memory_space<vmem>>, %arg10: memref<1x256xf32, #tpu.memory_space<vmem>>, %arg11: memref<256x512xbf16, #tpu.memory_space<vmem>>, %arg12: memref<1x512xf32, #tpu.memory_space<vmem>>, %arg13: memref<512x896xbf16, #tpu.memory_space<vmem>>, %arg14: memref<1x896xf32, #tpu.memory_space<vmem>>, %arg15: memref<16x896xf32, #tpu.memory_space<vmem>>, %arg16: memref<16x128xf32, #tpu.memory_space<vmem>>, %arg17: memref<16x128xf32, #tpu.memory_space<vmem>>) attributes {dimension_semantics = [#tpu.dimension_semantics<parallel>], iteration_bounds = array<i64: 1>, scalar_prefetch = 0 : i64, scratch_operands = 0 : i64, tpu.core_type = #tpu.core_type<tc>, window_params = [{transform_indices = @transform_0, window_bounds = array<i64: 16, 896>}, {transform_indices = @transform_1, window_bounds = array<i64: 16, 128>}, {pipeline_mode = #tpu.pipeline_mode<synchronous>, transform_indices = @transform_2, window_bounds = array<i64: 896, 512>}, {pipeline_mode = #tpu.pipeline_mode<synchronous>, transform_indices = @transform_3, window_bounds = array<i64: 1, 512>}, {pipeline_mode = #tpu.pipeline_mode<synchronous>, transform_indices = @transform_4, window_bounds = array<i64: 512, 256>}, {pipeline_mode = #tpu.pipeline_mode<synchronous>, transform_indices = @transform_5, window_bounds = array<i64: 1, 256>}, {pipeline_mode = #tpu.pipeline_mode<synchronous>, transform_indices = @transform_6, window_bounds = array<i64: 256, 256>}, {pipeline_mode = #tpu.pipeline_mode<synchronous>, transform_indices = @transform_7, window_bounds = array<i64: 1, 256>}, {pipeline_mode = #tpu.pipeline_mode<synchronous>, transform_indices = @transform_8, window_bounds = array<i64: 128, 256>}, {pipeline_mode = #tpu.pipeline_mode<synchronous>, transform_indices = @transform_9, window_bounds = array<i64: 1, 256>}, {pipeline_mode = #tpu.pipeline_mode<synchronous>, transform_indices = @transform_10, window_bounds = array<i64: 256, 512>}, {pipeline_mode = #tpu.pipeline_mode<synchronous>, transform_indices = @transform_11, window_bounds = array<i64: 1, 512>}, {pipeline_mode = #tpu.pipeline_mode<synchronous>, transform_indices = @transform_12, window_bounds = array<i64: 512, 896>}, {pipeline_mode = #tpu.pipeline_mode<synchronous>, transform_indices = @transform_13, window_bounds = array<i64: 1, 896>}, {transform_indices = @transform_14, window_bounds = array<i64: 16, 896>}, {transform_indices = @transform_15, window_bounds = array<i64: 16, 128>}, {transform_indices = @transform_16, window_bounds = array<i64: 16, 128>}]} {
    %c0 = arith.constant 0 : index
    %c0_0 = arith.constant 0 : index
    %0 = vector.load %arg1[%c0, %c0_0] : memref<16x896xbf16, #tpu.memory_space<vmem>>, vector<16x896xbf16>
    %c0_1 = arith.constant 0 : index
    %c0_2 = arith.constant 0 : index
    %1 = vector.load %arg3[%c0_1, %c0_2] : memref<896x512xbf16, #tpu.memory_space<vmem>>, vector<896x512xbf16>
    %cst = arith.constant dense<0.000000e+00> : vector<16x512xf32>
    %2 = tpu.matmul %0, %1, %cst {dimension_numbers = #tpu.dot_dimension_numbers<[1], [0], [0], [1], [0, 0, 1, 1], [], []>} : vector<16x896xbf16>, vector<896x512xbf16>, vector<16x512xf32> -> vector<16x512xf32>
    %c0_3 = arith.constant 0 : index
    %c0_4 = arith.constant 0 : index
    %3 = vector.load %arg4[%c0_3, %c0_4] : memref<1x512xf32, #tpu.memory_space<vmem>>, vector<1x512xf32>
    %4 = vector.broadcast %3 : vector<1x512xf32> to vector<16x512xf32>
    %5 = arith.addf %2, %4 : vector<16x512xf32>
    %cst_5 = arith.constant 0.000000e+00 : f32
    %6 = vector.broadcast %cst_5 : f32 to vector<16x512xf32>
    %7 = arith.maximumf %5, %6 : vector<16x512xf32>
    %8 = arith.truncf %7 : vector<16x512xf32> to vector<16x512xbf16>
    %c0_6 = arith.constant 0 : index
    %c0_7 = arith.constant 0 : index
    %9 = vector.load %arg5[%c0_6, %c0_7] : memref<512x256xbf16, #tpu.memory_space<vmem>>, vector<512x256xbf16>
    %cst_8 = arith.constant dense<0.000000e+00> : vector<16x256xf32>
    %10 = tpu.matmul %8, %9, %cst_8 {dimension_numbers = #tpu.dot_dimension_numbers<[1], [0], [0], [1], [0, 0, 1, 1], [], []>} : vector<16x512xbf16>, vector<512x256xbf16>, vector<16x256xf32> -> vector<16x256xf32>
    %c0_9 = arith.constant 0 : index
    %c0_10 = arith.constant 0 : index
    %11 = vector.load %arg6[%c0_9, %c0_10] : memref<1x256xf32, #tpu.memory_space<vmem>>, vector<1x256xf32>
    %12 = vector.broadcast %11 : vector<1x256xf32> to vector<16x256xf32>
    %13 = arith.addf %10, %12 : vector<16x256xf32>
    %cst_11 = arith.constant 0.000000e+00 : f32
    %14 = vector.broadcast %cst_11 : f32 to vector<16x256xf32>
    %15 = arith.maximumf %13, %14 : vector<16x256xf32>
    %16 = arith.truncf %15 : vector<16x256xf32> to vector<16x256xbf16>
    %c0_12 = arith.constant 0 : index
    %c0_13 = arith.constant 0 : index
    %17 = vector.load %arg7[%c0_12, %c0_13] : memref<256x256xbf16, #tpu.memory_space<vmem>>, vector<256x256xbf16>
    %cst_14 = arith.constant dense<0.000000e+00> : vector<16x256xf32>
    %18 = tpu.matmul %16, %17, %cst_14 {dimension_numbers = #tpu.dot_dimension_numbers<[1], [0], [0], [1], [0, 0, 1, 1], [], []>} : vector<16x256xbf16>, vector<256x256xbf16>, vector<16x256xf32> -> vector<16x256xf32>
    %c0_15 = arith.constant 0 : index
    %c0_16 = arith.constant 0 : index
    %19 = vector.load %arg8[%c0_15, %c0_16] : memref<1x256xf32, #tpu.memory_space<vmem>>, vector<1x256xf32>
    %20 = vector.broadcast %19 : vector<1x256xf32> to vector<16x256xf32>
    %21 = arith.addf %18, %20 : vector<16x256xf32>
    %22 = vector.extract_strided_slice %21 {offsets = [0, 0], sizes = [16, 128], strides = [1, 1]} : vector<16x256xf32> to vector<16x128xf32>
    %23 = vector.extract_strided_slice %21 {offsets = [0, 128], sizes = [16, 128], strides = [1, 1]} : vector<16x256xf32> to vector<16x128xf32>
    %c0_17 = arith.constant 0 : index
    %c0_18 = arith.constant 0 : index
    %24 = vector.load %arg16[%c0_17, %c0_18] : memref<16x128xf32, #tpu.memory_space<vmem>>, vector<16x128xf32>
    tpu.vector_store %arg16[%c0_17, %c0_18], %22 {strides = array<i32>} : memref<16x128xf32, #tpu.memory_space<vmem>>, vector<16x128xf32>,
    %c0_19 = arith.constant 0 : index
    %c0_20 = arith.constant 0 : index
    %25 = vector.load %arg17[%c0_19, %c0_20] : memref<16x128xf32, #tpu.memory_space<vmem>>, vector<16x128xf32>
    tpu.vector_store %arg17[%c0_19, %c0_20], %23 {strides = array<i32>} : memref<16x128xf32, #tpu.memory_space<vmem>>, vector<16x128xf32>,
    %cst_21 = arith.constant 5.000000e-01 : f32
    %26 = vector.broadcast %cst_21 : f32 to vector<16x128xf32>
    %27 = arith.mulf %26, %23 : vector<16x128xf32>
    %28 = math.exp %27 : vector<16x128xf32>
    %c0_22 = arith.constant 0 : index
    %c0_23 = arith.constant 0 : index
    %29 = vector.load %arg2[%c0_22, %c0_23] : memref<16x128xf32, #tpu.memory_space<vmem>>, vector<16x128xf32>
    %30 = arith.mulf %28, %29 : vector<16x128xf32>
    %31 = arith.addf %30, %22 : vector<16x128xf32>
    %32 = arith.truncf %31 : vector<16x128xf32> to vector<16x128xbf16>
    %c0_24 = arith.constant 0 : index
    %c0_25 = arith.constant 0 : index
    %33 = vector.load %arg9[%c0_24, %c0_25] : memref<128x256xbf16, #tpu.memory_space<vmem>>, vector<128x256xbf16>
    %cst_26 = arith.constant dense<0.000000e+00> : vector<16x256xf32>
    %34 = tpu.matmul %32, %33, %cst_26 {dimension_numbers = #tpu.dot_dimension_numbers<[1], [0], [0], [1], [0, 0, 1, 1], [], []>} : vector<16x128xbf16>, vector<128x256xbf16>, vector<16x256xf32> -> vector<16x256xf32>
    %c0_27 = arith.constant 0 : index
    %c0_28 = arith.constant 0 : index
    %35 = vector.load %arg10[%c0_27, %c0_28] : memref<1x256xf32, #tpu.memory_space<vmem>>, vector<1x256xf32>
    %36 = vector.broadcast %35 : vector<1x256xf32> to vector<16x256xf32>
    %37 = arith.addf %34, %36 : vector<16x256xf32>
    %cst_29 = arith.constant 0.000000e+00 : f32
    %38 = vector.broadcast %cst_29 : f32 to vector<16x256xf32>
    %39 = arith.maximumf %37, %38 : vector<16x256xf32>
    %40 = arith.truncf %39 : vector<16x256xf32> to vector<16x256xbf16>
    %c0_30 = arith.constant 0 : index
    %c0_31 = arith.constant 0 : index
    %41 = vector.load %arg11[%c0_30, %c0_31] : memref<256x512xbf16, #tpu.memory_space<vmem>>, vector<256x512xbf16>
    %cst_32 = arith.constant dense<0.000000e+00> : vector<16x512xf32>
    %42 = tpu.matmul %40, %41, %cst_32 {dimension_numbers = #tpu.dot_dimension_numbers<[1], [0], [0], [1], [0, 0, 1, 1], [], []>} : vector<16x256xbf16>, vector<256x512xbf16>, vector<16x512xf32> -> vector<16x512xf32>
    %c0_33 = arith.constant 0 : index
    %c0_34 = arith.constant 0 : index
    %43 = vector.load %arg12[%c0_33, %c0_34] : memref<1x512xf32, #tpu.memory_space<vmem>>, vector<1x512xf32>
    %44 = vector.broadcast %43 : vector<1x512xf32> to vector<16x512xf32>
    %45 = arith.addf %42, %44 : vector<16x512xf32>
    %cst_35 = arith.constant 0.000000e+00 : f32
    %46 = vector.broadcast %cst_35 : f32 to vector<16x512xf32>
    %47 = arith.maximumf %45, %46 : vector<16x512xf32>
    %48 = arith.truncf %47 : vector<16x512xf32> to vector<16x512xbf16>
    %c0_36 = arith.constant 0 : index
    %c0_37 = arith.constant 0 : index
    %49 = vector.load %arg13[%c0_36, %c0_37] : memref<512x896xbf16, #tpu.memory_space<vmem>>, vector<512x896xbf16>
    %cst_38 = arith.constant dense<0.000000e+00> : vector<16x896xf32>
    %50 = tpu.matmul %48, %49, %cst_38 {dimension_numbers = #tpu.dot_dimension_numbers<[1], [0], [0], [1], [0, 0, 1, 1], [], []>} : vector<16x512xbf16>, vector<512x896xbf16>, vector<16x896xf32> -> vector<16x896xf32>
    %c0_39 = arith.constant 0 : index
    %c0_40 = arith.constant 0 : index
    %51 = vector.load %arg14[%c0_39, %c0_40] : memref<1x896xf32, #tpu.memory_space<vmem>>, vector<1x896xf32>
    %52 = vector.broadcast %51 : vector<1x896xf32> to vector<16x896xf32>
    %53 = arith.addf %50, %52 : vector<16x896xf32>
    %54 = arith.negf %53 : vector<16x896xf32>
    %55 = math.exp %54 : vector<16x896xf32>
    %cst_41 = arith.constant 1.000000e+00 : f32
    %56 = vector.broadcast %cst_41 : f32 to vector<16x896xf32>
    %57 = arith.addf %56, %55 : vector<16x896xf32>
    %58 = arith.divf %56, %57 : vector<16x896xf32>
    %c0_42 = arith.constant 0 : index
    %c0_43 = arith.constant 0 : index
    %59 = vector.load %arg15[%c0_42, %c0_43] : memref<16x896xf32, #tpu.memory_space<vmem>>, vector<16x896xf32>
    tpu.vector_store %arg15[%c0_42, %c0_43], %58 {strides = array<i32>} : memref<16x896xf32, #tpu.memory_space<vmem>>, vector<16x896xf32>,
    return
  }
  func.func @transform_0(%arg0: i32) -> (i32, i32) {
    %c0_i32 = arith.constant 0 : i32
    %c0_i32_0 = arith.constant 0 : i32
    return %arg0, %c0_i32 : i32, i32
  }
  func.func @transform_1(%arg0: i32) -> (i32, i32) {
    %c0_i32 = arith.constant 0 : i32
    %c0_i32_0 = arith.constant 0 : i32
    return %arg0, %c0_i32 : i32, i32
  }
  func.func @transform_2(%arg0: i32) -> (i32, i32) {
    %c0_i32 = arith.constant 0 : i32
    %c0_i32_0 = arith.constant 0 : i32
    %c0_i32_1 = arith.constant 0 : i32
    return %c0_i32, %c0_i32_0 : i32, i32
  }
  func.func @transform_3(%arg0: i32) -> (i32, i32) {
    %c0_i32 = arith.constant 0 : i32
    %c0_i32_0 = arith.constant 0 : i32
    %c0_i32_1 = arith.constant 0 : i32
    return %c0_i32, %c0_i32_0 : i32, i32
  }
  func.func @transform_4(%arg0: i32) -> (i32, i32) {
    %c0_i32 = arith.constant 0 : i32
    %c0_i32_0 = arith.constant 0 : i32
    %c0_i32_1 = arith.constant 0 : i32
    return %c0_i32, %c0_i32_0 : i32, i32
  }
  func.func @transform_5(%arg0: i32) -> (i32, i32) {
    %c0_i32 = arith.constant 0 : i32
    %c0_i32_0 = arith.constant 0 : i32
    %c0_i32_1 = arith.constant 0 : i32
    return %c0_i32, %c0_i32_0 : i32, i32
  }
  func.func @transform_6(%arg0: i32) -> (i32, i32) {
    %c0_i32 = arith.constant 0 : i32
    %c0_i32_0 = arith.constant 0 : i32
    %c0_i32_1 = arith.constant 0 : i32
    return %c0_i32, %c0_i32_0 : i32, i32
  }
  func.func @transform_7(%arg0: i32) -> (i32, i32) {
    %c0_i32 = arith.constant 0 : i32
    %c0_i32_0 = arith.constant 0 : i32
    %c0_i32_1 = arith.constant 0 : i32
    return %c0_i32, %c0_i32_0 : i32, i32
  }
  func.func @transform_8(%arg0: i32) -> (i32, i32) {
    %c0_i32 = arith.constant 0 : i32
    %c0_i32_0 = arith.constant 0 : i32
    %c0_i32_1 = arith.constant 0 : i32
    return %c0_i32, %c0_i32_0 : i32, i32
  }
  func.func @transform_9(%arg0: i32) -> (i32, i32) {
    %c0_i32 = arith.constant 0 : i32
    %c0_i32_0 = arith.constant 0 : i32
    %c0_i32_1 = arith.constant 0 : i32
    return %c0_i32, %c0_i32_0 : i32, i32
  }
  func.func @transform_10(%arg0: i32) -> (i32, i32) {
    %c0_i32 = arith.constant 0 : i32
    %c0_i32_0 = arith.constant 0 : i32
    %c0_i32_1 = arith.constant 0 : i32
    return %c0_i32, %c0_i32_0 : i32, i32
  }
  func.func @transform_11(%arg0: i32) -> (i32, i32) {
    %c0_i32 = arith.constant 0 : i32
    %c0_i32_0 = arith.constant 0 : i32
    %c0_i32_1 = arith.constant 0 : i32
    return %c0_i32, %c0_i32_0 : i32, i32
  }
  func.func @transform_12(%arg0: i32) -> (i32, i32) {
    %c0_i32 = arith.constant 0 : i32
    %c0_i32_0 = arith.constant 0 : i32
    %c0_i32_1 = arith.constant 0 : i32
    return %c0_i32, %c0_i32_0 : i32, i32
  }
  func.func @transform_13(%arg0: i32) -> (i32, i32) {
    %c0_i32 = arith.constant 0 : i32
    %c0_i32_0 = arith.constant 0 : i32
    %c0_i32_1 = arith.constant 0 : i32
    return %c0_i32, %c0_i32_0 : i32, i32
  }
  func.func @transform_14(%arg0: i32) -> (i32, i32) {
    %c0_i32 = arith.constant 0 : i32
    %c0_i32_0 = arith.constant 0 : i32
    return %arg0, %c0_i32 : i32, i32
  }
  func.func @transform_15(%arg0: i32) -> (i32, i32) {
    %c0_i32 = arith.constant 0 : i32
    %c0_i32_0 = arith.constant 0 : i32
    return %arg0, %c0_i32 : i32, i32
  }
  func.func @transform_16(%arg0: i32) -> (i32, i32) {
    %c0_i32 = arith.constant 0 : i32
    %c0_i32_0 = arith.constant 0 : i32
    return %arg0, %c0_i32 : i32, i32
  }
}

</mosaic_0001>

<bundles_post_ra>
// kernel: cvae_forward.1
= control target key start
LH: loop header
LB: loop body
LE: loop exit
PB: predicated region body
PF: predicated region fallthrough
CT: control target
= control target key end

     0   :  { %s9435_s0 = inlined_call_operand.vmem [shape: bf16[16,896], index: 0, kind: input, shape index: {}]   ;;  %s9436_s1 = inlined_call_operand.vmem [shape: f32[16,128], index: 1, kind: input, shape index: {}]   ;;  %s9437_s2 = inlined_call_operand.hbm [shape: bf16[896,512], index: 2, kind: input, shape index: {}]   ;;  %s9438_s3 = inlined_call_operand.vmem [shape: f32[1,512], index: 3, kind: input, shape index: {}]   ;;  %s9439_s4 = inlined_call_operand.hbm [shape: bf16[512,256], index: 4, kind: input, shape index: {}]   ;;  %s9440_s5 = inlined_call_operand.hbm [shape: f32[1,256], index: 5, kind: input, shape index: {}]   ;;  %s9441_s6 = inlined_call_operand.hbm [shape: bf16[256,256], index: 6, kind: input, shape index: {}]   ;;  %s9442_s7 = inlined_call_operand.hbm [shape: f32[1,256], index: 7, kind: input, shape index: {}]   ;;  %s9443_s8 = inlined_call_operand.vmem [shape: bf16[128,256], index: 8, kind: input, shape index: {}]   ;;  %s9444_s9 = inlined_call_operand.hbm [shape: f32[1,256], index: 9, kind: input, shape index: {}]   ;;  %s9445_s10 = inlined_call_operand.hbm [shape: bf16[256,512], index: 10, kind: input, shape index: {}]   ;;  %s9446_s11 = inlined_call_operand.vmem [shape: f32[1,512], index: 11, kind: input, shape index: {}]   ;;  %s9447_s12 = inlined_call_operand.hbm [shape: bf16[512,896], index: 12, kind: input, shape index: {}]   ;;  %s9448_s13 = inlined_call_operand.vmem [shape: f32[1,896], index: 13, kind: input, shape index: {}]   ;;  %s9449_s14 = inlined_call_operand.vmem [shape: f32[16,896], index: 14, kind: output, shape index: {0}]   ;;  %s9450_s15 = inlined_call_operand.vmem [shape: f32[16,128], index: 15, kind: output, shape index: {1}]   ;;  %s9451_s16 = inlined_call_operand.vmem [shape: f32[16,128], index: 16, kind: output, shape index: {2}]  }
   0x1   :  { %9453 = sst [smem:[#allocation20_spill]] %s9435_s0 }
   0x2   :  { %22 = vsyncpa [#allocation3], 0 }
   0x3   :  { %23 = vsyncpa [#allocation5], 0 }
   0x4   :  { %24 = vsyncpa [#allocation8], 0 }
   0x5   :  { %25 = vsyncpa [#allocation11], 0  ;;  %s50_s23 = sshll.u32 %s9439_s4, 4  ;;  %s51_s23 = int_to_ptr.hbm [resolvable:$true] %s50_s23 }
   0x6   :  { %26 = vsyncpa [#allocation14], 0  ;;  %s8962_s24 = smov [#allocation4]   ;;  %s74_s28 = sshll.u32 %s9441_s6, 4  ;;  %s75_s28 = int_to_ptr.hbm [resolvable:$true] %s74_s28 }
   0x7   :  { %s52_s25 = sshll.u32 %s8962_s24, 4  ;;  %s8963_s29 = smov 128   ;;  %s53_s25 = int_to_ptr.vmem [resolvable:$true] %s52_s25 }
   0x8   :  { %s8964_s30 = smov 8   ;;  %s8965_s0 = smov [#allocation7]  }
   0x9   :  { %58 = dma.hbm_to_vmem [thread:$0]  %s51_s23, 8192, %s53_s25, [#allocation5], %s8963_s29, %s8963_s29, %s8964_s30  }
   0xa   :  { %s76_s17 = sshll.u32 %s8965_s0, 4  ;;  %s101_s20 = sshll.u32 %s9444_s9, 4  ;;  %s77_s17 = int_to_ptr.vmem [resolvable:$true] %s76_s17  ;;  %s102_s20 = int_to_ptr.hbm [resolvable:$true] %s101_s20 }
   0xb   :  { %82 = dma.hbm_to_vmem [thread:$0]  %s75_s28, 4096, %s77_s17, [#allocation8], %s8963_s29, %s8963_s29, %s8964_s30  }
   0xc   :  { %s35_s22 = sshll.u32 %s9437_s2, 4  ;;  %s8966_s24 = smov [#allocation10]   ;;  %s36_s22 = int_to_ptr.hbm [resolvable:$true] %s35_s22 }
   0xd   :  { %s103_s26 = sshll.u32 %s8966_s24, 4  ;;  %s8967_s6 = smov [#allocation2]   ;;  %s104_s26 = int_to_ptr.vmem [resolvable:$true] %s103_s26 }
   0xe   :  { %106 = dma.hbm_to_vmem [thread:$0]  %s102_s20, 32, %s104_s26, [#allocation11]  }
   0xf   :  { %s37_s23 = sshll.u32 %s8967_s6, 4  ;;  %s8968_s25 = smov 256   ;;  %s38_s23 = int_to_ptr.vmem [resolvable:$true] %s37_s23 }
  0x10   :  { %s8969_s27 = smov 16   ;;  %s64_s18 = sshll.u32 %s9440_s5, 4  ;;  %s65_s18 = int_to_ptr.hbm [resolvable:$true] %s64_s18 }
  0x11   :  { %43 = dma.hbm_to_vmem [thread:$0]  %s36_s22, 28672, %s38_s23, [#allocation3], %s8968_s25, %s8968_s25, %s8969_s27  }
  0x12   :  { %s8970_s28 = smov [#allocation6]   ;;  %s88_s17 = sshll.u32 %s9442_s7, 4  ;;  %s89_s17 = int_to_ptr.hbm [resolvable:$true] %s88_s17 }
  0x13   :  { %s66_s29 = sshll.u32 %s8970_s28, 4  ;;  %s8971_s19 = smov [#allocation9]   ;;  %s67_s29 = int_to_ptr.vmem [resolvable:$true] %s66_s29 }
  0x14   :  { %69 = dma.hbm_to_vmem [thread:$0]  %s65_s18, 32, %s67_s29, [#allocation5]  }
  0x15   :  { %s90_s20 = sshll.u32 %s8971_s19, 4  ;;  %s111_s22 = sshll.u32 %s9445_s10, 4  ;;  %s91_s20 = int_to_ptr.vmem [resolvable:$true] %s90_s20  ;;  %s112_s22 = int_to_ptr.hbm [resolvable:$true] %s111_s22 }
  0x16   :  { %93 = dma.hbm_to_vmem [thread:$0]  %s89_s17, 32, %s91_s20, [#allocation8]  }
  0x17   :  { %s126_s26 = sshll.u32 %s9447_s12, 4  ;;  %s8972_s6 = smov [#allocation12]   ;;  %s127_s26 = int_to_ptr.hbm [resolvable:$true] %s126_s26 }
  0x18   :  { %s113_s23 = sshll.u32 %s8972_s6, 4  ;;  %s8973_s7 = smov [#allocation13]   ;;  %s114_s23 = int_to_ptr.vmem [resolvable:$true] %s113_s23 }
  0x19   :  { %119 = dma.hbm_to_vmem [thread:$0]  %s112_s22, 8192, %s114_s23, [#allocation11], %s8968_s25, %s8968_s25, %s8969_s27  }
  0x1a   :  { %s128_s0 = sshll.u32 %s8973_s7, 4  ;;  %s8974_s9 = smov 448   ;;  %s129_s0 = int_to_ptr.vmem [resolvable:$true] %s128_s0 }
  0x1b   :  { %s8975_s18 = smov 28  }
  0x1c   :  { %134 = dma.hbm_to_vmem [thread:$0]  %s127_s26, 28672, %s129_s0, [#allocation14], %s8974_s9, %s8974_s9, %s8975_s18  }
  0x1d   :  { %8952 = dma.done.wait [#allocation3], 28672  }
  0x1e   :  { %8953 = vsyncadd [#allocation3], 4294938624 }
  0x1f   :  { %8954 = dma.done.wait [#allocation5], 8224  }
  0x20   :  { %8955 = vsyncadd [#allocation5], 4294959072 }
  0x21   :  { %8956 = dma.done.wait [#allocation8], 4128  }
  0x22   :  { %8957 = vsyncadd [#allocation8], 4294963168 }
  0x23   :  { %8958 = dma.done.wait [#allocation11], 8224  }
  0x24   :  { %8959 = vsyncadd [#allocation11], 4294959072 }
  0x25   :  { %8960 = dma.done.wait [#allocation14], 28672  }
  0x26   :  { %8961 = vsyncadd [#allocation14], 4294938624  ;;  %v5659_v0 = vld [vmem:[#allocation2 + $0xe0] sm:$0xf]  ;;  %v8092_v1 = vld [vmem:[#allocation2 + $0xec] sm:$0xf0] }
  0x27   :  { %v5787_v2 = vld [vmem:[#allocation2 + $0x1e0] sm:$0xf]  ;;  %v5660_v3 = vor.u32 %v8092_v1, %v5659_v0  ;;  %v8124_v4 = vld [vmem:[#allocation2 + $0x1ec] sm:$0xf0]  ;;  %s9454_s25 = sld [smem:[#allocation20_spill]] }
  0x28   :  { %v5915_v5 = vld [vmem:[#allocation2 + $0x2e0] sm:$0xf]  ;;  %v8156_v6 = vld [vmem:[#allocation2 + $0x2ec] sm:$0xf0]  ;;  %v5788_v7 = vor.u32 %v8124_v4, %v5787_v2 }
  0x29   :  { %v5916_v8 = vor.u32 %v8156_v6, %v5915_v5  ;;  %v6043_v9 = vld [vmem:[#allocation2 + $0x3e0] sm:$0xf]  ;;  %v8188_v10 = vld [vmem:[#allocation2 + $0x3ec] sm:$0xf0]  ;;  %1567 = vmatpush.bf16.msra.mxu0 %v5660_v3 }
  0x2a   :  { %v5643_v11 = vld [vmem:[#allocation2 + $0xc0] sm:$0xf]  ;;  %v6044_v12 = vor.u32 %v8188_v10, %v6043_v9  ;;  %v8088_v13 = vld [vmem:[#allocation2 + $0xcc] sm:$0xf0]  ;;  %1581 = vmatpush.bf16.msra.mxu1 %v5788_v7 }
  0x2b   :  { %v5771_v14 = vld [vmem:[#allocation2 + $0x1c0] sm:$0xf]  ;;  %v8120_v15 = vld [vmem:[#allocation2 + $0x1cc] sm:$0xf0]  ;;  %1595 = vmatpush.bf16.msra.mxu2 %v5916_v8  ;;  %v5644_v16 = vor.u32 %v8088_v13, %v5643_v11 }
  0x2c   :  { %v5772_v17 = vor.u32 %v8120_v15, %v5771_v14  ;;  %v5899_v18 = vld [vmem:[#allocation2 + $0x2c0] sm:$0xf]  ;;  %v8152_v19 = vld [vmem:[#allocation2 + $0x2cc] sm:$0xf0]  ;;  %1609 = vmatpush.bf16.msra.mxu3 %v6044_v12 }
  0x2d   :  { %v6027_v20 = vld [vmem:[#allocation2 + $0x3c0] sm:$0xf]  ;;  %v5900_v21 = vor.u32 %v8152_v19, %v5899_v18  ;;  %v8184_v22 = vld [vmem:[#allocation2 + $0x3cc] sm:$0xf0]  ;;  %1568 = vmatpush.bf16.msra.mxu0 %v5644_v16 }
  0x2e   :  { %v5627_v23 = vld [vmem:[#allocation2 + $0xa0] sm:$0xf]  ;;  %v8084_v24 = vld [vmem:[#allocation2 + $0xac] sm:$0xf0]  ;;  %v6028_v25 = vor.u32 %v8184_v22, %v6027_v20  ;;  %1582 = vmatpush.bf16.msra.mxu1 %v5772_v17 }
  0x2f   :  { %v5755_v26 = vld [vmem:[#allocation2 + $0x1a0] sm:$0xf]  ;;  %v8116_v27 = vld [vmem:[#allocation2 + $0x1ac] sm:$0xf0]  ;;  %v5628_v29 = vor.u32 %v8084_v24, %v5627_v23  ;;  %1596 = vmatpush.bf16.msra.mxu2 %v5900_v21 }
  0x30   :  { %v5883_v28 = vld [vmem:[#allocation2 + $0x2a0] sm:$0xf]  ;;  %v8148_v30 = vld [vmem:[#allocation2 + $0x2ac] sm:$0xf0]  ;;  %v5756_v33 = vor.u32 %v8116_v27, %v5755_v26  ;;  %1610 = vmatpush.bf16.msra.mxu3 %v6028_v25 }
  0x31   :  { %v6011_v31 = vld [vmem:[#allocation2 + $0x3a0] sm:$0xf]  ;;  %v8180_v32 = vld [vmem:[#allocation2 + $0x3ac] sm:$0xf0]  ;;  %v5884_v34 = vor.u32 %v8148_v30, %v5883_v28  ;;  %1569 = vmatpush.bf16.msra.mxu0 %v5628_v29 }
  0x32   :  { %v5611_v35 = vld [vmem:[#allocation2 + $0x80] sm:$0xf]  ;;  %v8080_v36 = vld [vmem:[#allocation2 + $0x8c] sm:$0xf0]  ;;  %v6012_v38 = vor.u32 %v8180_v32, %v6011_v31  ;;  %1583 = vmatpush.bf16.msra.mxu1 %v5756_v33 }
  0x33   :  { %v5739_v37 = vld [vmem:[#allocation2 + $0x180] sm:$0xf]  ;;  %v8112_v39 = vld [vmem:[#allocation2 + $0x18c] sm:$0xf0]  ;;  %v5612_v44 = vor.u32 %v8080_v36, %v5611_v35  ;;  %1597 = vmatpush.bf16.msra.mxu2 %v5884_v34 }
  0x34   :  { %v5867_v40 = vld [vmem:[#allocation2 + $0x280] sm:$0xf]  ;;  %v8144_v41 = vld [vmem:[#allocation2 + $0x28c] sm:$0xf0]  ;;  %v5740_v45 = vor.u32 %v8112_v39, %v5739_v37  ;;  %1611 = vmatpush.bf16.msra.mxu3 %v6012_v38  ;;  %v8090_v37 = vld [vmem:[#allocation2 + $0xe4] sm:$0xf] }
  0x35   :  { %v5995_v42 = vld [vmem:[#allocation2 + $0x380] sm:$0xf]  ;;  %v8176_v43 = vld [vmem:[#allocation2 + $0x38c] sm:$0xf0]  ;;  %v5868_v46 = vor.u32 %v8144_v41, %v5867_v40  ;;  %1570 = vmatpush.bf16.msra.mxu0 %v5612_v44  ;;  %v5661_v38 = vld [vmem:[#allocation2 + $0xf0] sm:$0xf0] }
  0x36   :  { %v5595_v47 = vld [vmem:[#allocation2 + $0x60] sm:$0xf]  ;;  %v8076_v48 = vld [vmem:[#allocation2 + $0x6c] sm:$0xf0]  ;;  %v5996_v50 = vor.u32 %v8176_v43, %v5995_v42  ;;  %1584 = vmatpush.bf16.msra.mxu1 %v5740_v45 }
  0x37   :  { %v5723_v49 = vld [vmem:[#allocation2 + $0x160] sm:$0xf]  ;;  %v8108_v51 = vld [vmem:[#allocation2 + $0x16c] sm:$0xf0]  ;;  %v5596_v56 = vor.u32 %v8076_v48, %v5595_v47  ;;  %1598 = vmatpush.bf16.msra.mxu2 %v5868_v46  ;;  %v5664_v48 = vor.u32 %v8090_v37, %v5661_v38 }
  0x38   :  { %v5851_v52 = vld [vmem:[#allocation2 + $0x260] sm:$0xf]  ;;  %v8140_v53 = vld [vmem:[#allocation2 + $0x26c] sm:$0xf0]  ;;  %v5724_v57 = vor.u32 %v8108_v51, %v5723_v49  ;;  %1612 = vmatpush.bf16.msra.mxu3 %v5996_v50  ;;  %v8086_v50 = vld [vmem:[#allocation2 + $0xc4] sm:$0xf] }
  0x39   :  { %v5979_v54 = vld [vmem:[#allocation2 + $0x360] sm:$0xf]  ;;  %v8172_v55 = vld [vmem:[#allocation2 + $0x36c] sm:$0xf0]  ;;  %v5852_v58 = vor.u32 %v8140_v53, %v5851_v52  ;;  %1571 = vmatpush.bf16.msra.mxu0 %v5596_v56  ;;  %v5645_v51 = vld [vmem:[#allocation2 + $0xd0] sm:$0xf0] }
  0x3a   :  { %v5579_v59 = vld [vmem:[#allocation2 + $0x40] sm:$0xf]  ;;  %v8072_v60 = vld [vmem:[#allocation2 + $0x4c] sm:$0xf0]  ;;  %v5980_v62 = vor.u32 %v8172_v55, %v5979_v54  ;;  %1585 = vmatpush.bf16.msra.mxu1 %v5724_v57  ;;  %v8058_v53 = vld [vmem:[%s9454_s25 + $0x18] sm:$0xf0] }
  0x3b   :  { %v5707_v61 = vld [vmem:[#allocation2 + $0x140] sm:$0xf]  ;;  %v8104_v63 = vld [vmem:[#allocation2 + $0x14c] sm:$0xf0]  ;;  %v5580_v4 = vor.u32 %v8072_v60, %v5579_v59  ;;  %1599 = vmatpush.bf16.msra.mxu2 %v5852_v58  ;;  %v5527_v54 = vld [vmem:[%s9454_s25 + $0x8] sm:$0xf] }
  0x3c   :  { %v5835_v0 = vld [vmem:[#allocation2 + $0x240] sm:$0xf]  ;;  %v8136_v1 = vld [vmem:[#allocation2 + $0x24c] sm:$0xf0]  ;;  %v5708_v5 = vor.u32 %v8104_v63, %v5707_v61  ;;  %1613 = vmatpush.bf16.msra.mxu3 %v5980_v62  ;;  %v8059_v58 = vld [vmem:[%s9454_s25 + $0x20] sm:$0xf0] }
  0x3d   :  { %v5963_v2 = vld [vmem:[#allocation2 + $0x340] sm:$0xf]  ;;  %v8168_v3 = vld [vmem:[#allocation2 + $0x34c] sm:$0xf0]  ;;  %v5836_v6 = vor.u32 %v8136_v1, %v5835_v0  ;;  %1572 = vmatpush.bf16.msra.mxu0 %v5580_v4  ;;  %v9099_v0 = vor.u32 %v8059_v58, %v5527_v54  ;;  %v5648_v1 = vor.u32 %v8086_v50, %v5645_v51  ;;  %v8082_v4 = vld [vmem:[#allocation2 + $0xa4] sm:$0xf] }
  0x3e   :  { %v5563_v7 = vld [vmem:[#allocation2 + $0x20] sm:$0xf]  ;;  %v8068_v8 = vld [vmem:[#allocation2 + $0x2c] sm:$0xf0]  ;;  %v5964_v10 = vor.u32 %v8168_v3, %v5963_v2  ;;  %1586 = vmatpush.bf16.msra.mxu1 %v5708_v5  ;;  %v5629_v5 = vld [vmem:[#allocation2 + $0xb0] sm:$0xf0] }
  0x3f   :  { %v5691_v9 = vld [vmem:[#allocation2 + $0x120] sm:$0xf]  ;;  %v8100_v11 = vld [vmem:[#allocation2 + $0x12c] sm:$0xf0]  ;;  %v5564_v16 = vor.u32 %v8068_v8, %v5563_v7  ;;  %1600 = vmatpush.bf16.msra.mxu2 %v5836_v6  ;;  %v8055_v6 = vld [vmem:[%s9454_s25 + $0x4] sm:$0xf] }
  0x40   :  { %v5819_v12 = vld [vmem:[#allocation2 + $0x220] sm:$0xf]  ;;  %v8132_v13 = vld [vmem:[#allocation2 + $0x22c] sm:$0xf0]  ;;  %v5692_v19 = vor.u32 %v8100_v11, %v5691_v9  ;;  %1614 = vmatpush.bf16.msra.mxu3 %v5964_v10 }
  0x41   :  { %v5947_v14 = vld [vmem:[#allocation2 + $0x320] sm:$0xf]  ;;  %v8164_v15 = vld [vmem:[#allocation2 + $0x32c] sm:$0xf0]  ;;  %v5820_v20 = vor.u32 %v8132_v13, %v5819_v12  ;;  %1573 = vmatpush.bf16.msra.mxu0 %v5564_v16 }
  0x42   :  { %v5547_v17 = vld [vmem:[#allocation2] sm:$0xf]  ;;  %v8064_v18 = vld [vmem:[#allocation2 + $0xc] sm:$0xf0]  ;;  %v5948_v24 = vor.u32 %v8164_v15, %v5947_v14  ;;  %1587 = vmatpush.bf16.msra.mxu1 %v5692_v19  ;;  %v8056_v19 = vld [vmem:[%s9454_s25 + $0xc] sm:$0xf] }
  0x43   :  { %v5675_v21 = vld [vmem:[#allocation2 + $0x100] sm:$0xf]  ;;  %v8096_v22 = vld [vmem:[#allocation2 + $0x10c] sm:$0xf0]  ;;  %v5548_v31 = vor.u32 %v8064_v18, %v5547_v17  ;;  %1601 = vmatpush.bf16.msra.mxu2 %v5820_v20  ;;  %v5632_v17 = vor.u32 %v8082_v4, %v5629_v5  ;;  %v5529_v20 = vld [vmem:[%s9454_s25 + $0x24] sm:$0xf0] }
  0x44   :  { %v5803_v23 = vld [vmem:[#allocation2 + $0x200] sm:$0xf]  ;;  %v8128_v25 = vld [vmem:[#allocation2 + $0x20c] sm:$0xf0]  ;;  %v5676_v35 = vor.u32 %v8096_v22, %v5675_v21  ;;  %1615 = vmatpush.bf16.msra.mxu3 %v5948_v24  ;;  %v8078_v21 = vld [vmem:[#allocation2 + $0x84] sm:$0xf] }
  0x45   :  { %v5931_v26 = vld [vmem:[#allocation2 + $0x300] sm:$0xf]  ;;  %v8160_v27 = vld [vmem:[#allocation2 + $0x30c] sm:$0xf0]  ;;  %v5804_v36 = vor.u32 %v8128_v25, %v5803_v23  ;;  %1574 = vmatpush.bf16.msra.mxu0 %v5548_v31  ;;  %v5613_v22 = vld [vmem:[#allocation2 + $0x90] sm:$0xf0]  ;;  %v9118_v23 = vor.u32 %v8056_v19, %v5529_v20 }
  0x46   :  { %v6171_v28 = vld [vmem:[#allocation2 + $0x4e0] sm:$0xf]  ;;  %v8220_v29 = vld [vmem:[#allocation2 + $0x4ec] sm:$0xf0]  ;;  %v5932_v39 = vor.u32 %v8160_v27, %v5931_v26  ;;  %1588 = vmatpush.bf16.msra.mxu1 %v5676_v35  ;;  %v5597_v35 = vld [vmem:[#allocation2 + $0x70] sm:$0xf0] }
  0x47   :  { %v6299_v30 = vld [vmem:[#allocation2 + $0x5e0] sm:$0xf]  ;;  %v8252_v32 = vld [vmem:[#allocation2 + $0x5ec] sm:$0xf0]  ;;  %v6172_v40 = vor.u32 %v8220_v29, %v6171_v28  ;;  %1602 = vmatpush.bf16.msra.mxu2 %v5804_v36  ;;  %v6173_v19 = vld [vmem:[#allocation2 + $0x4f0] sm:$0xf0] }
  0x48   :  { %v6427_v33 = vld [vmem:[#allocation2 + $0x6e0] sm:$0xf]  ;;  %v8284_v34 = vld [vmem:[#allocation2 + $0x6ec] sm:$0xf0]  ;;  %v6300_v43 = vor.u32 %v8252_v32, %v6299_v30  ;;  %1616 = vmatpush.bf16.msra.mxu3 %v5932_v39  ;;  %v5616_v30 = vor.u32 %v8078_v21, %v5613_v22 }
  0x49   :  { %v6155_v41 = vld [vmem:[#allocation2 + $0x4c0] sm:$0xf]  ;;  %v8216_v42 = vld [vmem:[#allocation2 + $0x4cc] sm:$0xf0]  ;;  %v6428_v44 = vor.u32 %v8284_v34, %v6427_v33  ;;  %1623 = vmatpush.bf16.msrb.mxu0 %v6172_v40  ;;  %v8074_v34 = vld [vmem:[#allocation2 + $0x64] sm:$0xf] }
  0x4a   :  { %v6283_v45 = vld [vmem:[#allocation2 + $0x5c0] sm:$0xf]  ;;  %v8248_v46 = vld [vmem:[#allocation2 + $0x5cc] sm:$0xf0]  ;;  %v6156_v55 = vor.u32 %v8216_v42, %v6155_v41  ;;  %1637 = vmatpush.bf16.msrb.mxu1 %v6300_v43  ;;  %1603 = vmatmul.bf16.vlgmr.msra.gmra.mxu2 %v9099_v0  ;;  %v5600_v42 = vor.u32 %v8074_v34, %v5597_v35  ;;  %v5773_v34 = vld [vmem:[#allocation2 + $0x1d0] sm:$0xf0] }
  0x4b   :  { %v6411_v47 = vld [vmem:[#allocation2 + $0x6c0] sm:$0xf]  ;;  %v8280_v49 = vld [vmem:[#allocation2 + $0x6cc] sm:$0xf0]  ;;  %1651 = vmatpush.bf16.msrb.mxu2 %v6428_v44  ;;  %v6284_v59 = vor.u32 %v8248_v46, %v6283_v45  ;;  %1617 = vmatmul.bf16.vlgmr.msra.gmra.mxu3 %v9118_v23  ;;  %v8070_v46 = vld [vmem:[#allocation2 + $0x44] sm:$0xf] }
  0x4c   :  { %v5519_v52 = vld [vmem:[%s9454_s25] sm:$0xf]  ;;  %v6412_v60 = vor.u32 %v8280_v49, %v6411_v47  ;;  %v8212_v61 = vld [vmem:[#allocation2 + $0x4ac] sm:$0xf0]  ;;  %1665 = vmatpush.bf16.msrb.mxu3 %v5664_v48  ;;  %v5581_v47 = vld [vmem:[#allocation2 + $0x50] sm:$0xf0] }
  0x4d   :  { %v6139_v56 = vld [vmem:[#allocation2 + $0x4a0] sm:$0xf]  ;;  %v9094_v57 = vor.u32 %v8058_v53, %v5519_v52  ;;  %v8244_v63 = vld [vmem:[#allocation2 + $0x5ac] sm:$0xf0]  ;;  %1624 = vmatpush.bf16.msrb.mxu0 %v6156_v55  ;;  %v5584_v54 = vor.u32 %v8070_v46, %v5581_v47  ;;  %v8150_v35 = vld [vmem:[#allocation2 + $0x2c4] sm:$0xf] }
  0x4e   :  { %v6267_v62 = vld [vmem:[#allocation2 + $0x5a0] sm:$0xf]  ;;  %v8276_v3 = vld [vmem:[#allocation2 + $0x6ac] sm:$0xf0]  ;;  %v6140_v8 = vor.u32 %v8212_v61, %v6139_v56  ;;  %1638 = vmatpush.bf16.msrb.mxu1 %v6284_v59  ;;  %v8066_v59 = vld [vmem:[#allocation2 + $0x24] sm:$0xf] }
  0x4f   :  { %v6395_v2 = vld [vmem:[#allocation2 + $0x6a0] sm:$0xf]  ;;  %1575 = vmatmul.bf16.vlgmr.msra.gmra.mxu0 %v9094_v57  ;;  %v8208_v10 = vld [vmem:[#allocation2 + $0x48c] sm:$0xf0]  ;;  %1652 = vmatpush.bf16.msrb.mxu2 %v6412_v60  ;;  %v6268_v12 = vor.u32 %v8244_v63, %v6267_v62  ;;  %v5565_v60 = vld [vmem:[#allocation2 + $0x30] sm:$0xf0] }
  0x50   :  { %v5521_v7 = vld [vmem:[%s9454_s25 + $0x1c] sm:$0xf0]  ;;  %v6396_v13 = vor.u32 %v8276_v3, %v6395_v2  ;;  %v8240_v15 = vld [vmem:[#allocation2 + $0x58c] sm:$0xf0]  ;;  %1666 = vmatpush.bf16.msrb.mxu3 %v5648_v1 }
  0x51   :  { %v6123_v9 = vld [vmem:[#allocation2 + $0x480] sm:$0xf]  ;;  %v9109_v11 = vor.u32 %v8055_v6, %v5521_v7  ;;  %v8272_v18 = vld [vmem:[#allocation2 + $0x68c] sm:$0xf0]  ;;  %1625 = vmatpush.bf16.msrb.mxu0 %v6140_v8  ;;  %v8062_v7 = vld [vmem:[#allocation2 + $0x4] sm:$0xf]  ;;  %v5568_v8 = vor.u32 %v8066_v59, %v5565_v60 }
  0x52   :  { %v6251_v14 = vld [vmem:[#allocation2 + $0x580] sm:$0xf]  ;;  %v6124_v24 = vor.u32 %v8208_v10, %v6123_v9  ;;  %1639 = vmatpush.bf16.msrb.mxu1 %v6268_v12  ;;  %v8204_v28 = vld [vmem:[#allocation2 + $0x46c] sm:$0xf0]  ;;  %v5549_v9 = vld [vmem:[#allocation2 + $0x10] sm:$0xf0] }
  0x53   :  { %v6379_v16 = vld [vmem:[#allocation2 + $0x680] sm:$0xf]  ;;  %1589 = vmatmul.bf16.vlgmr.msra.gmra.mxu1 %v9109_v11  ;;  %1653 = vmatpush.bf16.msrb.mxu2 %v6396_v13  ;;  %v6252_v25 = vor.u32 %v8240_v15, %v6251_v14  ;;  %v8236_v31 = vld [vmem:[#allocation2 + $0x56c] sm:$0xf0]  ;;  %v8122_v10 = vld [vmem:[#allocation2 + $0x1e4] sm:$0xf] }
  0x54   :  { %v6380_v26 = vor.u32 %v8272_v18, %v6379_v16  ;;  %v6107_v27 = vld [vmem:[#allocation2 + $0x460] sm:$0xf]  ;;  %1667 = vmatpush.bf16.msrb.mxu3 %v5632_v17  ;;  %v8268_v33 = vld [vmem:[#allocation2 + $0x66c] sm:$0xf0]  ;;  %v5789_v12 = vld [vmem:[#allocation2 + $0x1f0] sm:$0xf0] }
  0x55   :  { %v6235_v29 = vld [vmem:[#allocation2 + $0x560] sm:$0xf]  ;;  %1626 = vmatpush.bf16.msrb.mxu0 %v6124_v24  ;;  %v6108_v36 = vor.u32 %v8204_v28, %v6107_v27  ;;  %v8200_v40 = vld [vmem:[#allocation2 + $0x44c] sm:$0xf0]  ;;  %v8154_v13 = vld [vmem:[#allocation2 + $0x2e4] sm:$0xf]  ;;  %v5792_v27 = vor.u32 %v8122_v10, %v5789_v12 }
  0x56   :  { %v6363_v32 = vld [vmem:[#allocation2 + $0x660] sm:$0xf]  ;;  %1640 = vmatpush.bf16.msrb.mxu1 %v6252_v25  ;;  %v6236_v37 = vor.u32 %v8236_v31, %v6235_v29  ;;  %v8232_v43 = vld [vmem:[#allocation2 + $0x54c] sm:$0xf0]  ;;  %v5917_v14 = vld [vmem:[#allocation2 + $0x2f0] sm:$0xf0] }
  0x57   :  { %1654 = vmatpush.bf16.msrb.mxu2 %v6380_v26  ;;  %v6364_v38 = vor.u32 %v8268_v33, %v6363_v32  ;;  %v6091_v39 = vld [vmem:[#allocation2 + $0x440] sm:$0xf]  ;;  %v8264_v45 = vld [vmem:[#allocation2 + $0x64c] sm:$0xf0]  ;;  %v8186_v15 = vld [vmem:[#allocation2 + $0x3e4] sm:$0xf]  ;;  %v5552_v26 = vor.u32 %v8062_v7, %v5549_v9  ;;  %v5920_v31 = vor.u32 %v8154_v13, %v5917_v14 }
  0x58   :  { %v6219_v41 = vld [vmem:[#allocation2 + $0x540] sm:$0xf]  ;;  %1668 = vmatpush.bf16.msrb.mxu3 %v5616_v30  ;;  %v6092_v48 = vor.u32 %v8200_v40, %v6091_v39  ;;  %v8196_v52 = vld [vmem:[#allocation2 + $0x42c] sm:$0xf0]  ;;  %v6045_v17 = vld [vmem:[#allocation2 + $0x3f0] sm:$0xf0] }
  0x59   :  { %v6347_v44 = vld [vmem:[#allocation2 + $0x640] sm:$0xf]  ;;  %1627 = vmatpush.bf16.msrb.mxu0 %v6108_v36  ;;  %v6220_v49 = vor.u32 %v8232_v43, %v6219_v41  ;;  %v8228_v55 = vld [vmem:[#allocation2 + $0x52c] sm:$0xf0]  ;;  %v8218_v18 = vld [vmem:[#allocation2 + $0x4e4] sm:$0xf]  ;;  %v6048_v32 = vor.u32 %v8186_v15, %v6045_v17 }
  0x5a   :  { %1641 = vmatpush.bf16.msrb.mxu1 %v6236_v37  ;;  %v6348_v50 = vor.u32 %v8264_v45, %v6347_v44  ;;  %v6075_v51 = vld [vmem:[#allocation2 + $0x420] sm:$0xf]  ;;  %v8260_v58 = vld [vmem:[#allocation2 + $0x62c] sm:$0xf0]  ;;  %v8060_v24 = vld [vmem:[%s9454_s25 + $0x28] sm:$0xf0]  ;;  %v6176_v36 = vor.u32 %v8218_v18, %v6173_v19 }
  0x5b   :  { %1655 = vmatpush.bf16.msrb.mxu2 %v6364_v38  ;;  %v6203_v53 = vld [vmem:[#allocation2 + $0x520] sm:$0xf]  ;;  %v6076_v62 = vor.u32 %v8196_v52, %v6075_v51  ;;  %v8192_v63 = vld [vmem:[#allocation2 + $0x40c] sm:$0xf0]  ;;  %v5543_v25 = vld [vmem:[%s9454_s25 + $0x18] sm:$0xf] }
  0x5c   :  { %1669 = vmatpush.bf16.msrb.mxu3 %v5600_v42  ;;  %v6331_v56 = vld [vmem:[#allocation2 + $0x620] sm:$0xf]  ;;  %v8224_v2 = vld [vmem:[#allocation2 + $0x50c] sm:$0xf0]  ;;  %v6204_v3 = vor.u32 %v8228_v55, %v6203_v53  ;;  %v8061_v28 = vld [vmem:[%s9454_s25 + $0x30] sm:$0xf0] }
  0x5d   :  { %v6059_v61 = vld [vmem:[#allocation2 + $0x400] sm:$0xf]  ;;  %1628 = vmatpush.bf16.msrb.mxu0 %v6092_v48  ;;  %v6332_v4 = vor.u32 %v8260_v58, %v6331_v56  ;;  %v8256_v6 = vld [vmem:[#allocation2 + $0x60c] sm:$0xf0]  ;;  %v8057_v29 = vld [vmem:[%s9454_s25 + $0x14] sm:$0xf]  ;;  %v9141_v41 = vor.u32 %v8061_v28, %v5543_v25 }
  0x5e   :  { %v6187_v1 = vld [vmem:[#allocation2 + $0x500] sm:$0xf]  ;;  %1642 = vmatpush.bf16.msrb.mxu1 %v6220_v49  ;;  %v6060_v16 = vor.u32 %v8192_v63, %v6059_v61  ;;  %v5535_v22 = vld [vmem:[%s9454_s25 + $0x10] sm:$0xf]  ;;  %v8118_v33 = vld [vmem:[#allocation2 + $0x1c4] sm:$0xf] }
  0x5f   :  { %1656 = vmatpush.bf16.msrb.mxu2 %v6348_v50  ;;  %v6315_v5 = vld [vmem:[#allocation2 + $0x600] sm:$0xf]  ;;  %v6188_v20 = vor.u32 %v8224_v2, %v6187_v1  ;;  %v5537_v30 = vld [vmem:[%s9454_s25 + $0x2c] sm:$0xf0]  ;;  %v9139_v37 = vor.u32 %v8060_v24, %v5535_v22  ;;  %v5901_v38 = vld [vmem:[#allocation2 + $0x2d0] sm:$0xf0]  ;;  %v5776_v45 = vor.u32 %v8118_v33, %v5773_v34 }
  0x60   :  { %1670 = vmatpush.bf16.msrb.mxu3 %v5584_v54  ;;  %v6316_v21 = vor.u32 %v8256_v6, %v6315_v5  ;;  %v8182_v39 = vld [vmem:[#allocation2 + $0x3c4] sm:$0xf]  ;;  %v6029_v40 = vld [vmem:[#allocation2 + $0x3d0] sm:$0xf0]  ;;  %v9143_v42 = vor.u32 %v8057_v29, %v5537_v30  ;;  %v5904_v46 = vor.u32 %v8150_v35, %v5901_v38 }
  0x61   :  { %1629 = vmatpush.bf16.msrb.mxu0 %v6076_v62  ;;  %v8214_v43 = vld [vmem:[#allocation2 + $0x4c4] sm:$0xf]  ;;  %v6157_v44 = vld [vmem:[#allocation2 + $0x4d0] sm:$0xf0]  ;;  %v6032_v47 = vor.u32 %v8182_v39, %v6029_v40 }
  0x62   :  { %1643 = vmatpush.bf16.msrb.mxu1 %v6204_v3  ;;  %v8114_v48 = vld [vmem:[#allocation2 + $0x1a4] sm:$0xf]  ;;  %v5757_v49 = vld [vmem:[#allocation2 + $0x1b0] sm:$0xf0]  ;;  %v6160_v51 = vor.u32 %v8214_v43, %v6157_v44 }
  0x63   :  { %1657 = vmatpush.bf16.msrb.mxu2 %v6332_v4  ;;  %v8146_v50 = vld [vmem:[#allocation2 + $0x2a4] sm:$0xf]  ;;  %v5885_v52 = vld [vmem:[#allocation2 + $0x2b0] sm:$0xf0]  ;;  %v5760_v58 = vor.u32 %v8114_v48, %v5757_v49 }
  0x64   :  { %1671 = vmatpush.bf16.msrb.mxu3 %v5568_v8  ;;  %v8178_v53 = vld [vmem:[#allocation2 + $0x3a4] sm:$0xf]  ;;  %v6013_v54 = vld [vmem:[#allocation2 + $0x3b0] sm:$0xf0]  ;;  %v5888_v59 = vor.u32 %v8146_v50, %v5885_v52 }
  0x65   :  { %1630 = vmatpush.bf16.msrb.mxu0 %v6060_v16  ;;  %v8210_v55 = vld [vmem:[#allocation2 + $0x4a4] sm:$0xf]  ;;  %v6141_v56 = vld [vmem:[#allocation2 + $0x4b0] sm:$0xf0]  ;;  %v6016_v60 = vor.u32 %v8178_v53, %v6013_v54 }
  0x66   :  { %1644 = vmatpush.bf16.msrb.mxu1 %v6188_v20  ;;  %v8110_v61 = vld [vmem:[#allocation2 + $0x184] sm:$0xf]  ;;  %v5741_v62 = vld [vmem:[#allocation2 + $0x190] sm:$0xf0]  ;;  %v6144_v1 = vor.u32 %v8210_v55, %v6141_v56 }
  0x67   :  { %1658 = vmatpush.bf16.msrb.mxu2 %v6316_v21  ;;  %v8142_v63 = vld [vmem:[#allocation2 + $0x284] sm:$0xf]  ;;  %v5869_v2 = vld [vmem:[#allocation2 + $0x290] sm:$0xf0]  ;;  %v5744_v7 = vor.u32 %v8110_v61, %v5741_v62 }
  0x68   :  { %1672 = vmatpush.bf16.msrb.mxu3 %v5552_v26  ;;  %1631 = vmatmul.bf16.vlgmr.msrb.gmra.mxu0 %v9139_v37  ;;  %v8174_v3 = vld [vmem:[#allocation2 + $0x384] sm:$0xf]  ;;  %v5997_v4 = vld [vmem:[#allocation2 + $0x390] sm:$0xf0]  ;;  %v5872_v8 = vor.u32 %v8142_v63, %v5869_v2 }
  0x69   :  { %1679 = vmatpush.bf16.msra.mxu0 %v5792_v27  ;;  %1645 = vmatmul.bf16.vlgmr.msrb.gmra.mxu1 %v9143_v42  ;;  %v8206_v5 = vld [vmem:[#allocation2 + $0x484] sm:$0xf]  ;;  %v6125_v6 = vld [vmem:[#allocation2 + $0x490] sm:$0xf0]  ;;  %v6000_v9 = vor.u32 %v8174_v3, %v5997_v4  ;;  %v5667_v3 = vld [vmem:[#allocation2 + $0xe8] sm:$0xf] }
  0x6a   :  { %1693 = vmatpush.bf16.msra.mxu1 %v5920_v31  ;;  %1659 = vmatmul.bf16.vlgmr.msrb.gmra.mxu2 %v9141_v41  ;;  %v8106_v10 = vld [vmem:[#allocation2 + $0x164] sm:$0xf]  ;;  %v5725_v12 = vld [vmem:[#allocation2 + $0x170] sm:$0xf0]  ;;  %v6128_v14 = vor.u32 %v8206_v5, %v6125_v6  ;;  %v8093_v4 = vld [vmem:[#allocation2 + $0xf4] sm:$0xf0] }
  0x6b   :  { %1707 = vmatpush.bf16.msra.mxu2 %v6048_v32  ;;  %1673 = vmatmul.bf16.vlgmr.msrb.gmra.mxu3 %v9094_v57  ;;  %v8138_v13 = vld [vmem:[#allocation2 + $0x264] sm:$0xf]  ;;  %v5853_v15 = vld [vmem:[#allocation2 + $0x270] sm:$0xf0]  ;;  %v5728_v20 = vor.u32 %v8106_v10, %v5725_v12 }
  0x6c   :  { %1721 = vmatpush.bf16.msra.mxu3 %v6176_v36  ;;  %v8170_v16 = vld [vmem:[#allocation2 + $0x364] sm:$0xf]  ;;  %v5981_v17 = vld [vmem:[#allocation2 + $0x370] sm:$0xf0]  ;;  %v5856_v21 = vor.u32 %v8138_v13, %v5853_v15  ;;  %v5668_v13 = vor.u32 %v8093_v4, %v5667_v3 }
  0x6d   :  { %1680 = vmatpush.bf16.msra.mxu0 %v5776_v45  ;;  %v8202_v18 = vld [vmem:[#allocation2 + $0x464] sm:$0xf]  ;;  %v6109_v19 = vld [vmem:[#allocation2 + $0x470] sm:$0xf0]  ;;  %v5984_v22 = vor.u32 %v8170_v16, %v5981_v17 }
  0x6e   :  { %1694 = vmatpush.bf16.msra.mxu1 %v5904_v46  ;;  %v8102_v24 = vld [vmem:[#allocation2 + $0x144] sm:$0xf]  ;;  %v5709_v25 = vld [vmem:[#allocation2 + $0x150] sm:$0xf0]  ;;  %v6112_v27 = vor.u32 %v8202_v18, %v6109_v19  ;;  %v5651_v19 = vld [vmem:[#allocation2 + $0xc8] sm:$0xf] }
  0x6f   :  { %1708 = vmatpush.bf16.msra.mxu2 %v6032_v47  ;;  %v8134_v26 = vld [vmem:[#allocation2 + $0x244] sm:$0xf]  ;;  %v5837_v28 = vld [vmem:[#allocation2 + $0x250] sm:$0xf0]  ;;  %v5712_v33 = vor.u32 %v8102_v24, %v5709_v25 }
  0x70   :  { %1722 = vmatpush.bf16.msra.mxu3 %v6160_v51  ;;  %v8166_v29 = vld [vmem:[#allocation2 + $0x344] sm:$0xf]  ;;  %v5965_v30 = vld [vmem:[#allocation2 + $0x350] sm:$0xf0]  ;;  %v5840_v34 = vor.u32 %v8134_v26, %v5837_v28 }
  0x71   :  { %1681 = vmatpush.bf16.msra.mxu0 %v5760_v58  ;;  %v8198_v31 = vld [vmem:[#allocation2 + $0x444] sm:$0xf]  ;;  %v6093_v32 = vld [vmem:[#allocation2 + $0x450] sm:$0xf0]  ;;  %v5968_v35 = vor.u32 %v8166_v29, %v5965_v30 }
  0x72   :  { %1695 = vmatpush.bf16.msra.mxu1 %v5888_v59  ;;  %v8098_v36 = vld [vmem:[#allocation2 + $0x124] sm:$0xf]  ;;  %v5693_v38 = vld [vmem:[#allocation2 + $0x130] sm:$0xf0]  ;;  %v6096_v40 = vor.u32 %v8198_v31, %v6093_v32  ;;  %v5635_v32 = vld [vmem:[#allocation2 + $0xa8] sm:$0xf] }
  0x73   :  { %1709 = vmatpush.bf16.msra.mxu2 %v6016_v60  ;;  %v8130_v39 = vld [vmem:[#allocation2 + $0x224] sm:$0xf]  ;;  %v5821_v43 = vld [vmem:[#allocation2 + $0x230] sm:$0xf0]  ;;  %v5696_v48 = vor.u32 %v8098_v36, %v5693_v38 }
  0x74   :  { %1723 = vmatpush.bf16.msra.mxu3 %v6144_v1  ;;  %v8162_v44 = vld [vmem:[#allocation2 + $0x324] sm:$0xf]  ;;  %v5949_v45 = vld [vmem:[#allocation2 + $0x330] sm:$0xf0]  ;;  %v5824_v51 = vor.u32 %v8130_v39, %v5821_v43 }
  0x75   :  { %1682 = vmatpush.bf16.msra.mxu0 %v5744_v7  ;;  %v8194_v46 = vld [vmem:[#allocation2 + $0x424] sm:$0xf]  ;;  %v6077_v47 = vld [vmem:[#allocation2 + $0x430] sm:$0xf0]  ;;  %v5952_v52 = vor.u32 %v8162_v44, %v5949_v45  ;;  %v5795_v7 = vld [vmem:[#allocation2 + $0x1e8] sm:$0xf] }
  0x76   :  { %1696 = vmatpush.bf16.msra.mxu1 %v5872_v8  ;;  %v8094_v49 = vld [vmem:[#allocation2 + $0x104] sm:$0xf]  ;;  %v5677_v50 = vld [vmem:[#allocation2 + $0x110] sm:$0xf0]  ;;  %v6080_v56 = vor.u32 %v8194_v46, %v6077_v47  ;;  %v8125_v8 = vld [vmem:[#allocation2 + $0x1f4] sm:$0xf0] }
  0x77   :  { %1710 = vmatpush.bf16.msra.mxu2 %v6000_v9  ;;  %v8126_v53 = vld [vmem:[#allocation2 + $0x204] sm:$0xf]  ;;  %v5805_v54 = vld [vmem:[#allocation2 + $0x210] sm:$0xf0]  ;;  %v5680_v1 = vor.u32 %v8094_v49, %v5677_v50  ;;  %v5796_v17 = vor.u32 %v8125_v8, %v5795_v7  ;;  %v5619_v47 = vld [vmem:[#allocation2 + $0x88] sm:$0xf] }
  0x78   :  { %1724 = vmatpush.bf16.msra.mxu3 %v6128_v14  ;;  %v8158_v55 = vld [vmem:[#allocation2 + $0x304] sm:$0xf]  ;;  %v5933_v58 = vld [vmem:[#allocation2 + $0x310] sm:$0xf0]  ;;  %v5808_v5 = vor.u32 %v8126_v53, %v5805_v54  ;;  %v5747_v49 = vld [vmem:[#allocation2 + $0x188] sm:$0xf] }
  0x79   :  { %1683 = vmatpush.bf16.msra.mxu0 %v5728_v20  ;;  %v8190_v59 = vld [vmem:[#allocation2 + $0x404] sm:$0xf]  ;;  %v6061_v60 = vld [vmem:[#allocation2 + $0x410] sm:$0xf0]  ;;  %v5936_v6 = vor.u32 %v8158_v55, %v5933_v58  ;;  %v8089_v20 = vld [vmem:[#allocation2 + $0xd4] sm:$0xf0] }
  0x7a   :  { %1697 = vmatpush.bf16.msra.mxu1 %v5856_v21  ;;  %v8250_v61 = vld [vmem:[#allocation2 + $0x5e4] sm:$0xf]  ;;  %v6301_v62 = vld [vmem:[#allocation2 + $0x5f0] sm:$0xf0]  ;;  %v6064_v9 = vor.u32 %v8190_v59, %v6061_v60  ;;  %v5779_v21 = vld [vmem:[#allocation2 + $0x1c8] sm:$0xf]  ;;  %v5652_v26 = vor.u32 %v8089_v20, %v5651_v19 }
  0x7b   :  { %1711 = vmatpush.bf16.msra.mxu2 %v5984_v22  ;;  %v8282_v63 = vld [vmem:[#allocation2 + $0x6e4] sm:$0xf]  ;;  %v6429_v2 = vld [vmem:[#allocation2 + $0x6f0] sm:$0xf0]  ;;  %v6304_v10 = vor.u32 %v8250_v61, %v6301_v62  ;;  %v8121_v22 = vld [vmem:[#allocation2 + $0x1d4] sm:$0xf0] }
  0x7c   :  { %1725 = vmatpush.bf16.msra.mxu3 %v6112_v27  ;;  %v6432_v12 = vor.u32 %v8282_v63, %v6429_v2  ;;  %v8246_v14 = vld [vmem:[#allocation2 + $0x5c4] sm:$0xf]  ;;  %v6285_v15 = vld [vmem:[#allocation2 + $0x5d0] sm:$0xf0]  ;;  %v5780_v30 = vor.u32 %v8121_v22, %v5779_v21  ;;  %v8113_v50 = vld [vmem:[#allocation2 + $0x194] sm:$0xf0] }
  0x7d   :  { %1684 = vmatpush.bf16.msra.mxu0 %v5712_v33  ;;  %v8278_v16 = vld [vmem:[#allocation2 + $0x6c4] sm:$0xf]  ;;  %v6413_v18 = vld [vmem:[#allocation2 + $0x6d0] sm:$0xf0]  ;;  %v6288_v24 = vor.u32 %v8246_v14, %v6285_v15  ;;  %v8085_v33 = vld [vmem:[#allocation2 + $0xb4] sm:$0xf0]  ;;  %v5748_v58 = vor.u32 %v8113_v50, %v5747_v49 }
  0x7e   :  { %1698 = vmatpush.bf16.msra.mxu1 %v5840_v34  ;;  %v6416_v25 = vor.u32 %v8278_v16, %v6413_v18  ;;  %v8242_v27 = vld [vmem:[#allocation2 + $0x5a4] sm:$0xf]  ;;  %v6269_v28 = vld [vmem:[#allocation2 + $0x5b0] sm:$0xf0]  ;;  %v5763_v34 = vld [vmem:[#allocation2 + $0x1a8] sm:$0xf]  ;;  %v5636_v39 = vor.u32 %v8085_v33, %v5635_v32 }
  0x7f   :  { %1712 = vmatpush.bf16.msra.mxu2 %v5968_v35  ;;  %v8274_v29 = vld [vmem:[#allocation2 + $0x6a4] sm:$0xf]  ;;  %v6397_v31 = vld [vmem:[#allocation2 + $0x6b0] sm:$0xf0]  ;;  %v8117_v35 = vld [vmem:[#allocation2 + $0x1b4] sm:$0xf0]  ;;  %v6272_v36 = vor.u32 %v8242_v27, %v6269_v28 }
  0x80   :  { %1726 = vmatpush.bf16.msra.mxu3 %v6096_v40  ;;  %v6400_v38 = vor.u32 %v8274_v29, %v6397_v31  ;;  %v8238_v40 = vld [vmem:[#allocation2 + $0x584] sm:$0xf]  ;;  %v6253_v43 = vld [vmem:[#allocation2 + $0x590] sm:$0xf0]  ;;  %v5764_v45 = vor.u32 %v8117_v35, %v5763_v34  ;;  %v5603_v60 = vld [vmem:[#allocation2 + $0x68] sm:$0xf] }
  0x81   :  { %1685 = vmatpush.bf16.msra.mxu0 %v5696_v48  ;;  %v8270_v44 = vld [vmem:[#allocation2 + $0x684] sm:$0xf]  ;;  %v6381_v46 = vld [vmem:[#allocation2 + $0x690] sm:$0xf0]  ;;  %v8081_v48 = vld [vmem:[#allocation2 + $0x94] sm:$0xf0] }
  0x82   :  { %1699 = vmatpush.bf16.msra.mxu1 %v5824_v51  ;;  %v6256_v51 = vor.u32 %v8238_v40, %v6253_v43  ;;  %v5620_v53 = vor.u32 %v8081_v48, %v5619_v47  ;;  %v8234_v54 = vld [vmem:[#allocation2 + $0x564] sm:$0xf]  ;;  %v6237_v55 = vld [vmem:[#allocation2 + $0x570] sm:$0xf0]  ;;  %v8077_v61 = vld [vmem:[#allocation2 + $0x74] sm:$0xf0] }
  0x83   :  { %1713 = vmatpush.bf16.msra.mxu2 %v5952_v52  ;;  %v6384_v52 = vor.u32 %v8270_v44, %v6381_v46  ;;  %v6365_v59 = vld [vmem:[#allocation2 + $0x670] sm:$0xf0]  ;;  %v5731_v62 = vld [vmem:[#allocation2 + $0x168] sm:$0xf]  ;;  %v8109_v63 = vld [vmem:[#allocation2 + $0x174] sm:$0xf0]  ;;  %v5604_v3 = vor.u32 %v8077_v61, %v5603_v60 }
  0x84   :  { %1727 = vmatpush.bf16.msra.mxu3 %v6080_v56  ;;  %v8266_v56 = vld [vmem:[#allocation2 + $0x664] sm:$0xf]  ;;  %v5732_v7 = vor.u32 %v8109_v63, %v5731_v62  ;;  %v6349_v8 = vld [vmem:[#allocation2 + $0x650] sm:$0xf0]  ;;  %v5571_v22 = vld [vmem:[#allocation2 + $0x28] sm:$0xf] }
  0x85   :  { %1686 = vmatpush.bf16.msra.mxu0 %v5680_v1  ;;  %v6240_v1 = vor.u32 %v8234_v54, %v6237_v55  ;;  %v6368_v2 = vor.u32 %v8266_v56, %v6365_v59  ;;  %v8230_v4 = vld [vmem:[#allocation2 + $0x544] sm:$0xf]  ;;  %v6205_v18 = vld [vmem:[#allocation2 + $0x530] sm:$0xf0]  ;;  %v5555_v34 = vld [vmem:[#allocation2 + $0x8] sm:$0xf] }
  0x86   :  { %1700 = vmatpush.bf16.msra.mxu1 %v5808_v5  ;;  %v6221_v5 = vld [vmem:[#allocation2 + $0x550] sm:$0xf0]  ;;  %v8258_v19 = vld [vmem:[#allocation2 + $0x624] sm:$0xf]  ;;  %v5923_v40 = vld [vmem:[#allocation2 + $0x2e8] sm:$0xf] }
  0x87   :  { %1714 = vmatpush.bf16.msra.mxu2 %v5936_v6  ;;  %v8262_v6 = vld [vmem:[#allocation2 + $0x644] sm:$0xf]  ;;  %v6224_v14 = vor.u32 %v8230_v4, %v6221_v5  ;;  %v6333_v21 = vld [vmem:[#allocation2 + $0x630] sm:$0xf0]  ;;  %v8157_v43 = vld [vmem:[#allocation2 + $0x2f4] sm:$0xf0] }
  0x88   :  { %1728 = vmatpush.bf16.msra.mxu3 %v6064_v9  ;;  %1687 = vmatmul.bf16.vlgmr.msra.gmra.mxu0 %v9109_v11  ;;  %v5587_v9 = vld [vmem:[#allocation2 + $0x48] sm:$0xf]  ;;  %v6352_v15 = vor.u32 %v8262_v6, %v6349_v8  ;;  %v8222_v28 = vld [vmem:[#allocation2 + $0x504] sm:$0xf]  ;;  %v6189_v29 = vld [vmem:[#allocation2 + $0x510] sm:$0xf0]  ;;  %v5924_v54 = vor.u32 %v8157_v43, %v5923_v40 }
  0x89   :  { %1735 = vmatpush.bf16.msrb.mxu0 %v6304_v10  ;;  %1701 = vmatmul.bf16.vlgmr.msra.gmra.mxu1 %v9099_v0  ;;  %v8073_v10 = vld [vmem:[#allocation2 + $0x54] sm:$0xf0]  ;;  %v8254_v32 = vld [vmem:[#allocation2 + $0x604] sm:$0xf]  ;;  %v6317_v33 = vld [vmem:[#allocation2 + $0x610] sm:$0xf0] }
  0x8a   :  { %1749 = vmatpush.bf16.msrb.mxu1 %v6432_v12  ;;  %1715 = vmatmul.bf16.vlgmr.msra.gmra.mxu2 %v9118_v23  ;;  %v5715_v12 = vld [vmem:[#allocation2 + $0x148] sm:$0xf]  ;;  %v5588_v16 = vor.u32 %v8073_v10, %v5587_v9  ;;  %v8189_v46 = vld [vmem:[#allocation2 + $0x3f4] sm:$0xf0]  ;;  %v6320_v49 = vor.u32 %v8254_v32, %v6317_v33 }
  0x8b   :  { %1763 = vmatpush.bf16.msrb.mxu2 %v5668_v13  ;;  %1729 = vmatmul.bf16.vlgmr.msra.gmra.mxu3 %v9139_v37  ;;  %v8105_v13 = vld [vmem:[#allocation2 + $0x154] sm:$0xf0]  ;;  %v6051_v44 = vld [vmem:[#allocation2 + $0x3e8] sm:$0xf] }
  0x8c   :  { %1777 = vmatpush.bf16.msrb.mxu3 %v5796_v17  ;;  %v8226_v17 = vld [vmem:[#allocation2 + $0x524] sm:$0xf]  ;;  %v5716_v20 = vor.u32 %v8105_v13, %v5715_v12  ;;  %v6179_v47 = vld [vmem:[#allocation2 + $0x4e8] sm:$0xf]  ;;  %v8221_v48 = vld [vmem:[#allocation2 + $0x4f4] sm:$0xf0]  ;;  %v6052_v55 = vor.u32 %v8189_v46, %v6051_v44 }
  0x8d   :  { %1736 = vmatpush.bf16.msrb.mxu0 %v6288_v24  ;;  %v8069_v24 = vld [vmem:[#allocation2 + $0x34] sm:$0xf0]  ;;  %v6208_v27 = vor.u32 %v8226_v17, %v6205_v18  ;;  %v6180_v56 = vor.u32 %v8221_v48, %v6179_v47  ;;  %v6035_v60 = vld [vmem:[#allocation2 + $0x3c8] sm:$0xf] }
  0x8e   :  { %1750 = vmatpush.bf16.msrb.mxu1 %v6416_v25  ;;  %v5699_v25 = vld [vmem:[#allocation2 + $0x128] sm:$0xf]  ;;  %v5572_v31 = vor.u32 %v8069_v24, %v5571_v22  ;;  %v8153_v59 = vld [vmem:[#allocation2 + $0x2d4] sm:$0xf0] }
  0x8f   :  { %1764 = vmatpush.bf16.msrb.mxu2 %v5652_v26  ;;  %v8101_v26 = vld [vmem:[#allocation2 + $0x134] sm:$0xf0]  ;;  %v6163_v63 = vld [vmem:[#allocation2 + $0x4c8] sm:$0xf] }
  0x90   :  { %1778 = vmatpush.bf16.msrb.mxu3 %v5780_v30  ;;  %v6336_v30 = vor.u32 %v8258_v19, %v6333_v21  ;;  %v5700_v35 = vor.u32 %v8101_v26, %v5699_v25  ;;  %v8185_v62 = vld [vmem:[#allocation2 + $0x3d4] sm:$0xf0]  ;;  %v6019_v9 = vld [vmem:[#allocation2 + $0x3a8] sm:$0xf] }
  0x91   :  { %1737 = vmatpush.bf16.msrb.mxu0 %v6272_v36  ;;  %v8065_v36 = vld [vmem:[#allocation2 + $0x14] sm:$0xf0]  ;;  %v6036_v5 = vor.u32 %v8185_v62, %v6035_v60  ;;  %v6147_v13 = vld [vmem:[#allocation2 + $0x4a8] sm:$0xf] }
  0x92   :  { %1751 = vmatpush.bf16.msrb.mxu1 %v6400_v38  ;;  %v5683_v38 = vld [vmem:[#allocation2 + $0x108] sm:$0xf]  ;;  %v5556_v50 = vor.u32 %v8065_v36, %v5555_v34  ;;  %v8149_v8 = vld [vmem:[#allocation2 + $0x2b4] sm:$0xf0] }
  0x93   :  { %1765 = vmatpush.bf16.msrb.mxu2 %v5636_v39  ;;  %v8097_v39 = vld [vmem:[#allocation2 + $0x114] sm:$0xf0]  ;;  %v6003_v22 = vld [vmem:[#allocation2 + $0x388] sm:$0xf] }
  0x94   :  { %1779 = vmatpush.bf16.msrb.mxu3 %v5764_v45  ;;  %v6192_v45 = vor.u32 %v8222_v28, %v6189_v29  ;;  %v8181_v12 = vld [vmem:[#allocation2 + $0x3b4] sm:$0xf0]  ;;  %v6131_v26 = vld [vmem:[#allocation2 + $0x488] sm:$0xf] }
  0x95   :  { %1738 = vmatpush.bf16.msrb.mxu0 %v6256_v51  ;;  %v6307_v51 = vld [vmem:[#allocation2 + $0x5e8] sm:$0xf]  ;;  %v6020_v18 = vor.u32 %v8181_v12, %v6019_v9  ;;  %v8145_v21 = vld [vmem:[#allocation2 + $0x294] sm:$0xf0] }
  0x96   :  { %1752 = vmatpush.bf16.msrb.mxu1 %v6384_v52  ;;  %v8253_v52 = vld [vmem:[#allocation2 + $0x5f4] sm:$0xf0]  ;;  %v6259_v28 = vld [vmem:[#allocation2 + $0x588] sm:$0xf] }
  0x97   :  { %1766 = vmatpush.bf16.msrb.mxu2 %v5620_v53  ;;  %v5684_v53 = vor.u32 %v8097_v39, %v5683_v38  ;;  %v6308_v61 = vor.u32 %v8253_v52, %v6307_v51  ;;  %v8177_v25 = vld [vmem:[#allocation2 + $0x394] sm:$0xf0]  ;;  %v5859_v33 = vld [vmem:[#allocation2 + $0x268] sm:$0xf] }
  0x98   :  { %1780 = vmatpush.bf16.msrb.mxu3 %v5748_v58  ;;  %v5907_v58 = vld [vmem:[#allocation2 + $0x2c8] sm:$0xf]  ;;  %v8241_v29 = vld [vmem:[#allocation2 + $0x594] sm:$0xf0] }
  0x99   :  { %1739 = vmatpush.bf16.msrb.mxu0 %v6240_v1  ;;  %v8217_v1 = vld [vmem:[#allocation2 + $0x4d4] sm:$0xf0]  ;;  %v5908_v4 = vor.u32 %v8153_v59, %v5907_v58  ;;  %v6260_v36 = vor.u32 %v8241_v29, %v6259_v28  ;;  %v6115_v39 = vld [vmem:[#allocation2 + $0x468] sm:$0xf] }
  0x9a   :  { %1753 = vmatpush.bf16.msrb.mxu1 %v6368_v2  ;;  %v6291_v2 = vld [vmem:[#allocation2 + $0x5c8] sm:$0xf]  ;;  %v6164_v6 = vor.u32 %v8217_v1, %v6163_v63  ;;  %v8141_v34 = vld [vmem:[#allocation2 + $0x274] sm:$0xf0] }
  0x9b   :  { %1767 = vmatpush.bf16.msrb.mxu2 %v5604_v3  ;;  %v8249_v3 = vld [vmem:[#allocation2 + $0x5d4] sm:$0xf0]  ;;  %v6243_v43 = vld [vmem:[#allocation2 + $0x568] sm:$0xf] }
  0x9c   :  { %1781 = vmatpush.bf16.msrb.mxu3 %v5732_v7  ;;  %v5891_v7 = vld [vmem:[#allocation2 + $0x2a8] sm:$0xf]  ;;  %v6292_v10 = vor.u32 %v8249_v3, %v6291_v2  ;;  %v8173_v38 = vld [vmem:[#allocation2 + $0x374] sm:$0xf0] }
  0x9d   :  { %1740 = vmatpush.bf16.msrb.mxu0 %v6224_v14  ;;  %v8213_v14 = vld [vmem:[#allocation2 + $0x4b4] sm:$0xf0]  ;;  %v5892_v17 = vor.u32 %v8149_v8, %v5891_v7  ;;  %v5843_v48 = vld [vmem:[#allocation2 + $0x248] sm:$0xf] }
  0x9e   :  { %1754 = vmatpush.bf16.msrb.mxu1 %v6352_v15  ;;  %v6275_v15 = vld [vmem:[#allocation2 + $0x5a8] sm:$0xf]  ;;  %v6148_v19 = vor.u32 %v8213_v14, %v6147_v13  ;;  %v8205_v40 = vld [vmem:[#allocation2 + $0x474] sm:$0xf0] }
  0x9f   :  { %1768 = vmatpush.bf16.msrb.mxu2 %v5588_v16  ;;  %v8245_v16 = vld [vmem:[#allocation2 + $0x5b4] sm:$0xf0]  ;;  %v6116_v47 = vor.u32 %v8205_v40, %v6115_v39  ;;  %v5955_v63 = vld [vmem:[#allocation2 + $0x328] sm:$0xf]  ;;  %v8087_v39 = vld [vmem:[#allocation2 + $0xcc] sm:$0xf] }
  0xa0   :  { %1782 = vmatpush.bf16.msrb.mxu3 %v5716_v20  ;;  %v5875_v20 = vld [vmem:[#allocation2 + $0x288] sm:$0xf]  ;;  %v6276_v24 = vor.u32 %v8245_v16, %v6275_v15  ;;  %v8237_v44 = vld [vmem:[#allocation2 + $0x574] sm:$0xf0] }
  0xa1   :  { %1741 = vmatpush.bf16.msrb.mxu0 %v6208_v27  ;;  %v8209_v27 = vld [vmem:[#allocation2 + $0x494] sm:$0xf0]  ;;  %v6244_v51 = vor.u32 %v8237_v44, %v6243_v43  ;;  %v6083_v3 = vld [vmem:[#allocation2 + $0x428] sm:$0xf]  ;;  %v5653_v43 = vld [vmem:[#allocation2 + $0xd8] sm:$0xf0] }
  0xa2   :  { %1755 = vmatpush.bf16.msrb.mxu1 %v6336_v30  ;;  %v5876_v30 = vor.u32 %v8145_v21, %v5875_v20  ;;  %v6132_v32 = vor.u32 %v8209_v27, %v6131_v26  ;;  %v8169_v52 = vld [vmem:[#allocation2 + $0x354] sm:$0xf0]  ;;  %v5811_v8 = vld [vmem:[#allocation2 + $0x208] sm:$0xf]  ;;  %v8123_v26 = vld [vmem:[#allocation2 + $0x1ec] sm:$0xf] }
  0xa3   :  { %1769 = vmatpush.bf16.msrb.mxu2 %v5572_v31  ;;  %v6004_v31 = vor.u32 %v8177_v25, %v6003_v22  ;;  %v8133_v62 = vld [vmem:[#allocation2 + $0x234] sm:$0xf0]  ;;  %v5939_v13 = vld [vmem:[#allocation2 + $0x308] sm:$0xf]  ;;  %v8091_v22 = vld [vmem:[#allocation2 + $0xec] sm:$0xf] }
  0xa4   :  { %1783 = vmatpush.bf16.msrb.mxu3 %v5700_v35  ;;  %v5987_v35 = vld [vmem:[#allocation2 + $0x368] sm:$0xf]  ;;  %v8165_v2 = vld [vmem:[#allocation2 + $0x334] sm:$0xf0]  ;;  %v5669_v25 = vld [vmem:[#allocation2 + $0xf8] sm:$0xf0] }
  0xa5   :  { %1742 = vmatpush.bf16.msrb.mxu0 %v6192_v45  ;;  %v5860_v45 = vor.u32 %v8141_v34, %v5859_v33  ;;  %v5988_v46 = vor.u32 %v8173_v38, %v5987_v35  ;;  %v8129_v9 = vld [vmem:[#allocation2 + $0x214] sm:$0xf0]  ;;  %v6067_v15 = vld [vmem:[#allocation2 + $0x408] sm:$0xf]  ;;  %v5797_v27 = vld [vmem:[#allocation2 + $0x1f8] sm:$0xf0]  ;;  %v5672_v34 = vor.u32 %v8091_v22, %v5669_v25 }
  0xa6   :  { %1756 = vmatpush.bf16.msrb.mxu1 %v6320_v49  ;;  %v8137_v49 = vld [vmem:[#allocation2 + $0x254] sm:$0xf0]  ;;  %v6435_v20 = vld [vmem:[#allocation2 + $0x6e8] sm:$0xf]  ;;  %v5800_v35 = vor.u32 %v8123_v26, %v5797_v27  ;;  %v8119_v44 = vld [vmem:[#allocation2 + $0x1cc] sm:$0xf] }
  0xa7   :  { %1770 = vmatpush.bf16.msrb.mxu2 %v5556_v50  ;;  %v5971_v50 = vld [vmem:[#allocation2 + $0x348] sm:$0xf]  ;;  %v5844_v58 = vor.u32 %v8137_v49, %v5843_v48  ;;  %v8161_v14 = vld [vmem:[#allocation2 + $0x314] sm:$0xf0]  ;;  %v5656_v49 = vor.u32 %v8087_v39, %v5653_v43  ;;  %v5861_v22 = vld [vmem:[#allocation2 + $0x278] sm:$0xf0] }
  0xa8   :  { %1784 = vmatpush.bf16.msrb.mxu3 %v5684_v53  ;;  %1743 = vmatmul.bf16.vlgmr.msrb.gmra.mxu0 %v9143_v42  ;;  %v6099_v53 = vld [vmem:[#allocation2 + $0x448] sm:$0xf]  ;;  %v5972_v59 = vor.u32 %v8169_v52, %v5971_v50  ;;  %v8285_v21 = vld [vmem:[#allocation2 + $0x6f4] sm:$0xf0]  ;;  %v5940_v28 = vor.u32 %v8161_v14, %v5939_v13 }
  0xa9   :  { %1791 = vmatpush.bf16.msra.mxu0 %v5924_v54  ;;  %1757 = vmatmul.bf16.vlgmr.msrb.gmra.mxu1 %v9141_v41  ;;  %v8201_v54 = vld [vmem:[#allocation2 + $0x454] sm:$0xf0]  ;;  %v6436_v33 = vor.u32 %v8285_v21, %v6435_v20  ;;  %v6371_v14 = vld [vmem:[#allocation2 + $0x668] sm:$0xf]  ;;  %v5733_v20 = vld [vmem:[#allocation2 + $0x178] sm:$0xf0] }
  0xaa   :  { %1805 = vmatpush.bf16.msra.mxu1 %v6052_v55  ;;  %1771 = vmatmul.bf16.vlgmr.msrb.gmra.mxu2 %v9094_v57  ;;  %v6227_v55 = vld [vmem:[#allocation2 + $0x548] sm:$0xf]  ;;  %v6100_v60 = vor.u32 %v8201_v54, %v6099_v53  ;;  %v8281_v38 = vld [vmem:[#allocation2 + $0x6d4] sm:$0xf0]  ;;  %v8083_v53 = vld [vmem:[#allocation2 + $0xac] sm:$0xf] }
  0xab   :  { %1819 = vmatpush.bf16.msra.mxu2 %v6180_v56  ;;  %1785 = vmatmul.bf16.vlgmr.msrb.gmra.mxu3 %v9109_v11  ;;  %v8233_v56 = vld [vmem:[#allocation2 + $0x554] sm:$0xf0]  ;;  %v8139_v21 = vld [vmem:[#allocation2 + $0x26c] sm:$0xf]  ;;  %v6355_v27 = vld [vmem:[#allocation2 + $0x648] sm:$0xf] }
  0xac   :  { %1833 = vmatpush.bf16.msra.mxu3 %v6308_v61  ;;  %v5827_v61 = vld [vmem:[#allocation2 + $0x228] sm:$0xf]  ;;  %v6228_v1 = vor.u32 %v8233_v56, %v6227_v55  ;;  %v8277_v52 = vld [vmem:[#allocation2 + $0x6b4] sm:$0xf0]  ;;  %v5637_v55 = vld [vmem:[#allocation2 + $0xb8] sm:$0xf0] }
  0xad   :  { %1792 = vmatpush.bf16.msra.mxu0 %v5908_v4  ;;  %v8197_v4 = vld [vmem:[#allocation2 + $0x434] sm:$0xf0]  ;;  %v5828_v7 = vor.u32 %v8133_v62, %v5827_v61  ;;  %v8115_v56 = vld [vmem:[#allocation2 + $0x1ac] sm:$0xf]  ;;  %v5640_v62 = vor.u32 %v8083_v53, %v5637_v55 }
  0xae   :  { %1806 = vmatpush.bf16.msra.mxu1 %v6036_v5  ;;  %v6211_v5 = vld [vmem:[#allocation2 + $0x528] sm:$0xf]  ;;  %v6084_v12 = vor.u32 %v8197_v4, %v6083_v3  ;;  %v8079_v3 = vld [vmem:[#allocation2 + $0x8c] sm:$0xf]  ;;  %v8261_v43 = vld [vmem:[#allocation2 + $0x634] sm:$0xf0] }
  0xaf   :  { %1820 = vmatpush.bf16.msra.mxu2 %v6164_v6  ;;  %v8229_v6 = vld [vmem:[#allocation2 + $0x534] sm:$0xf0] }
  0xb0   :  { %1834 = vmatpush.bf16.msra.mxu3 %v6292_v10  ;;  %v5956_v10 = vor.u32 %v8165_v2, %v5955_v63  ;;  %v6212_v16 = vor.u32 %v8229_v6, %v6211_v5  ;;  %v8273_v2 = vld [vmem:[#allocation2 + $0x694] sm:$0xf0]  ;;  %v5621_v5 = vld [vmem:[#allocation2 + $0x98] sm:$0xf0]  ;;  %v8111_v6 = vld [vmem:[#allocation2 + $0x18c] sm:$0xf] }
  0xb1   :  { %1793 = vmatpush.bf16.msra.mxu0 %v5892_v17  ;;  %v8193_v17 = vld [vmem:[#allocation2 + $0x414] sm:$0xf0] }
  0xb2   :  { %1807 = vmatpush.bf16.msra.mxu1 %v6020_v18  ;;  %v6195_v18 = vld [vmem:[#allocation2 + $0x508] sm:$0xf]  ;;  %v6068_v29 = vor.u32 %v8193_v17, %v6067_v15  ;;  %v8269_v15 = vld [vmem:[#allocation2 + $0x674] sm:$0xf0] }
  0xb3   :  { %1821 = vmatpush.bf16.msra.mxu2 %v6148_v19  ;;  %v8225_v19 = vld [vmem:[#allocation2 + $0x514] sm:$0xf0] }
  0xb4   :  { %1835 = vmatpush.bf16.msra.mxu3 %v6276_v24  ;;  %v5812_v24 = vor.u32 %v8129_v9, %v5811_v8  ;;  %v8143_v8 = vld [vmem:[#allocation2 + $0x28c] sm:$0xf]  ;;  %v5877_v9 = vld [vmem:[#allocation2 + $0x298] sm:$0xf0]  ;;  %v8257_v53 = vld [vmem:[#allocation2 + $0x614] sm:$0xf0] }
  0xb5   :  { %1794 = vmatpush.bf16.msra.mxu0 %v5876_v30  ;;  %v8155_v30 = vld [vmem:[#allocation2 + $0x2ec] sm:$0xf]  ;;  %v5880_v17 = vor.u32 %v8143_v8, %v5877_v9 }
  0xb6   :  { %1808 = vmatpush.bf16.msra.mxu1 %v6004_v31  ;;  %v5925_v31 = vld [vmem:[#allocation2 + $0x2f8] sm:$0xf0] }
  0xb7   :  { %1822 = vmatpush.bf16.msra.mxu2 %v6132_v32  ;;  %v6196_v32 = vor.u32 %v8225_v19, %v6195_v18  ;;  %v5928_v40 = vor.u32 %v8155_v30, %v5925_v31  ;;  %v5605_v18 = vld [vmem:[#allocation2 + $0x78] sm:$0xf0]  ;;  %v8107_v19 = vld [vmem:[#allocation2 + $0x16c] sm:$0xf]  ;;  %v5864_v30 = vor.u32 %v8139_v21, %v5861_v22 }
  0xb8   :  { %1836 = vmatpush.bf16.msra.mxu3 %v6260_v36  ;;  %v6419_v36 = vld [vmem:[#allocation2 + $0x6c8] sm:$0xf]  ;;  %v5736_v26 = vor.u32 %v8107_v19, %v5733_v20  ;;  %v5589_v31 = vld [vmem:[#allocation2 + $0x58] sm:$0xf0]  ;;  %v8215_v19 = vld [vmem:[#allocation2 + $0x4cc] sm:$0xf] }
  0xb9   :  { %1795 = vmatpush.bf16.msra.mxu0 %v5860_v45  ;;  %v5781_v45 = vld [vmem:[#allocation2 + $0x1d8] sm:$0xf0]  ;;  %v6420_v48 = vor.u32 %v8281_v38, %v6419_v36  ;;  %v8247_v22 = vld [vmem:[#allocation2 + $0x5cc] sm:$0xf] }
  0xba   :  { %1809 = vmatpush.bf16.msra.mxu1 %v5988_v46  ;;  %v8151_v46 = vld [vmem:[#allocation2 + $0x2cc] sm:$0xf]  ;;  %v5784_v50 = vor.u32 %v8119_v44, %v5781_v45  ;;  %v6165_v21 = vld [vmem:[#allocation2 + $0x4d8] sm:$0xf0] }
  0xbb   :  { %1823 = vmatpush.bf16.msra.mxu2 %v6116_v47  ;;  %v5909_v47 = vld [vmem:[#allocation2 + $0x2d8] sm:$0xf0]  ;;  %v8067_v44 = vld [vmem:[#allocation2 + $0x2c] sm:$0xf] }
  0xbc   :  { %1837 = vmatpush.bf16.msra.mxu3 %v6244_v51  ;;  %v6403_v51 = vld [vmem:[#allocation2 + $0x6a8] sm:$0xf]  ;;  %v5912_v54 = vor.u32 %v8151_v46, %v5909_v47  ;;  %v5573_v46 = vld [vmem:[#allocation2 + $0x38] sm:$0xf0]  ;;  %v8099_v47 = vld [vmem:[#allocation2 + $0x12c] sm:$0xf] }
  0xbd   :  { %1796 = vmatpush.bf16.msra.mxu0 %v5844_v58  ;;  %v5765_v58 = vld [vmem:[#allocation2 + $0x1b8] sm:$0xf0]  ;;  %v6404_v61 = vor.u32 %v8277_v52, %v6403_v51  ;;  %v6323_v52 = vld [vmem:[#allocation2 + $0x608] sm:$0xf] }
  0xbe   :  { %1810 = vmatpush.bf16.msra.mxu1 %v5972_v59  ;;  %v8147_v59 = vld [vmem:[#allocation2 + $0x2ac] sm:$0xf]  ;;  %v5768_v63 = vor.u32 %v8115_v56, %v5765_v58  ;;  %v5557_v58 = vld [vmem:[#allocation2 + $0x18] sm:$0xf0] }
  0xbf   :  { %1824 = vmatpush.bf16.msra.mxu2 %v6100_v60  ;;  %v5893_v60 = vld [vmem:[#allocation2 + $0x2b8] sm:$0xf0]  ;;  %v8063_v56 = vld [vmem:[#allocation2 + $0xc] sm:$0xf] }
  0xc0   :  { %1838 = vmatpush.bf16.msra.mxu3 %v6228_v1  ;;  %v6387_v1 = vld [vmem:[#allocation2 + $0x688] sm:$0xf]  ;;  %v5896_v4 = vor.u32 %v8147_v59, %v5893_v60  ;;  %v8095_v59 = vld [vmem:[#allocation2 + $0x10c] sm:$0xf]  ;;  %v5560_v8 = vor.u32 %v8063_v56, %v5557_v58 }
  0xc1   :  { %1797 = vmatpush.bf16.msra.mxu0 %v5828_v7  ;;  %v5749_v7 = vld [vmem:[#allocation2 + $0x198] sm:$0xf0]  ;;  %v8203_v56 = vld [vmem:[#allocation2 + $0x46c] sm:$0xf] }
  0xc2   :  { %1811 = vmatpush.bf16.msra.mxu1 %v5956_v10  ;;  %v6388_v10 = vor.u32 %v8273_v2, %v6387_v1  ;;  %v5752_v13 = vor.u32 %v8111_v6, %v5749_v7  ;;  %v8187_v1 = vld [vmem:[#allocation2 + $0x3ec] sm:$0xf]  ;;  %v6053_v2 = vld [vmem:[#allocation2 + $0x3f8] sm:$0xf0] }
  0xc3   :  { %1825 = vmatpush.bf16.msra.mxu2 %v6084_v12  ;;  %v5624_v12 = vor.u32 %v8079_v3, %v5621_v5  ;;  %v8219_v3 = vld [vmem:[#allocation2 + $0x4ec] sm:$0xf]  ;;  %v6181_v5 = vld [vmem:[#allocation2 + $0x4f8] sm:$0xf0] }
  0xc4   :  { %1839 = vmatpush.bf16.msra.mxu3 %v6212_v16  ;;  %v8075_v16 = vld [vmem:[#allocation2 + $0x6c] sm:$0xf]  ;;  %v6309_v7 = vld [vmem:[#allocation2 + $0x5f8] sm:$0xf0] }
  0xc5   :  { %1798 = vmatpush.bf16.msra.mxu0 %v5812_v24  ;;  %v6372_v24 = vor.u32 %v8269_v15, %v6371_v14  ;;  %v5608_v25 = vor.u32 %v8075_v16, %v5605_v18  ;;  %v8251_v6 = vld [vmem:[#allocation2 + $0x5ec] sm:$0xf]  ;;  %v6056_v14 = vor.u32 %v8187_v1, %v6053_v2  ;;  %v6184_v15 = vor.u32 %v8219_v3, %v6181_v5  ;;  %v6037_v18 = vld [vmem:[#allocation2 + $0x3d8] sm:$0xf0] }
  0xc6   :  { %1812 = vmatpush.bf16.msra.mxu1 %v5940_v28  ;;  %v8265_v28 = vld [vmem:[#allocation2 + $0x654] sm:$0xf0]  ;;  %v6312_v16 = vor.u32 %v8251_v6, %v6309_v7  ;;  %v6373_v1 = vld [vmem:[#allocation2 + $0x678] sm:$0xf0]  ;;  %v8167_v6 = vld [vmem:[#allocation2 + $0x34c] sm:$0xf] }
  0xc7   :  { %1826 = vmatpush.bf16.msra.mxu2 %v6068_v29  ;;  %v8071_v29 = vld [vmem:[#allocation2 + $0x4c] sm:$0xf]  ;;  %v6356_v36 = vor.u32 %v8265_v28, %v6355_v27  ;;  %v6168_v28 = vor.u32 %v8215_v19, %v6165_v21  ;;  %v5973_v7 = vld [vmem:[#allocation2 + $0x358] sm:$0xf0] }
  0xc8   :  { %1840 = vmatpush.bf16.msra.mxu3 %v6196_v32  ;;  %1799 = vmatmul.bf16.vlgmr.msra.gmra.mxu0 %v9099_v0  ;;  %v8103_v32 = vld [vmem:[#allocation2 + $0x14c] sm:$0xf]  ;;  %v5592_v38 = vor.u32 %v8071_v29, %v5589_v31  ;;  %v6021_v31 = vld [vmem:[#allocation2 + $0x3b8] sm:$0xf0] }
  0xc9   :  { %1847 = vmatpush.bf16.msrb.mxu0 %v6436_v33  ;;  %1813 = vmatmul.bf16.vlgmr.msra.gmra.mxu1 %v9118_v23  ;;  %v5717_v33 = vld [vmem:[#allocation2 + $0x158] sm:$0xf0]  ;;  %v8163_v19 = vld [vmem:[#allocation2 + $0x32c] sm:$0xf] }
  0xca   :  { %1861 = vmatpush.bf16.msrb.mxu1 %v5672_v34  ;;  %1827 = vmatmul.bf16.vlgmr.msra.gmra.mxu2 %v9139_v37  ;;  %v8135_v34 = vld [vmem:[#allocation2 + $0x24c] sm:$0xf]  ;;  %v5720_v39 = vor.u32 %v8103_v32, %v5717_v33 }
  0xcb   :  { %1875 = vmatpush.bf16.msrb.mxu2 %v5800_v35  ;;  %1841 = vmatmul.bf16.vlgmr.msra.gmra.mxu3 %v9143_v42  ;;  %v5845_v35 = vld [vmem:[#allocation2 + $0x258] sm:$0xf0]  ;;  %v8211_v32 = vld [vmem:[#allocation2 + $0x4ac] sm:$0xf] }
  0xcc   :  { %1889 = vmatpush.bf16.msrb.mxu3 %v5928_v40  ;;  %v6339_v40 = vld [vmem:[#allocation2 + $0x628] sm:$0xf]  ;;  %v5848_v45 = vor.u32 %v8135_v34, %v5845_v35  ;;  %v6149_v34 = vld [vmem:[#allocation2 + $0x4b8] sm:$0xf0]  ;;  %v8243_v35 = vld [vmem:[#allocation2 + $0x5ac] sm:$0xf] }
  0xcd   :  { %1848 = vmatpush.bf16.msrb.mxu0 %v6420_v48  ;;  %v5701_v48 = vld [vmem:[#allocation2 + $0x138] sm:$0xf0]  ;;  %v6340_v51 = vor.u32 %v8261_v43, %v6339_v40  ;;  %v6152_v43 = vor.u32 %v8211_v32, %v6149_v34  ;;  %v8195_v21 = vld [vmem:[#allocation2 + $0x42c] sm:$0xf] }
  0xce   :  { %1862 = vmatpush.bf16.msrb.mxu1 %v5656_v49  ;;  %v8131_v49 = vld [vmem:[#allocation2 + $0x22c] sm:$0xf]  ;;  %v5704_v55 = vor.u32 %v8099_v47, %v5701_v48 }
  0xcf   :  { %1876 = vmatpush.bf16.msrb.mxu2 %v5784_v50  ;;  %v5829_v50 = vld [vmem:[#allocation2 + $0x238] sm:$0xf0]  ;;  %v8207_v47 = vld [vmem:[#allocation2 + $0x48c] sm:$0xf] }
  0xd0   :  { %1890 = vmatpush.bf16.msrb.mxu3 %v5912_v54  ;;  %v5576_v54 = vor.u32 %v8067_v44, %v5573_v46  ;;  %v5832_v60 = vor.u32 %v8131_v49, %v5829_v50  ;;  %v6005_v46 = vld [vmem:[#allocation2 + $0x398] sm:$0xf0]  ;;  %v8239_v50 = vld [vmem:[#allocation2 + $0x58c] sm:$0xf]  ;;  %v9167_v2 = vpop.f32.mrf.mxu1 }
  0xd1   :  { %1849 = vmatpush.bf16.msrb.mxu0 %v6404_v61  ;;  %v5685_v61 = vld [vmem:[#allocation2 + $0x118] sm:$0xf0]  ;;  %v8159_v32 = vld [vmem:[#allocation2 + $0x30c] sm:$0xf] }
  0xd2   :  { %1863 = vmatpush.bf16.msrb.mxu1 %v5640_v62  ;;  %v8127_v62 = vld [vmem:[#allocation2 + $0x20c] sm:$0xf]  ;;  %v5688_v9 = vor.u32 %v8095_v59, %v5685_v61  ;;  %v6133_v49 = vld [vmem:[#allocation2 + $0x498] sm:$0xf0] }
  0xd3   :  { %1877 = vmatpush.bf16.msrb.mxu2 %v5768_v63  ;;  %v5813_v63 = vld [vmem:[#allocation2 + $0x218] sm:$0xf0] }
  0xd4   :  { %1891 = vmatpush.bf16.msrb.mxu3 %v5896_v4  ;;  %v6324_v4 = vor.u32 %v8257_v53, %v6323_v52  ;;  %v6389_v52 = vld [vmem:[#allocation2 + $0x698] sm:$0xf0]  ;;  %v6136_v53 = vor.u32 %v8207_v47, %v6133_v49  ;;  %v9176_v47 = vpop.f32.mrf.mxu3  ;;  %v6499_v49 = vld [vmem:[#allocation4 + $0x70] sm:$0xf] }
  0xd5   :  { %1850 = vmatpush.bf16.msrb.mxu0 %v6388_v10  ;;  %v8283_v10 = vld [vmem:[#allocation2 + $0x6ec] sm:$0xf]  ;;  %v6117_v59 = vld [vmem:[#allocation2 + $0x478] sm:$0xf0] }
  0xd6   :  { %1864 = vmatpush.bf16.msrb.mxu1 %v5624_v12  ;;  %v6437_v12 = vld [vmem:[#allocation2 + $0x6f8] sm:$0xf0] }
  0xd7   :  { %1878 = vmatpush.bf16.msrb.mxu2 %v5752_v13  ;;  %v5816_v13 = vor.u32 %v8127_v62, %v5813_v63  ;;  %v6440_v20 = vor.u32 %v8283_v10, %v6437_v12  ;;  %v6245_v61 = vld [vmem:[#allocation2 + $0x578] sm:$0xf0]  ;;  %v9165_v62 = vpop.f32.mrf.mxu0  ;;  %v8267_v63 = vld [vmem:[#allocation2 + $0x66c] sm:$0xf] }
  0xd8   :  { %1892 = vmatpush.bf16.msrb.mxu3 %v5880_v17  ;;  %v8183_v17 = vld [vmem:[#allocation2 + $0x3cc] sm:$0xf]  ;;  %v6101_v10 = vld [vmem:[#allocation2 + $0x458] sm:$0xf0] }
  0xd9   :  { %1851 = vmatpush.bf16.msrb.mxu0 %v6372_v24  ;;  %v6293_v24 = vld [vmem:[#allocation2 + $0x5d8] sm:$0xf0]  ;;  %v6040_v27 = vor.u32 %v8183_v17, %v6037_v18  ;;  %v8231_v12 = vld [vmem:[#allocation2 + $0x54c] sm:$0xf] }
  0xda   :  { %1865 = vmatpush.bf16.msrb.mxu1 %v5608_v25  ;;  %v8279_v25 = vld [vmem:[#allocation2 + $0x6cc] sm:$0xf]  ;;  %v6296_v29 = vor.u32 %v8247_v22, %v6293_v24  ;;  %v9169_v22 = vpop.f32.mrf.mxu2 }
  0xdb   :  { %1879 = vmatpush.bf16.msrb.mxu2 %v5736_v26  ;;  %v6421_v26 = vld [vmem:[#allocation2 + $0x6d8] sm:$0xf0] }
  0xdc   :  { %1893 = vmatpush.bf16.msrb.mxu3 %v5864_v30  ;;  %v8179_v30 = vld [vmem:[#allocation2 + $0x3ac] sm:$0xf]  ;;  %v6424_v33 = vor.u32 %v8279_v25, %v6421_v26  ;;  %v6085_v25 = vld [vmem:[#allocation2 + $0x438] sm:$0xf0] }
  0xdd   :  { %1852 = vmatpush.bf16.msrb.mxu0 %v6356_v36  ;;  %v6277_v36 = vld [vmem:[#allocation2 + $0x5b8] sm:$0xf0]  ;;  %v6024_v40 = vor.u32 %v8179_v30, %v6021_v31  ;;  %v8227_v26 = vld [vmem:[#allocation2 + $0x52c] sm:$0xf]  ;;  %v9174_v30 = vld [vmem:[%s9438_s3] sm:$0xf]  ;;  %v6088_v34 = vor.u32 %v8195_v21, %v6085_v25 }
  0xde   :  { %1866 = vmatpush.bf16.msrb.mxu1 %v5592_v38  ;;  %v8275_v38 = vld [vmem:[#allocation2 + $0x6ac] sm:$0xf]  ;;  %v6280_v44 = vor.u32 %v8243_v35, %v6277_v36  ;;  %v5941_v36 = vld [vmem:[#allocation2 + $0x318] sm:$0xf0] }
  0xdf   :  { %1880 = vmatpush.bf16.msrb.mxu2 %v5720_v39  ;;  %v6405_v39 = vld [vmem:[#allocation2 + $0x6b8] sm:$0xf0] }
  0xe0   :  { %1894 = vmatpush.bf16.msrb.mxu3 %v5848_v45  ;;  %v8175_v45 = vld [vmem:[#allocation2 + $0x38c] sm:$0xf]  ;;  %v6408_v48 = vor.u32 %v8275_v38, %v6405_v39  ;;  %v6069_v39 = vld [vmem:[#allocation2 + $0x418] sm:$0xf0] }
  0xe1   :  { %1853 = vmatpush.bf16.msrb.mxu0 %v6340_v51  ;;  %v8271_v51 = vld [vmem:[#allocation2 + $0x68c] sm:$0xf] }
  0xe2   :  { %1867 = vmatpush.bf16.msrb.mxu1 %v5576_v54  ;;  %v8171_v54 = vld [vmem:[#allocation2 + $0x36c] sm:$0xf]  ;;  %v6392_v58 = vor.u32 %v8271_v51, %v6389_v52  ;;  %v6563_v51 = vld [vmem:[#allocation4 + $0xf0] sm:$0xf]  ;;  %v8317_v52 = vld [vmem:[#allocation4 + $0xf4] sm:$0xf0] }
  0xe3   :  { %1881 = vmatpush.bf16.msrb.mxu2 %v5704_v55  ;;  %v5989_v55 = vld [vmem:[#allocation2 + $0x378] sm:$0xf0]  ;;  %v8191_v38 = vld [vmem:[#allocation2 + $0x40c] sm:$0xf] }
  0xe4   :  { %1895 = vmatpush.bf16.msrb.mxu3 %v5832_v60  ;;  %v8235_v60 = vld [vmem:[#allocation2 + $0x56c] sm:$0xf]  ;;  %v5992_v3 = vor.u32 %v8171_v54, %v5989_v55 }
  0xe5   :  { %1854 = vmatpush.bf16.msrb.mxu0 %v6324_v4  ;;  %v6120_v4 = vor.u32 %v8203_v56, %v6117_v59  ;;  %v6248_v5 = vor.u32 %v8235_v60, %v6245_v61  ;;  %v6491_v56 = vld [vmem:[#allocation4 + $0x60] sm:$0xf]  ;;  %v6564_v59 = vor.u32 %v8317_v52, %v6563_v51  ;;  %v1606_v60 = vpop.f32.mrf.mxu2  ;;  %v404_v52 = vperm.slane %v9174_v30, 1 }
  0xe6   :  { %1868 = vmatpush.bf16.msrb.mxu1 %v5560_v8  ;;  %v8199_v8 = vld [vmem:[#allocation2 + $0x44c] sm:$0xf]  ;;  %v6555_v61 = vld [vmem:[#allocation4 + $0xe0] sm:$0xf] }
  0xe7   :  { %1882 = vmatpush.bf16.msrb.mxu2 %v5688_v9  ;;  %v6376_v9 = vor.u32 %v8267_v63, %v6373_v1  ;;  %v6104_v17 = vor.u32 %v8199_v8, %v6101_v10  ;;  %v8315_v63 = vld [vmem:[#allocation4 + $0xe4] sm:$0xf0]  ;;  %v6547_v10 = vld [vmem:[#allocation4 + $0xd0] sm:$0xf] }
  0xe8   :  { %1896 = vmatpush.bf16.msrb.mxu3 %v5816_v13  ;;  %1855 = vmatmul.bf16.vlgmr.msrb.gmra.mxu0 %v9141_v41  ;;  %v6229_v13 = vld [vmem:[#allocation2 + $0x558] sm:$0xf0]  ;;  %v6556_v8 = vor.u32 %v8315_v63, %v6555_v61  ;;  %v6507_v61 = vld [vmem:[#allocation4 + $0x80] sm:$0xf]  ;;  %v8303_v63 = vld [vmem:[#allocation4 + $0x84] sm:$0xf0] }
  0xe9   :  { %1903 = vmatpush.bf16.msra.mxu0 %v6056_v14  ;;  %1869 = vmatmul.bf16.vlgmr.msrb.gmra.mxu1 %v9094_v57  ;;  %v8263_v14 = vld [vmem:[#allocation2 + $0x64c] sm:$0xf]  ;;  %v6232_v18 = vor.u32 %v8231_v12, %v6229_v13 }
  0xea   :  { %1917 = vmatpush.bf16.msra.mxu1 %v6184_v15  ;;  %1883 = vmatmul.bf16.vlgmr.msrb.gmra.mxu2 %v9109_v11  ;;  %v6261_v11 = vld [vmem:[#allocation2 + $0x598] sm:$0xf0] }
  0xeb   :  { %1931 = vmatpush.bf16.msra.mxu2 %v6312_v16  ;;  %1897 = vmatmul.bf16.vlgmr.msrb.gmra.mxu3 %v9099_v0  ;;  %v6008_v0 = vor.u32 %v8175_v45, %v6005_v46  ;;  %v6264_v57 = vor.u32 %v8239_v50, %v6261_v11  ;;  %v6357_v15 = vld [vmem:[#allocation2 + $0x658] sm:$0xf0]  ;;  %v5976_v16 = vor.u32 %v8167_v6, %v5973_v7  ;;  %v8255_v46 = vld [vmem:[#allocation2 + $0x60c] sm:$0xf]  ;;  %v8301_v50 = vld [vmem:[#allocation4 + $0x74] sm:$0xf0] }
  0xec   :  { %1945 = vmatpush.bf16.msra.mxu3 %v6440_v20  ;;  %v5957_v20 = vld [vmem:[#allocation2 + $0x338] sm:$0xf0]  ;;  %v6360_v24 = vor.u32 %v8263_v14, %v6357_v15  ;;  %v5944_v11 = vor.u32 %v8159_v32, %v5941_v36  ;;  %v6500_v55 = vor.u32 %v8301_v50, %v6499_v49  ;;  %v6483_v6 = vld [vmem:[#allocation4 + $0x50] sm:$0xf]  ;;  %v8297_v7 = vld [vmem:[#allocation4 + $0x54] sm:$0xf0]  ;;  %v1620_v14 = vpop.f32.mrf.mxu3 }
  0xed   :  { %1904 = vmatpush.bf16.msra.mxu0 %v6040_v27  ;;  %v6213_v27 = vld [vmem:[#allocation2 + $0x538] sm:$0xf0]  ;;  %v5960_v31 = vor.u32 %v8163_v19, %v5957_v20  ;;  %v6484_v15 = vor.u32 %v8297_v7, %v6483_v6  ;;  %v8311_v19 = vld [vmem:[#allocation4 + $0xc4] sm:$0xf0]  ;;  %v6523_v36 = vld [vmem:[#allocation4 + $0xa0] sm:$0xf] }
  0xee   :  { %1918 = vmatpush.bf16.msra.mxu1 %v6168_v28  ;;  %v8259_v28 = vld [vmem:[#allocation2 + $0x62c] sm:$0xf]  ;;  %v6216_v35 = vor.u32 %v8227_v26, %v6213_v27  ;;  %v6197_v45 = vld [vmem:[#allocation2 + $0x518] sm:$0xf0]  ;;  %v6531_v26 = vld [vmem:[#allocation4 + $0xb0] sm:$0xf] }
  0xef   :  { %1932 = vmatpush.bf16.msra.mxu2 %v6296_v29  ;;  %v6341_v29 = vld [vmem:[#allocation2 + $0x638] sm:$0xf0]  ;;  %v8305_v49 = vld [vmem:[#allocation4 + $0x94] sm:$0xf0] }
  0xf0   :  { %1946 = vmatpush.bf16.msra.mxu3 %v6424_v33  ;;  %v1578_v33 = vpop.f32.mrf.mxu0 }
  0xf1   :  { %1905 = vmatpush.bf16.msra.mxu0 %v6024_v40  ;;  %v1592_v40 = vpop.f32.mrf.mxu1 }
  0xf2   :  { %1919 = vmatpush.bf16.msra.mxu1 %v6152_v43  ;;  %v6344_v43 = vor.u32 %v8259_v28, %v6341_v29 }
  0xf3   :  { %1933 = vmatpush.bf16.msra.mxu2 %v6280_v44  ;;  %v8223_v44 = vld [vmem:[#allocation2 + $0x50c] sm:$0xf] }
  0xf4   :  { %1947 = vmatpush.bf16.msra.mxu3 %v6408_v48  ;;  %v6325_v48 = vld [vmem:[#allocation2 + $0x618] sm:$0xf0] }
  0xf5   :  { %1906 = vmatpush.bf16.msra.mxu0 %v6008_v0  ;;  %v403_v0 = vperm.slane %v9174_v30, 0  ;;  %v6328_v54 = vor.u32 %v8255_v46, %v6325_v48  ;;  %v6515_v48 = vld [vmem:[#allocation4 + $0x90] sm:$0xf] }
  0xf6   :  { %1920 = vmatpush.bf16.msra.mxu1 %v6136_v53  ;;  %v6072_v53 = vor.u32 %v8191_v38, %v6069_v39  ;;  %v8307_v38 = vld [vmem:[#allocation4 + $0xa4] sm:$0xf0] }
  0xf7   :  { %1934 = vmatpush.bf16.msra.mxu2 %v6264_v57  ;;  %v6200_v57 = vor.u32 %v8223_v44, %v6197_v45  ;;  %v1577_v1 = vadd.f32 %v9165_v62, %v403_v0  ;;  %v8313_v62 = vld [vmem:[#allocation4 + $0xd4] sm:$0xf0]  ;;  %v6451_v44 = vld [vmem:[#allocation4 + $0x10] sm:$0xf]  ;;  %v6524_v46 = vor.u32 %v8307_v38, %v6523_v36 }
  0xf8   :  { %1948 = vmatpush.bf16.msra.mxu3 %v6392_v58  ;;  %v8299_v58 = vld [vmem:[#allocation4 + $0x64] sm:$0xf0]  ;;  %v8289_v45 = vld [vmem:[#allocation4 + $0x14] sm:$0xf0] }
  0xf9   :  { %1907 = vmatpush.bf16.msra.mxu0 %v5992_v3  ;;  %v1579_v3 = vadd.f32 %v1578_v33, %v403_v0  ;;  %v1591_v12 = vadd.f32 %v9167_v2, %v1577_v1  ;;  %v8293_v2 = vld [vmem:[#allocation4 + $0x34] sm:$0xf0] }
  0xfa   :  { %1921 = vmatpush.bf16.msra.mxu1 %v6120_v4  ;;  %v6492_v4 = vor.u32 %v8299_v58, %v6491_v56  ;;  %v8287_v56 = vld [vmem:[#allocation4 + $0x4] sm:$0xf0]  ;;  %v8300_v58 = vld [vmem:[#allocation4 + $0x74] sm:$0xf] }
  0xfb   :  { %1935 = vmatpush.bf16.msra.mxu2 %v6248_v5  ;;  %v1632_v5 = vpop.f32.mrf.mxu0  ;;  %v1593_v13 = vadd.f32 %v1592_v40, %v1579_v3  ;;  %v8316_v3 = vld [vmem:[#allocation4 + $0xf4] sm:$0xf] }
  0xfc   :  { %1949 = vmatpush.bf16.msra.mxu3 %v6376_v9  ;;  %v1646_v9 = vpop.f32.mrf.mxu1 }
  0xfd   :  { %1908 = vmatpush.bf16.msra.mxu0 %v5976_v16  ;;  %v8295_v16 = vld [vmem:[#allocation4 + $0x44] sm:$0xf0]  ;;  %v1607_v20 = vadd.f32 %v1606_v60, %v1593_v13  ;;  %v6501_v60 = vld [vmem:[#allocation4 + $0x78] sm:$0xf0] }
  0xfe   :  { %1922 = vmatpush.bf16.msra.mxu1 %v6104_v17  ;;  %v6548_v17 = vor.u32 %v8313_v62, %v6547_v10  ;;  %v8298_v10 = vld [vmem:[#allocation4 + $0x64] sm:$0xf]  ;;  %v6493_v62 = vld [vmem:[#allocation4 + $0x68] sm:$0xf0] }
  0xff   :  { %1936 = vmatpush.bf16.msra.mxu2 %v6232_v18  ;;  %v6539_v18 = vld [vmem:[#allocation4 + $0xc0] sm:$0xf]  ;;  %v1621_v28 = vadd.f32 %v1620_v14, %v1607_v20 }
 0x100   :  { %1950 = vmatpush.bf16.msra.mxu3 %v6360_v24  ;;  %v6467_v24 = vld [vmem:[#allocation4 + $0x30] sm:$0xf]  ;;  %v6540_v25 = vor.u32 %v8311_v19, %v6539_v18  ;;  %v6496_v19 = vor.u32 %v8298_v10, %v6493_v62  ;;  %v6453_v62 = vld [vmem:[#allocation4 + $0x18] sm:$0xf0] }
 0x101   :  { %1909 = vmatpush.bf16.msra.mxu0 %v5960_v31  ;;  %v1674_v31 = vpop.f32.mrf.mxu3  ;;  %v6468_v33 = vor.u32 %v8293_v2, %v6467_v24 }
 0x102   :  { %1923 = vmatpush.bf16.msra.mxu1 %v6088_v34  ;;  %v6459_v34 = vld [vmem:[#allocation4 + $0x20] sm:$0xf] }
 0x103   :  { %1937 = vmatpush.bf16.msra.mxu2 %v6216_v35  ;;  %v1634_v29 = vpop.f32.mrf.mxu0 }
 0x104   :  { %1951 = vmatpush.bf16.msra.mxu3 %v6344_v43  ;;  %v1648_v32 = vpop.f32.mrf.mxu1  ;;  %v1635_v40 = vadd.f32 %v1634_v29, %v1621_v28  ;;  %v8294_v29 = vld [vmem:[#allocation4 + $0x44] sm:$0xf] }
 0x105   :  { %1910 = vmatpush.bf16.msra.mxu0 %v5944_v11 }
 0x106   :  { %1924 = vmatpush.bf16.msra.mxu1 %v6072_v53  ;;  %v1649_v11 = vadd.f32 %v1648_v32, %v1635_v40  ;;  %v6452_v53 = vor.u32 %v8289_v45, %v6451_v44  ;;  %v8292_v44 = vld [vmem:[#allocation4 + $0x34] sm:$0xf] }
 0x107   :  { %1938 = vmatpush.bf16.msra.mxu2 %v6200_v57 }
 0x108   :  { %1952 = vmatpush.bf16.msra.mxu3 %v6328_v54  ;;  %1911 = vmatmul.bf16.vlgmr.msra.gmra.mxu0 %v9118_v23  ;;  %v6475_v23 = vld [vmem:[#allocation4 + $0x40] sm:$0xf] }
 0x109   :  { %2361 = vmatpush.bf16.msrb.mxu0 %v6500_v55  ;;  %1925 = vmatmul.bf16.vlgmr.msra.gmra.mxu1 %v9139_v37  ;;  %v1605_v37 = vadd.f32 %v9169_v22, %v1591_v12  ;;  %v6476_v21 = vor.u32 %v8295_v16, %v6475_v23  ;;  %v8291_v22 = vld [vmem:[#allocation4 + $0x24] sm:$0xf0]  ;;  %v1676_v54 = vpop.f32.mrf.mxu3  ;;  %v6443_v55 = vld [vmem:[#allocation4] sm:$0xf]  ;;  %v6557_v23 = vld [vmem:[#allocation4 + $0xe8] sm:$0xf0] }
 0x10a   :  { %2375 = vmatpush.bf16.msrb.mxu1 %v6564_v59  ;;  %1939 = vmatmul.bf16.vlgmr.msra.gmra.mxu2 %v9143_v42  ;;  %v1660_v42 = vpop.f32.mrf.mxu2  ;;  %v6460_v43 = vor.u32 %v8291_v22, %v6459_v34  ;;  %v6516_v59 = vor.u32 %v8305_v49, %v6515_v48  ;;  %v6444_v6 = vor.u32 %v8287_v56, %v6443_v55  ;;  %v6541_v34 = vld [vmem:[#allocation4 + $0xc8] sm:$0xf0]  ;;  %v6627_v22 = vld [vmem:[#allocation4 + $0x170] sm:$0xf]  ;;  %v6619_v49 = vld [vmem:[#allocation4 + $0x160] sm:$0xf] }
 0x10b   :  { %1953 = vmatmul.bf16.vlgmr.msra.gmra.mxu3 %v9141_v41  ;;  %v8309_v41 = vld [vmem:[#allocation4 + $0xb4] sm:$0xf0]  ;;  %v1619_v27 = vadd.f32 %v9176_v47, %v1605_v37  ;;  %v1688_v51 = vpop.f32.mrf.mxu0  ;;  %v1677_v37 = vadd.f32 %v1676_v54, %v404_v52  ;;  %v8290_v56 = vld [vmem:[#allocation4 + $0x24] sm:$0xf] }
 0x10c   :  { %v6532_v35 = vor.u32 %v8309_v41, %v6531_v26  ;;  %v1702_v0 = vpop.f32.mrf.mxu1  ;;  %v6549_v26 = vld [vmem:[#allocation4 + $0xd8] sm:$0xf0] }
 0x10d   :  { %2362 = vmatpush.bf16.msrb.mxu0 %v6492_v4  ;;  %v1633_v39 = vadd.f32 %v1632_v5, %v1619_v27  ;;  %v6565_v4 = vld [vmem:[#allocation4 + $0xf8] sm:$0xf0]  ;;  %v1675_v5 = vadd.f32 %v1674_v31, %v404_v52  ;;  %v6477_v31 = vld [vmem:[#allocation4 + $0x48] sm:$0xf0] }
 0x10e   :  { %2376 = vmatpush.bf16.msrb.mxu1 %v6556_v8  ;;  %v6504_v8 = vor.u32 %v8300_v58, %v6501_v60  ;;  %v6568_v12 = vor.u32 %v8316_v3, %v6565_v4  ;;  %v6461_v58 = vld [vmem:[#allocation4 + $0x28] sm:$0xf0]  ;;  %v8306_v60 = vld [vmem:[#allocation4 + $0xa4] sm:$0xf] }
 0x10f   :  { %v1647_v50 = vadd.f32 %v1646_v9, %v1633_v39  ;;  %v6508_v9 = vor.u32 %v8303_v63, %v6507_v61  ;;  %v1689_v16 = vadd.f32 %v1688_v51, %v1675_v5  ;;  %v6533_v51 = vld [vmem:[#allocation4 + $0xb8] sm:$0xf0]  ;;  %v6525_v61 = vld [vmem:[#allocation4 + $0xa8] sm:$0xf0]  ;;  %v6611_v63 = vld [vmem:[#allocation4 + $0x150] sm:$0xf] }
 0x111   :  { %2363 = vmatpush.bf16.msrb.mxu0 %v6484_v15  ;;  %v1661_v1 = vadd.f32 %v1660_v42, %v1647_v50  ;;  %v8314_v15 = vld [vmem:[#allocation4 + $0xe4] sm:$0xf]  ;;  %v8296_v42 = vld [vmem:[#allocation4 + $0x54] sm:$0xf]  ;;  %v1730_v2 = vpop.f32.mrf.mxu3  ;;  %v1703_v41 = vadd.f32 %v1702_v0, %v1689_v16  ;;  %v8331_v50 = vld [vmem:[#allocation4 + $0x164] sm:$0xf0] }
 0x112   :  { %2377 = vmatpush.bf16.msrb.mxu1 %v6548_v17  ;;  %v1662_v47 = vpop.f32.mrf.mxu2  ;;  %v6560_v24 = vor.u32 %v8314_v15, %v6557_v23  ;;  %v6620_v52 = vor.u32 %v8331_v50, %v6619_v49  ;;  %v8304_v16 = vld [vmem:[#allocation4 + $0x94] sm:$0xf] }
 0x113   :  { %v1663_v57 = vadd.f32 %v1662_v47, %v1649_v11  ;;  %v1959_v13 = vmax.f32 %v1661_v1, 0.0  ;;  %v1690_v18 = vpop.f32.mrf.mxu0  ;;  %v6469_v47 = vld [vmem:[#allocation4 + $0x38] sm:$0xf0]  ;;  %v8308_v11 = vld [vmem:[#allocation4 + $0xb4] sm:$0xf] }
 0x114   :  { %v1704_v20 = vpop.f32.mrf.mxu1  ;;  %v1691_v28 = vadd.f32 %v1690_v18, %v1677_v37  ;;  %v6472_v54 = vor.u32 %v8292_v44, %v6469_v47  ;;  %v8329_v1 = vld [vmem:[#allocation4 + $0x154] sm:$0xf0]  ;;  %v6517_v18 = vld [vmem:[#allocation4 + $0x98] sm:$0xf0]  ;;  %v8330_v47 = vld [vmem:[#allocation4 + $0x164] sm:$0xf] }
 0x115   :  { %2364 = vmatpush.bf16.msrb.mxu0 %v6476_v21  ;;  %v1963_v7 = vmax.f32 %v1663_v57, 0.0  ;;  %v6485_v21 = vld [vmem:[#allocation4 + $0x58] sm:$0xf0]  ;;  %v6612_v4 = vor.u32 %v8329_v1, %v6611_v63  ;;  %v6675_v1 = vld [vmem:[#allocation4 + $0x1d0] sm:$0xf] }
 0x116   :  { %2378 = vmatpush.bf16.msrb.mxu1 %v6540_v25  ;;  %v8312_v25 = vld [vmem:[#allocation4 + $0xd4] sm:$0xf]  ;;  %v6488_v27 = vor.u32 %v8296_v42, %v6485_v21  ;;  %v1705_v45 = vadd.f32 %v1704_v20, %v1691_v28  ;;  %v8286_v42 = vld [vmem:[#allocation4 + $0x4] sm:$0xf]  ;;  %v6445_v21 = vld [vmem:[#allocation4 + $0x8] sm:$0xf0] }
 0x117   :  { %v9188_v17 = vpack.c.bf16 %v1963_v7, %v1959_v13  ;;  %v6552_v32 = vor.u32 %v8312_v25, %v6549_v26  ;;  %v8288_v7 = vld [vmem:[#allocation4 + $0x14] sm:$0xf]  ;;  %v6603_v13 = vld [vmem:[#allocation4 + $0x140] sm:$0xf]  ;;  %v8325_v25 = vld [vmem:[#allocation4 + $0x134] sm:$0xf0] }
 0x118   :  { %v6629_v44 = vld [vmem:[#allocation4 + $0x178] sm:$0xf0] }
 0x119   :  { %2365 = vmatpush.bf16.msrb.mxu0 %v6468_v33  ;;  %v8310_v33 = vld [vmem:[#allocation4 + $0xc4] sm:$0xf]  ;;  %v1732_v57 = vpop.f32.mrf.mxu3 }
 0x11a   :  { %2379 = vmatpush.bf16.msrb.mxu1 %v6532_v35  ;;  %v1716_v14 = vpop.f32.mrf.mxu2  ;;  %v8333_v35 = vld [vmem:[#allocation4 + $0x174] sm:$0xf0]  ;;  %v6544_v48 = vor.u32 %v8310_v33, %v6541_v34 }
 0x11b   :  { %v1717_v36 = vadd.f32 %v1716_v14, %v1703_v41  ;;  %v6628_v38 = vor.u32 %v8333_v35, %v6627_v22  ;;  %v8327_v14 = vld [vmem:[#allocation4 + $0x144] sm:$0xf0]  ;;  %v8302_v41 = vld [vmem:[#allocation4 + $0x84] sm:$0xf]  ;;  %v6579_v22 = vld [vmem:[#allocation4 + $0x110] sm:$0xf] }
 0x11c   :  { %v6604_v15 = vor.u32 %v8327_v14, %v6603_v13  ;;  %v8321_v35 = vld [vmem:[#allocation4 + $0x114] sm:$0xf0]  ;;  %v6589_v13 = vld [vmem:[#allocation4 + $0x128] sm:$0xf0] }
 0x11d   :  { %2366 = vmatpush.bf16.msrb.mxu0 %v6460_v43  ;;  %v6480_v43 = vor.u32 %v8294_v29, %v6477_v31  ;;  %2389 = vmatpush.bf16.msrb.mxu2 %v6628_v38  ;;  %v1731_v0 = vadd.f32 %v1730_v2, %v1717_v36  ;;  %v6595_v2 = vld [vmem:[#allocation4 + $0x130] sm:$0xf]  ;;  %v6448_v29 = vor.u32 %v8286_v42, %v6445_v21  ;;  %v6587_v31 = vld [vmem:[#allocation4 + $0x120] sm:$0xf] }
 0x11e   :  { %2380 = vmatpush.bf16.msrb.mxu1 %v6524_v46  ;;  %v6596_v28 = vor.u32 %v8325_v25, %v6595_v2  ;;  %v6580_v36 = vor.u32 %v8321_v35, %v6579_v22  ;;  %v6571_v38 = vld [vmem:[#allocation4 + $0x100] sm:$0xf] }
 0x11f   :  { %v6651_v25 = vld [vmem:[#allocation4 + $0x1a0] sm:$0xf] }
 0x121   :  { %2367 = vmatpush.bf16.msrb.mxu0 %v6452_v53  ;;  %2390 = vmatpush.bf16.msrb.mxu2 %v6620_v52  ;;  %v8328_v52 = vld [vmem:[#allocation4 + $0x154] sm:$0xf] }
 0x122   :  { %2381 = vmatpush.bf16.msrb.mxu1 %v6516_v59  ;;  %v1718_v39 = vpop.f32.mrf.mxu2  ;;  %v6536_v59 = vor.u32 %v8308_v11, %v6533_v51  ;;  %v6691_v11 = vld [vmem:[#allocation4 + $0x1f0] sm:$0xf]  ;;  %v8349_v51 = vld [vmem:[#allocation4 + $0x1f4] sm:$0xf0] }
 0x123   :  { %v1719_v53 = vadd.f32 %v1718_v39, %v1705_v45  ;;  %v8319_v39 = vld [vmem:[#allocation4 + $0x104] sm:$0xf0] }
 0x125   :  { %2368 = vmatpush.bf16.msrb.mxu0 %v6444_v6  ;;  %v1744_v40 = vpop.f32.mrf.mxu0  ;;  %v1733_v3 = vadd.f32 %v1732_v57, %v1719_v53  ;;  %v6464_v6 = vor.u32 %v8290_v56, %v6461_v58  ;;  %2391 = vmatpush.bf16.msrb.mxu2 %v6612_v4  ;;  %v6613_v53 = vld [vmem:[#allocation4 + $0x158] sm:$0xf0]  ;;  %v6683_v57 = vld [vmem:[#allocation4 + $0x1e0] sm:$0xf]  ;;  %v8324_v4 = vld [vmem:[#allocation4 + $0x134] sm:$0xf] }
 0x126   :  { %2382 = vmatpush.bf16.msrb.mxu1 %v6508_v9  ;;  %v1758_v46 = vpop.f32.mrf.mxu1  ;;  %v1745_v55 = vadd.f32 %v1744_v40, %v1731_v0  ;;  %v6572_v40 = vor.u32 %v8319_v39, %v6571_v38  ;;  %v6692_v0 = vor.u32 %v8349_v51, %v6691_v11  ;;  %v6643_v38 = vld [vmem:[#allocation4 + $0x190] sm:$0xf]  ;;  %v8337_v39 = vld [vmem:[#allocation4 + $0x194] sm:$0xf0]  ;;  %v8348_v51 = vld [vmem:[#allocation4 + $0x1f4] sm:$0xf] }
 0x128   :  { %2369 = vmatmul.bf16.vlgmr.msrb.gmra.mxu0 %v9188_v17  ;;  %2403 = vmatpush.bf16.msrb.mxu3 %v6692_v0 }
 0x129   :  { %2417 = vmatpush.bf16.msra.mxu0 %v6504_v8  ;;  %v1759_v8 = vadd.f32 %v1758_v46, %v1745_v55  ;;  %2392 = vmatpush.bf16.msrb.mxu2 %v6604_v15  ;;  %v8326_v55 = vld [vmem:[#allocation4 + $0x144] sm:$0xf] }
 0x12a   :  { %2431 = vmatpush.bf16.msra.mxu1 %v6568_v12  ;;  %v6528_v12 = vor.u32 %v8306_v60, %v6525_v61  ;;  %v405_v60 = vperm.slane %v9174_v30, 2 }
 0x12b   :  { %v1960_v37 = vmax.f32 %v1759_v8, 0.0  ;;  %v6667_v8 = vld [vmem:[#allocation4 + $0x1c0] sm:$0xf] }
 0x12d   :  { %2418 = vmatpush.bf16.msra.mxu0 %v6496_v19  ;;  %v1746_v5 = vpop.f32.mrf.mxu0  ;;  %v6456_v19 = vor.u32 %v8288_v7, %v6453_v62  ;;  %2393 = vmatpush.bf16.msrb.mxu2 %v6596_v28  ;;  %v1772_v46 = vpop.f32.mrf.mxu2  ;;  %v6597_v7 = vld [vmem:[#allocation4 + $0x138] sm:$0xf0]  ;;  %v6573_v28 = vld [vmem:[#allocation4 + $0x108] sm:$0xf0] }
 0x12e   :  { %2432 = vmatpush.bf16.msra.mxu1 %v6560_v24  ;;  %v1747_v9 = vadd.f32 %v1746_v5, %v1733_v3  ;;  %v1760_v10 = vpop.f32.mrf.mxu1  ;;  %v6520_v24 = vor.u32 %v8304_v16, %v6517_v18  ;;  %v1786_v50 = vpop.f32.mrf.mxu3  ;;  %v8345_v3 = vld [vmem:[#allocation4 + $0x1d4] sm:$0xf0]  ;;  %v6600_v62 = vor.u32 %v8324_v4, %v6597_v7  ;;  %v6669_v7 = vld [vmem:[#allocation4 + $0x1c8] sm:$0xf0] }
 0x12f   :  { %v8341_v16 = vld [vmem:[#allocation4 + $0x1b4] sm:$0xf0] }
 0x130   :  { %v1761_v23 = vadd.f32 %v1760_v10, %v1747_v9  ;;  %v8343_v9 = vld [vmem:[#allocation4 + $0x1c4] sm:$0xf0]  ;;  %v1773_v10 = vadd.f32 %v1772_v46, %v405_v60 }
 0x131   :  { %2419 = vmatpush.bf16.msra.mxu0 %v6488_v27  ;;  %v6509_v27 = vld [vmem:[#allocation4 + $0x88] sm:$0xf0]  ;;  %v6668_v14 = vor.u32 %v8343_v9, %v6667_v8 }
 0x132   :  { %2433 = vmatpush.bf16.msra.mxu1 %v6552_v32  ;;  %v1964_v20 = vmax.f32 %v1761_v23, 0.0  ;;  %v8323_v32 = vld [vmem:[#allocation4 + $0x124] sm:$0xf0]  ;;  %v6512_v34 = vor.u32 %v8302_v41, %v6509_v27  ;;  %v6659_v23 = vld [vmem:[#allocation4 + $0x1b0] sm:$0xf] }
 0x133   :  { %v6588_v33 = vor.u32 %v8323_v32, %v6587_v31  ;;  %v8318_v27 = vld [vmem:[#allocation4 + $0x104] sm:$0xf] }
 0x134   :  { %v1968_v26 = vpack.c.bf16 %v1964_v20, %v1960_v37  ;;  %v6581_v37 = vld [vmem:[#allocation4 + $0x118] sm:$0xf0]  ;;  %v1787_v20 = vadd.f32 %v1786_v50, %v1773_v10 }
 0x135   :  { %2420 = vmatpush.bf16.msra.mxu0 %v6480_v43  ;;  %2394 = vmatpush.bf16.msrb.mxu2 %v6588_v33  ;;  %v8332_v43 = vld [vmem:[#allocation4 + $0x174] sm:$0xf]  ;;  %v1774_v56 = vpop.f32.mrf.mxu2 }
 0x136   :  { %2434 = vmatpush.bf16.msra.mxu1 %v6544_v48  ;;  %v6632_v45 = vor.u32 %v8332_v43, %v6629_v44  ;;  %v6621_v48 = vld [vmem:[#allocation4 + $0x168] sm:$0xf0]  ;;  %v1788_v5 = vpop.f32.mrf.mxu3  ;;  %v1775_v42 = vadd.f32 %v1774_v56, %v405_v60  ;;  %v6644_v44 = vor.u32 %v8337_v39, %v6643_v38 }
 0x137   :  { %2383 = vmatmul.bf16.vlgmr.msrb.gmra.mxu1 %v1968_v26  ;;  %v6624_v49 = vor.u32 %v8330_v47, %v6621_v48  ;;  %v6635_v48 = vld [vmem:[#allocation4 + $0x180] sm:$0xf]  ;;  %v6685_v56 = vld [vmem:[#allocation4 + $0x1e8] sm:$0xf0] }
 0x139   :  { %2421 = vmatpush.bf16.msra.mxu0 %v6472_v54  ;;  %2395 = vmatpush.bf16.msrb.mxu2 %v6580_v36  ;;  %v8347_v54 = vld [vmem:[#allocation4 + $0x1e4] sm:$0xf0] }
 0x13a   :  { %2435 = vmatpush.bf16.msra.mxu1 %v6536_v59  ;;  %v6684_v58 = vor.u32 %v8347_v54, %v6683_v57  ;;  %v6605_v59 = vld [vmem:[#allocation4 + $0x148] sm:$0xf0] }
 0x13b   :  { %v6608_v61 = vor.u32 %v8326_v55, %v6605_v59  ;;  %v8346_v55 = vld [vmem:[#allocation4 + $0x1e4] sm:$0xf] }
 0x13c   :  { %2404 = vmatpush.bf16.msrb.mxu3 %v6684_v58  ;;  %v6688_v59 = vor.u32 %v8346_v55, %v6685_v56  ;;  %v8363_v55 = vld [vmem:[#allocation7 + $0x64] sm:$0xf0]  ;;  %v8362_v56 = vld [vmem:[#allocation7 + $0x64] sm:$0xf] }
 0x13d   :  { %2422 = vmatpush.bf16.msra.mxu0 %v6464_v6  ;;  %2396 = vmatpush.bf16.msrb.mxu2 %v6572_v40  ;;  %v6676_v6 = vor.u32 %v8345_v3, %v6675_v1  ;;  %v6677_v1 = vld [vmem:[#allocation4 + $0x1d8] sm:$0xf0] }
 0x13e   :  { %2436 = vmatpush.bf16.msra.mxu1 %v6528_v12  ;;  %v8322_v12 = vld [vmem:[#allocation4 + $0x124] sm:$0xf] }
 0x13f   :  { %v6592_v15 = vor.u32 %v8322_v12, %v6589_v13  ;;  %v6661_v12 = vld [vmem:[#allocation4 + $0x1b8] sm:$0xf0]  ;;  %v406_v13 = vperm.slane %v9174_v30, 3 }
 0x140   :  { %2405 = vmatpush.bf16.msrb.mxu3 %v6676_v6  ;;  %v8342_v6 = vld [vmem:[#allocation4 + $0x1c4] sm:$0xf] }
 0x141   :  { %2423 = vmatpush.bf16.msra.mxu0 %v6456_v19  ;;  %2445 = vmatpush.bf16.msra.mxu2 %v6632_v45  ;;  %v8320_v19 = vld [vmem:[#allocation4 + $0x114] sm:$0xf]  ;;  %v6672_v8 = vor.u32 %v8342_v6, %v6669_v7  ;;  %v6731_v6 = vld [vmem:[#allocation7 + $0x40] sm:$0xf]  ;;  %v8359_v7 = vld [vmem:[#allocation7 + $0x44] sm:$0xf0] }
 0x142   :  { %2437 = vmatpush.bf16.msra.mxu1 %v6520_v24  ;;  %v6660_v24 = vor.u32 %v8341_v16, %v6659_v23  ;;  %v6584_v2 = vor.u32 %v8320_v19, %v6581_v37  ;;  %v6653_v23 = vld [vmem:[#allocation4 + $0x1a8] sm:$0xf0] }
 0x144   :  { %2406 = vmatpush.bf16.msrb.mxu3 %v6668_v14 }
 0x145   :  { %2424 = vmatpush.bf16.msra.mxu0 %v6448_v29  ;;  %2446 = vmatpush.bf16.msra.mxu2 %v6624_v49  ;;  %v1800_v63 = vpop.f32.mrf.mxu0  ;;  %v1789_v29 = vadd.f32 %v1788_v5, %v1775_v42  ;;  %v8335_v49 = vld [vmem:[#allocation4 + $0x184] sm:$0xf0]  ;;  %v6645_v42 = vld [vmem:[#allocation4 + $0x198] sm:$0xf0] }
 0x146   :  { %2438 = vmatpush.bf16.msra.mxu1 %v6512_v34  ;;  %v1814_v18 = vpop.f32.mrf.mxu1  ;;  %v1801_v31 = vadd.f32 %v1800_v63, %v1787_v20  ;;  %v6576_v34 = vor.u32 %v8318_v27, %v6573_v28  ;;  %v6636_v11 = vor.u32 %v8335_v49, %v6635_v48  ;;  %v8344_v63 = vld [vmem:[#allocation4 + $0x1d4] sm:$0xf]  ;;  %v6637_v27 = vld [vmem:[#allocation4 + $0x188] sm:$0xf0] }
 0x147   :  { %v6680_v4 = vor.u32 %v8344_v63, %v6677_v1  ;;  %v8336_v20 = vld [vmem:[#allocation4 + $0x194] sm:$0xf] }
 0x148   :  { %2425 = vmatmul.bf16.vlgmr.msra.gmra.mxu0 %v9188_v17  ;;  %v6616_v17 = vor.u32 %v8328_v52, %v6613_v53  ;;  %2407 = vmatpush.bf16.msrb.mxu3 %v6660_v24  ;;  %v1815_v22 = vadd.f32 %v1814_v18, %v1801_v31  ;;  %v6693_v52 = vld [vmem:[#allocation4 + $0x1f8] sm:$0xf0]  ;;  %v8360_v1 = vld [vmem:[#allocation7 + $0x54] sm:$0xf] }
 0x149   :  { %2439 = vmatmul.bf16.vlgmr.msra.gmra.mxu1 %v1968_v26  ;;  %v8339_v26 = vld [vmem:[#allocation4 + $0x1a4] sm:$0xf0]  ;;  %v6696_v53 = vor.u32 %v8348_v51, %v6693_v52  ;;  %v6755_v51 = vld [vmem:[#allocation7 + $0x70] sm:$0xf]  ;;  %v8365_v52 = vld [vmem:[#allocation7 + $0x74] sm:$0xf0] }
 0x14a   :  { %2447 = vmatpush.bf16.msra.mxu2 %v6616_v17  ;;  %v6652_v33 = vor.u32 %v8339_v26, %v6651_v25 }
 0x14c   :  { %2408 = vmatpush.bf16.msrb.mxu3 %v6652_v33 }
 0x14d   :  { %v1828_v21 = vpop.f32.mrf.mxu2  ;;  %v1802_v41 = vpop.f32.mrf.mxu0 }
 0x14e   :  { %2448 = vmatpush.bf16.msra.mxu2 %v6608_v61  ;;  %v1842_v32 = vpop.f32.mrf.mxu3  ;;  %v1803_v35 = vadd.f32 %v1802_v41, %v1789_v29  ;;  %v1816_v36 = vpop.f32.mrf.mxu1  ;;  %v1829_v45 = vadd.f32 %v1828_v21, %v1815_v22  ;;  %v8334_v21 = vld [vmem:[#allocation4 + $0x184] sm:$0xf]  ;;  %v6648_v41 = vor.u32 %v8336_v20, %v6645_v42  ;;  %v8380_v20 = vld [vmem:[#allocation7 + $0xf4] sm:$0xf]  ;;  %v6821_v42 = vld [vmem:[#allocation7 + $0xf8] sm:$0xf0] }
 0x14f   :  { %v6640_v30 = vor.u32 %v8334_v21, %v6637_v27  ;;  %v6824_v21 = vor.u32 %v8380_v20, %v6821_v42  ;;  %v8354_v27 = vld [vmem:[#allocation7 + $0x24] sm:$0xf]  ;;  %v6765_v42 = vld [vmem:[#allocation7 + $0x88] sm:$0xf0] }
 0x150   :  { %v1817_v46 = vadd.f32 %v1816_v36, %v1803_v35  ;;  %2409 = vmatpush.bf16.msrb.mxu3 %v6644_v44  ;;  %v1843_v0 = vadd.f32 %v1842_v32, %v1829_v45 }
 0x152   :  { %2449 = vmatpush.bf16.msra.mxu2 %v6600_v62  ;;  %v8340_v62 = vld [vmem:[#allocation4 + $0x1b4] sm:$0xf] }
 0x153   :  { %v6664_v14 = vor.u32 %v8340_v62, %v6661_v12  ;;  %v6723_v12 = vld [vmem:[#allocation7 + $0x30] sm:$0xf] }
 0x154   :  { %2410 = vmatpush.bf16.msrb.mxu3 %v6636_v11 }
 0x155   :  { %v1830_v40 = vpop.f32.mrf.mxu2 }
 0x156   :  { %2450 = vmatpush.bf16.msra.mxu2 %v6592_v15  ;;  %v1831_v47 = vadd.f32 %v1830_v40, %v1817_v46  ;;  %v1844_v50 = vpop.f32.mrf.mxu3  ;;  %v8338_v15 = vld [vmem:[#allocation4 + $0x1a4] sm:$0xf] }
 0x157   :  { %v6656_v16 = vor.u32 %v8338_v15, %v6653_v23  ;;  %v8381_v23 = vld [vmem:[#allocation7 + $0xf4] sm:$0xf0] }
 0x158   :  { %v1845_v17 = vadd.f32 %v1844_v50, %v1831_v47  ;;  %2459 = vmatpush.bf16.msra.mxu3 %v6696_v53  ;;  %v6756_v53 = vor.u32 %v8365_v52, %v6755_v51  ;;  %v8375_v51 = vld [vmem:[#allocation7 + $0xc4] sm:$0xf0]  ;;  %v8350_v52 = vld [vmem:[#allocation7 + $0x4] sm:$0xf] }
 0x15a   :  { %2451 = vmatpush.bf16.msra.mxu2 %v6584_v2  ;;  %2677 = vmatpush.bf16.msrb.mxu0 %v6756_v53 }
 0x15c   :  { %2460 = vmatpush.bf16.msra.mxu3 %v6688_v59  ;;  %v6749_v59 = vld [vmem:[#allocation7 + $0x68] sm:$0xf0] }
 0x15d   :  { %v6752_v63 = vor.u32 %v8362_v56, %v6749_v59  ;;  %v6787_v56 = vld [vmem:[#allocation7 + $0xb0] sm:$0xf]  ;;  %v8372_v59 = vld [vmem:[#allocation7 + $0xb4] sm:$0xf] }
 0x15e   :  { %2452 = vmatpush.bf16.msra.mxu2 %v6576_v34 }
 0x160   :  { %2461 = vmatpush.bf16.msra.mxu3 %v6680_v4 }
 0x164   :  { %2462 = vmatpush.bf16.msra.mxu3 %v6672_v8  ;;  %v8358_v8 = vld [vmem:[#allocation7 + $0x44] sm:$0xf] }
 0x165   :  { %v1856_v43 = vpop.f32.mrf.mxu0 }
 0x166   :  { %v1857_v57 = vadd.f32 %v1856_v43, %v1843_v0  ;;  %v1870_v5 = vpop.f32.mrf.mxu1  ;;  %v8364_v0 = vld [vmem:[#allocation7 + $0x74] sm:$0xf] }
 0x167   :  { %v1871_v19 = vadd.f32 %v1870_v5, %v406_v13 }
 0x168   :  { %v1961_v60 = vmax.f32 %v1857_v57, 0.0  ;;  %2463 = vmatpush.bf16.msra.mxu3 %v6664_v14  ;;  %v6819_v14 = vld [vmem:[#allocation7 + $0xf0] sm:$0xf] }
 0x16c   :  { %2464 = vmatpush.bf16.msra.mxu3 %v6656_v16  ;;  %v8356_v16 = vld [vmem:[#allocation7 + $0x34] sm:$0xf] }
 0x16d   :  { %v1858_v54 = vpop.f32.mrf.mxu0  ;;  %v1884_v9 = vpop.f32.mrf.mxu2 }
 0x16e   :  { %v1859_v58 = vadd.f32 %v1858_v54, %v1845_v17  ;;  %v1898_v10 = vpop.f32.mrf.mxu3  ;;  %v1872_v18 = vpop.f32.mrf.mxu1  ;;  %v1885_v24 = vadd.f32 %v1884_v9, %v1871_v19  ;;  %v6757_v17 = vld [vmem:[#allocation7 + $0x78] sm:$0xf0]  ;;  %v6747_v54 = vld [vmem:[#allocation7 + $0x60] sm:$0xf]  ;;  %v6733_v9 = vld [vmem:[#allocation7 + $0x48] sm:$0xf0]  ;;  %v6820_v19 = vor.u32 %v8381_v23, %v6819_v14 }
 0x16f   :  { %v1873_v2 = vadd.f32 %v1872_v18, %v406_v13  ;;  %v6760_v57 = vor.u32 %v8364_v0, %v6757_v17  ;;  %v6736_v62 = vor.u32 %v8358_v8, %v6733_v9  ;;  %v8357_v13 = vld [vmem:[#allocation7 + $0x34] sm:$0xf0]  ;;  %v6725_v18 = vld [vmem:[#allocation7 + $0x38] sm:$0xf0]  ;;  %v6701_v0 = vld [vmem:[#allocation7 + $0x8] sm:$0xf0] }
 0x170   :  { %v1965_v61 = vmax.f32 %v1859_v58, 0.0  ;;  %2465 = vmatpush.bf16.msra.mxu3 %v6648_v41  ;;  %v1899_v29 = vadd.f32 %v1898_v10, %v1885_v24  ;;  %v6748_v58 = vor.u32 %v8363_v55, %v6747_v54  ;;  %v6732_v10 = vor.u32 %v8359_v7, %v6731_v6  ;;  %2691 = vmatpush.bf16.msrb.mxu1 %v6820_v19  ;;  %v6715_v24 = vld [vmem:[#allocation7 + $0x20] sm:$0xf]  ;;  %v8379_v41 = vld [vmem:[#allocation7 + $0xe4] sm:$0xf0] }
 0x171   :  { %v6724_v15 = vor.u32 %v8357_v13, %v6723_v12  ;;  %v6704_v17 = vor.u32 %v8350_v52, %v6701_v0  ;;  %v6797_v54 = vld [vmem:[#allocation7 + $0xc8] sm:$0xf0]  ;;  %v8369_v12 = vld [vmem:[#allocation7 + $0x94] sm:$0xf0]  ;;  %v8368_v13 = vld [vmem:[#allocation7 + $0x94] sm:$0xf] }
 0x172   :  { %v1969_v3 = vpack.c.bf16 %v1965_v61, %v1961_v60  ;;  %v6739_v60 = vld [vmem:[#allocation7 + $0x50] sm:$0xf]  ;;  %v8361_v61 = vld [vmem:[#allocation7 + $0x54] sm:$0xf0]  ;;  %2678 = vmatpush.bf16.msrb.mxu0 %v6748_v58  ;;  %v6781_v6 = vld [vmem:[#allocation7 + $0xa8] sm:$0xf0] }
 0x173   :  { %v6740_v4 = vor.u32 %v8361_v61, %v6739_v60  ;;  %v8373_v58 = vld [vmem:[#allocation7 + $0xb4] sm:$0xf0]  ;;  %v6789_v61 = vld [vmem:[#allocation7 + $0xb8] sm:$0xf0]  ;;  %v8367_v19 = vld [vmem:[#allocation7 + $0x84] sm:$0xf0] }
 0x174   :  { %2397 = vmatmul.bf16.vlgmr.msrb.gmra.mxu2 %v1969_v3  ;;  %2466 = vmatpush.bf16.msra.mxu3 %v6640_v30  ;;  %v6717_v30 = vld [vmem:[#allocation7 + $0x28] sm:$0xf0]  ;;  %v6788_v60 = vor.u32 %v8373_v58, %v6787_v56 }
 0x175   :  { %v1886_v37 = vpop.f32.mrf.mxu2  ;;  %2705 = vmatpush.bf16.msrb.mxu2 %v6760_v57  ;;  %v8374_v57 = vld [vmem:[#allocation7 + $0xc4] sm:$0xf]  ;;  %v6883_v58 = vld [vmem:[%s9443_s8 + $0x70] sm:$0xf] }
 0x176   :  { %v1900_v25 = vpop.f32.mrf.mxu3  ;;  %v1887_v31 = vadd.f32 %v1886_v37, %v1873_v2  ;;  %2679 = vmatpush.bf16.msrb.mxu0 %v6740_v4  ;;  %v6728_v37 = vor.u32 %v8356_v16, %v6725_v18  ;;  %v8355_v2 = vld [vmem:[#allocation7 + $0x24] sm:$0xf0]  ;;  %v6800_v55 = vor.u32 %v8374_v57, %v6797_v54  ;;  %v8370_v4 = vld [vmem:[#allocation7 + $0xa4] sm:$0xf]  ;;  %v2035_v16 = vld [vmem:[#allocation6] sm:$0x3] }
 0x177   :  { %v6784_v9 = vor.u32 %v8370_v4, %v6781_v6  ;;  %v6763_v18 = vld [vmem:[#allocation7 + $0x80] sm:$0xf]  ;;  %v8395_v4 = vld [vmem:[%s9443_s8 + $0x64] sm:$0xf0] }
 0x178   :  { %v1901_v34 = vadd.f32 %v1900_v25, %v1887_v31  ;;  %v6811_v25 = vld [vmem:[#allocation7 + $0xe0] sm:$0xf]  ;;  %v8378_v31 = vld [vmem:[#allocation7 + $0xe4] sm:$0xf]  ;;  %v6764_v20 = vor.u32 %v8367_v19, %v6763_v18  ;;  %v6861_v19 = vld [vmem:[%s9443_s8 + $0x48] sm:$0xf0] }
 0x179   :  { %2706 = vmatpush.bf16.msrb.mxu2 %v6752_v63  ;;  %v6792_v63 = vor.u32 %v8372_v59, %v6789_v61  ;;  %v8397_v59 = vld [vmem:[%s9443_s8 + $0x74] sm:$0xf0]  ;;  %v8390_v18 = vld [vmem:[%s9443_s8 + $0x44] sm:$0xf] }
 0x17a   :  { %2680 = vmatpush.bf16.msrb.mxu0 %v6732_v10  ;;  %v6884_v61 = vor.u32 %v8397_v59, %v6883_v58 }
 0x17e   :  { %2681 = vmatpush.bf16.msrb.mxu0 %v6724_v15  ;;  %v6773_v15 = vld [vmem:[#allocation7 + $0x98] sm:$0xf0] }
 0x17f   :  { %v6776_v23 = vor.u32 %v8368_v13, %v6773_v15  ;;  %v6869_v13 = vld [vmem:[%s9443_s8 + $0x58] sm:$0xf0]  ;;  %v6859_v15 = vld [vmem:[%s9443_s8 + $0x40] sm:$0xf] }
 0x184   :  { %2453 = vmatmul.bf16.vlgmr.msra.gmra.mxu2 %v1969_v3  ;;  %v6741_v3 = vld [vmem:[#allocation7 + $0x58] sm:$0xf0] }
 0x185   :  { %v1912_v26 = vpop.f32.mrf.mxu0  ;;  %v6744_v5 = vor.u32 %v8360_v1, %v6741_v3  ;;  %v6779_v1 = vld [vmem:[#allocation7 + $0xa0] sm:$0xf]  ;;  %v8371_v3 = vld [vmem:[#allocation7 + $0xa4] sm:$0xf0] }
 0x186   :  { %v1926_v28 = vpop.f32.mrf.mxu1  ;;  %v1913_v32 = vadd.f32 %v1912_v26, %v1899_v29  ;;  %v6716_v26 = vor.u32 %v8355_v2, %v6715_v24  ;;  %v6720_v29 = vor.u32 %v8354_v27, %v6717_v30  ;;  %v2037_v24 = vperm.slane %v2035_v16, 0 }
 0x187   :  { %2707 = vmatpush.bf16.msrb.mxu2 %v6744_v5  ;;  %v6780_v5 = vor.u32 %v8371_v3, %v6779_v1  ;;  %v6875_v3 = vld [vmem:[%s9443_s8 + $0x60] sm:$0xf] }
 0x188   :  { %v1927_v36 = vadd.f32 %v1926_v28, %v1913_v32  ;;  %v6812_v28 = vor.u32 %v8379_v41, %v6811_v25  ;;  %v6813_v32 = vld [vmem:[#allocation7 + $0xe8] sm:$0xf0]  ;;  %2682 = vmatpush.bf16.msrb.mxu0 %v6716_v26  ;;  %v6876_v6 = vor.u32 %v8395_v4, %v6875_v3  ;;  %v8424_v4 = vld [vmem:[#allocation12 + $0xcc] sm:$0xf0] }
 0x18a   :  { %2692 = vmatpush.bf16.msrb.mxu1 %v6812_v28 }
 0x18b   :  { %2708 = vmatpush.bf16.msrb.mxu2 %v6736_v62  ;;  %v6771_v62 = vld [vmem:[#allocation7 + $0x90] sm:$0xf] }
 0x18c   :  { %v6772_v14 = vor.u32 %v8369_v12, %v6771_v62  ;;  %v8392_v62 = vld [vmem:[%s9443_s8 + $0x54] sm:$0xf] }
 0x18d   :  { %v1940_v33 = vpop.f32.mrf.mxu2  ;;  %v1914_v35 = vpop.f32.mrf.mxu0 }
 0x18e   :  { %v1954_v22 = vpop.f32.mrf.mxu3  ;;  %v1915_v38 = vadd.f32 %v1914_v35, %v1901_v34  ;;  %v1941_v39 = vadd.f32 %v1940_v33, %v1927_v36  ;;  %v1928_v40 = vpop.f32.mrf.mxu1  ;;  %v6816_v33 = vor.u32 %v8378_v31, %v6813_v32  ;;  %v6707_v34 = vld [vmem:[#allocation7 + $0x10] sm:$0xf] }
 0x18f   :  { %2709 = vmatpush.bf16.msrb.mxu2 %v6728_v37  ;;  %v6803_v35 = vld [vmem:[#allocation7 + $0xd0] sm:$0xf]  ;;  %v8366_v37 = vld [vmem:[#allocation7 + $0x84] sm:$0xf] }
 0x190   :  { %v1929_v43 = vadd.f32 %v1928_v40, %v1915_v38  ;;  %v1955_v45 = vadd.f32 %v1954_v22, %v1941_v39  ;;  %v8353_v22 = vld [vmem:[#allocation7 + $0x14] sm:$0xf0]  ;;  %v8352_v39 = vld [vmem:[#allocation7 + $0x14] sm:$0xf]  ;;  %v6709_v40 = vld [vmem:[#allocation7 + $0x18] sm:$0xf0] }
 0x191   :  { %v6708_v36 = vor.u32 %v8353_v22, %v6707_v34  ;;  %v8377_v38 = vld [vmem:[#allocation7 + $0xd4] sm:$0xf0] }
 0x192   :  { %v1962_v49 = vmax.f32 %v1955_v45, 0.0  ;;  %v8376_v45 = vld [vmem:[#allocation7 + $0xd4] sm:$0xf] }
 0x193   :  { %2710 = vmatpush.bf16.msrb.mxu2 %v6720_v29  ;;  %2683 = vmatpush.bf16.msrb.mxu0 %v6708_v36 }
 0x195   :  { %v1942_v44 = vpop.f32.mrf.mxu2 }
 0x196   :  { %v1943_v46 = vadd.f32 %v1942_v44, %v1929_v43  ;;  %v1956_v47 = vpop.f32.mrf.mxu3  ;;  %v6804_v43 = vor.u32 %v8377_v38, %v6803_v35  ;;  %v6712_v44 = vor.u32 %v8352_v39, %v6709_v40 }
 0x198   :  { %v1957_v48 = vadd.f32 %v1956_v47, %v1943_v46  ;;  %v6805_v46 = vld [vmem:[#allocation7 + $0xd8] sm:$0xf0]  ;;  %2693 = vmatpush.bf16.msrb.mxu1 %v6804_v43  ;;  %2711 = vmatpush.bf16.msrb.mxu2 %v6712_v44  ;;  %v2038_v43 = vperm.slane %v2035_v16, 1 }
 0x199   :  { %v6808_v47 = vor.u32 %v8376_v45, %v6805_v46 }
 0x19a   :  { %v1966_v50 = vmax.f32 %v1957_v48, 0.0  ;;  %v6699_v48 = vld [vmem:[#allocation7] sm:$0xf] }
 0x19c   :  { %v1970_v11 = vpack.c.bf16 %v1966_v50, %v1962_v49  ;;  %v8351_v49 = vld [vmem:[#allocation7 + $0x4] sm:$0xf0]  ;;  %v6795_v50 = vld [vmem:[#allocation7 + $0xc0] sm:$0xf]  ;;  %2712 = vmatpush.bf16.msrb.mxu2 %v6704_v17 }
 0x19d   :  { %v6796_v53 = vor.u32 %v8375_v51, %v6795_v50 }
 0x19e   :  { %2411 = vmatmul.bf16.vlgmr.msrb.gmra.mxu3 %v1970_v11 }
 0x19f   :  { %2719 = vmatpush.bf16.msrb.mxu3 %v6824_v21  ;;  %2694 = vmatpush.bf16.msrb.mxu1 %v6796_v53  ;;  %v6768_v21 = vor.u32 %v8366_v37, %v6765_v42  ;;  %v6864_v37 = vor.u32 %v8390_v18, %v6861_v19  ;;  %v8389_v42 = vld [vmem:[%s9443_s8 + $0x34] sm:$0xf0] }
 0x1a0   :  { %v8420_v18 = vld [vmem:[#allocation12 + $0xac] sm:$0xf0] }
 0x1a3   :  { %2720 = vmatpush.bf16.msrb.mxu3 %v6816_v33  ;;  %2695 = vmatpush.bf16.msrb.mxu1 %v6788_v60  ;;  %v8396_v60 = vld [vmem:[%s9443_s8 + $0x74] sm:$0xf] }
 0x1a5   :  { %v2370_v7 = vpop.f32.mrf.mxu0 }
 0x1a6   :  { %v2371_v27 = vadd.f32 %v2370_v7, %v2037_v24  ;;  %v6877_v7 = vld [vmem:[%s9443_s8 + $0x68] sm:$0xf0] }
 0x1a7   :  { %2721 = vmatpush.bf16.msrb.mxu3 %v6808_v47  ;;  %2696 = vmatpush.bf16.msrb.mxu1 %v6780_v5  ;;  %v8394_v5 = vld [vmem:[%s9443_s8 + $0x64] sm:$0xf] }
 0x1ab   :  { %2722 = vmatpush.bf16.msrb.mxu3 %v6800_v55  ;;  %2697 = vmatpush.bf16.msrb.mxu1 %v6772_v14  ;;  %v6872_v14 = vor.u32 %v8392_v62, %v6869_v13  ;;  %v6989_v62 = vld [vmem:[#allocation12 + $0xd0] sm:$0xf0] }
 0x1ad   :  { %v2372_v2 = vpop.f32.mrf.mxu0 }
 0x1ae   :  { %2467 = vmatmul.bf16.vlgmr.msra.gmra.mxu3 %v1970_v11  ;;  %v6700_v11 = vor.u32 %v8351_v49, %v6699_v48  ;;  %v2373_v30 = vadd.f32 %v2372_v2, %v2037_v24  ;;  %v6853_v2 = vld [vmem:[%s9443_s8 + $0x38] sm:$0xf0] }
 0x1af   :  { %2723 = vmatpush.bf16.msrb.mxu3 %v6792_v63  ;;  %2698 = vmatpush.bf16.msrb.mxu1 %v6764_v20  ;;  %v6885_v63 = vld [vmem:[%s9443_s8 + $0x78] sm:$0xf0]  ;;  %v6851_v20 = vld [vmem:[%s9443_s8 + $0x30] sm:$0xf] }
 0x1b0   :  { %2684 = vmatpush.bf16.msrb.mxu0 %v6700_v11  ;;  %v6888_v1 = vor.u32 %v8396_v60, %v6885_v63  ;;  %v6852_v24 = vor.u32 %v8389_v42, %v6851_v20  ;;  %v8458_v60 = vld [vmem:[#allocation12 + $0x1e4] sm:$0xf]  ;;  %v6987_v63 = vld [vmem:[#allocation12 + $0xc0] sm:$0xf]  ;;  %v8452_v42 = vld [vmem:[#allocation12 + $0x1ac] sm:$0xf0] }
 0x1b1   :  { %v7099_v20 = vld [vmem:[#allocation12 + $0x1a0] sm:$0xf] }
 0x1b3   :  { %2724 = vmatpush.bf16.msrb.mxu3 %v6784_v9  ;;  %2866 = vmatpush.bf16.msra.mxu1 %v6888_v1  ;;  %v6867_v9 = vld [vmem:[%s9443_s8 + $0x50] sm:$0xf] }
 0x1b4   :  { %v2384_v8 = vpop.f32.mrf.mxu1  ;;  %2852 = vmatpush.bf16.msra.mxu0 %v6884_v61  ;;  %v7133_v61 = vld [vmem:[#allocation12 + $0x1f0] sm:$0xf0] }
 0x1b5   :  { %v2385_v28 = vadd.f32 %v2384_v8, %v2371_v27  ;;  %v6880_v8 = vor.u32 %v8394_v5, %v6877_v7  ;;  %v7136_v3 = vor.u32 %v8458_v60, %v7133_v61  ;;  %v7115_v5 = vld [vmem:[#allocation12 + $0x1c0] sm:$0xf]  ;;  %v8408_v61 = vld [vmem:[#allocation12 + $0x4c] sm:$0xf0] }
 0x1b7   :  { %2725 = vmatpush.bf16.msrb.mxu3 %v6776_v23  ;;  %2867 = vmatpush.bf16.msra.mxu1 %v6880_v8  ;;  %v8391_v23 = vld [vmem:[%s9443_s8 + $0x44] sm:$0xf0]  ;;  %v6988_v8 = vor.u32 %v8424_v4, %v6987_v63 }
 0x1b8   :  { %2853 = vmatpush.bf16.msra.mxu0 %v6876_v6  ;;  %v6860_v16 = vor.u32 %v8391_v23, %v6859_v15  ;;  %v8456_v6 = vld [vmem:[#allocation12 + $0x1cc] sm:$0xf0]  ;;  %v7117_v23 = vld [vmem:[#allocation12 + $0x1d0] sm:$0xf0]  ;;  %v7051_v63 = vld [vmem:[#allocation12 + $0x140] sm:$0xf] }
 0x1bb   :  { %2726 = vmatpush.bf16.msrb.mxu3 %v6768_v21  ;;  %2868 = vmatpush.bf16.msra.mxu1 %v6872_v14  ;;  %v8388_v21 = vld [vmem:[%s9443_s8 + $0x34] sm:$0xf] }
 0x1bc   :  { %v2386_v25 = vpop.f32.mrf.mxu1 }
 0x1bd   :  { %v2387_v29 = vadd.f32 %v2386_v25, %v2373_v30  ;;  %v6856_v25 = vor.u32 %v8388_v21, %v6853_v2  ;;  %v8386_v30 = vld [vmem:[%s9443_s8 + $0x24] sm:$0xf]  ;;  %v8418_v21 = vld [vmem:[#allocation12 + $0xa4] sm:$0xf] }
 0x1bf   :  { %2869 = vmatpush.bf16.msra.mxu1 %v6864_v37 }
 0x1c3   :  { %2870 = vmatpush.bf16.msra.mxu1 %v6856_v25 }
 0x1c5   :  { %v2426_v32 = vpop.f32.mrf.mxu0 }
 0x1c6   :  { %v2440_v22 = vpop.f32.mrf.mxu1  ;;  %v2427_v47 = vadd.f32 %v2426_v32, %v2038_v43  ;;  %v6835_v32 = vld [vmem:[%s9443_s8 + $0x10] sm:$0xf] }
 0x1c8   :  { %v2441_v50 = vadd.f32 %v2440_v22, %v2427_v47 }
 0x1cd   :  { %v2428_v45 = vpop.f32.mrf.mxu0 }
 0x1ce   :  { %v2442_v48 = vpop.f32.mrf.mxu1  ;;  %v2429_v49 = vadd.f32 %v2428_v45, %v2038_v43  ;;  %v8383_v43 = vld [vmem:[%s9443_s8 + $0x4] sm:$0xf0] }
 0x1d0   :  { %v2443_v51 = vadd.f32 %v2442_v48, %v2429_v49 }
 0x1f7   :  { %v2398_v10 = vpop.f32.mrf.mxu2 }
 0x1f8   :  { %v2399_v31 = vadd.f32 %v2398_v10, %v2385_v28  ;;  %v8393_v10 = vld [vmem:[%s9443_s8 + $0x54] sm:$0xf0]  ;;  %v6845_v28 = vld [vmem:[%s9443_s8 + $0x28] sm:$0xf0] }
 0x1f9   :  { %v6868_v12 = vor.u32 %v8393_v10, %v6867_v9  ;;  %v7116_v9 = vor.u32 %v8456_v6, %v7115_v5  ;;  %v8422_v10 = vld [vmem:[#allocation12 + $0xc4] sm:$0xf]  ;;  %v6925_v6 = vld [vmem:[#allocation12 + $0x50] sm:$0xf0] }
 0x1fa   :  { %v6992_v15 = vor.u32 %v8422_v10, %v6989_v62  ;;  %v8406_v5 = vld [vmem:[#allocation12 + $0x44] sm:$0xf] }
 0x1fb   :  { %2854 = vmatpush.bf16.msra.mxu0 %v6868_v12  ;;  %v8454_v12 = vld [vmem:[#allocation12 + $0x1c4] sm:$0xf] }
 0x1fc   :  { %v7120_v37 = vor.u32 %v8454_v12, %v7117_v23  ;;  %v6928_v12 = vor.u32 %v8406_v5, %v6925_v6  ;;  %v6979_v6 = vld [vmem:[#allocation12 + $0xa8] sm:$0xf] }
 0x1ff   :  { %v2400_v26 = vpop.f32.mrf.mxu2  ;;  %2855 = vmatpush.bf16.msra.mxu0 %v6860_v16  ;;  %v6971_v16 = vld [vmem:[#allocation12 + $0xa0] sm:$0xf] }
 0x200   :  { %v2401_v33 = vadd.f32 %v2400_v26, %v2387_v29  ;;  %v6843_v26 = vld [vmem:[%s9443_s8 + $0x20] sm:$0xf]  ;;  %v6848_v29 = vor.u32 %v8386_v30, %v6845_v28  ;;  %v6972_v25 = vor.u32 %v8420_v18, %v6971_v16  ;;  %v7100_v30 = vor.u32 %v8452_v42, %v7099_v20  ;;  %v8436_v18 = vld [vmem:[#allocation12 + $0x12c] sm:$0xf0]  ;;  %v8434_v20 = vld [vmem:[#allocation12 + $0x124] sm:$0xf] }
 0x201   :  { %v7037_v42 = vld [vmem:[#allocation12 + $0x130] sm:$0xf0] }
 0x202   :  { %2871 = vmatpush.bf16.msra.mxu1 %v6848_v29  ;;  %v7101_v29 = vld [vmem:[#allocation12 + $0x1b0] sm:$0xf0] }
 0x203   :  { %2856 = vmatpush.bf16.msra.mxu0 %v6852_v24 }
 0x207   :  { %v2454_v38 = vpop.f32.mrf.mxu2 }
 0x208   :  { %v2455_v52 = vadd.f32 %v2454_v38, %v2441_v50 }
 0x20f   :  { %v2456_v11 = vpop.f32.mrf.mxu2 }
 0x210   :  { %v2457_v0 = vadd.f32 %v2456_v11, %v2443_v51 }
 0x221   :  { %v2412_v41 = vpop.f32.mrf.mxu3 }
 0x222   :  { %v2413_v34 = vadd.f32 %v2412_v41, %v2399_v31  ;;  %v8387_v41 = vld [vmem:[%s9443_s8 + $0x24] sm:$0xf0]  ;;  %v9266_v31 = vld [vmem:[#allocation9] sm:$0x3] }
 0x223   :  { %v6844_v27 = vor.u32 %v8387_v41, %v6843_v26  ;;  %v2513_v38 = vperm.slane %v9266_v31, 0  ;;  %v2514_v11 = vperm.slane %v9266_v31, 1  ;;  %v6973_v26 = vld [vmem:[#allocation12 + $0xb0] sm:$0xf0]  ;;  %v8450_v41 = vld [vmem:[#allocation12 + $0x1a4] sm:$0xf] }
 0x224   :  { %v2473_v39 = vmax.f32 %v2413_v34, 0.0  ;;  %v8384_v34 = vld [vmem:[%s9443_s8 + $0x14] sm:$0xf]  ;;  %v6976_v28 = vor.u32 %v8418_v21, %v6973_v26  ;;  %v6941_v31 = vld [vmem:[#allocation12 + $0x70] sm:$0xf0]  ;;  %v2744_v21 = vld [vmem:[%s9436_s1 + $0x8] sm:$0xff] }
 0x225   :  { %2857 = vmatpush.bf16.msra.mxu0 %v6844_v27 }
 0x229   :  { %v2414_v35 = vpop.f32.mrf.mxu3 }
 0x22a   :  { %v2415_v36 = vadd.f32 %v2414_v35, %v2401_v33  ;;  %v8385_v33 = vld [vmem:[%s9443_s8 + $0x14] sm:$0xf0] }
 0x22b   :  { %v6836_v35 = vor.u32 %v8385_v33, %v6835_v32  ;;  %v6955_v32 = vld [vmem:[#allocation12 + $0x80] sm:$0xf]  ;;  %v8416_v33 = vld [vmem:[#allocation12 + $0x8c] sm:$0xf0] }
 0x22c   :  { %v2475_v40 = vmax.f32 %v2415_v36, 0.0  ;;  %v6837_v36 = vld [vmem:[%s9443_s8 + $0x18] sm:$0xf0] }
 0x22d   :  { %2858 = vmatpush.bf16.msra.mxu0 %v6836_v35  ;;  %v8448_v35 = vld [vmem:[#allocation12 + $0x18c] sm:$0xf0] }
 0x22e   :  { %v2477_v44 = vpack.c.bf16 %v2475_v40, %v2473_v39  ;;  %v6840_v39 = vor.u32 %v8384_v34, %v6837_v36  ;;  %v6827_v40 = vld [vmem:[%s9443_s8] sm:$0xf]  ;;  %v7104_v34 = vor.u32 %v8450_v41, %v7101_v29  ;;  %v8414_v36 = vld [vmem:[#allocation12 + $0x84] sm:$0xf]  ;;  %v7040_v29 = vor.u32 %v8434_v20, %v7037_v42 }
 0x22f   :  { %v6828_v45 = vor.u32 %v8383_v43, %v6827_v40  ;;  %v6956_v43 = vor.u32 %v8416_v33, %v6955_v32  ;;  %v7019_v32 = vld [vmem:[#allocation12 + $0x100] sm:$0xf]  ;;  %v8449_v42 = vld [vmem:[#allocation12 + $0x194] sm:$0xf0] }
 0x230   :  { %2685 = vmatmul.bf16.vlgmr.msrb.gmra.mxu0 %v2477_v44  ;;  %2713 = vmatmul.bf16.vlgmr.msrb.gmra.mxu2 %v2477_v44  ;;  %v8382_v44 = vld [vmem:[%s9443_s8 + $0x4] sm:$0xf] }
 0x231   :  { %v2468_v46 = vpop.f32.mrf.mxu3  ;;  %2872 = vmatpush.bf16.msra.mxu1 %v6840_v39  ;;  %2859 = vmatpush.bf16.msra.mxu0 %v6828_v45  ;;  %v7085_v45 = vld [vmem:[#allocation12 + $0x190] sm:$0xf0] }
 0x232   :  { %v2469_v53 = vadd.f32 %v2468_v46, %v2455_v52  ;;  %v6829_v46 = vld [vmem:[%s9443_s8 + $0x8] sm:$0xf0]  ;;  %v7003_v52 = vld [vmem:[#allocation12 + $0xe0] sm:$0xf] }
 0x233   :  { %v6832_v47 = vor.u32 %v8382_v44, %v6829_v46  ;;  %v8446_v44 = vld [vmem:[#allocation12 + $0x184] sm:$0xf] }
 0x234   :  { %v2474_v54 = vmax.f32 %v2469_v53, 0.0  ;;  %v7131_v53 = vld [vmem:[#allocation12 + $0x1e0] sm:$0xf] }
 0x235   :  { %2873 = vmatpush.bf16.msra.mxu1 %v6832_v47 }
 0x239   :  { %v2470_v17 = vpop.f32.mrf.mxu3 }
 0x23a   :  { %v2471_v57 = vadd.f32 %v2470_v17, %v2457_v0  ;;  %v8428_v0 = vld [vmem:[#allocation12 + $0xec] sm:$0xf0] }
 0x23b   :  { %v7004_v17 = vor.u32 %v8428_v0, %v7003_v52  ;;  %v7067_v52 = vld [vmem:[#allocation12 + $0x160] sm:$0xf] }
 0x23c   :  { %v2476_v55 = vmax.f32 %v2471_v57, 0.0  ;;  %v8460_v57 = vld [vmem:[#allocation12 + $0x1ec] sm:$0xf0] }
 0x23d   :  { %v7132_v58 = vor.u32 %v8460_v57, %v7131_v53  ;;  %3280 = vmatpush.bf16.msra.mxu2 %v7004_v17  ;;  %v7088_v53 = vor.u32 %v8446_v44, %v7085_v45  ;;  %v8444_v17 = vld [vmem:[#allocation12 + $0x16c] sm:$0xf0]  ;;  %v8410_v57 = vld [vmem:[#allocation12 + $0x64] sm:$0xf] }
 0x23e   :  { %v2478_v56 = vpack.c.bf16 %v2476_v55, %v2474_v54  ;;  %v8426_v54 = vld [vmem:[#allocation12 + $0xe4] sm:$0xf]  ;;  %v7005_v55 = vld [vmem:[#allocation12 + $0xf0] sm:$0xf0]  ;;  %v6944_v60 = vor.u32 %v8410_v57, %v6941_v31  ;;  %v8459_v57 = vld [vmem:[#allocation12 + $0x1ec] sm:$0xf] }
 0x23f   :  { %v7008_v59 = vor.u32 %v8426_v54, %v7005_v55  ;;  %3294 = vmatpush.bf16.msra.mxu3 %v7132_v58  ;;  %v7069_v54 = vld [vmem:[#allocation12 + $0x170] sm:$0xf0]  ;;  %v6923_v58 = vld [vmem:[#allocation12 + $0x40] sm:$0xf]  ;;  %v7141_v31 = vld [vmem:[#allocation12 + $0x1f8] sm:$0xf0] }
 0x240   :  { %2699 = vmatmul.bf16.vlgmr.msrb.gmra.mxu1 %v2478_v56  ;;  %2727 = vmatmul.bf16.vlgmr.msrb.gmra.mxu3 %v2478_v56  ;;  %v6924_v10 = vor.u32 %v8408_v61, %v6923_v58  ;;  %v6997_v61 = vld [vmem:[#allocation12 + $0xd8] sm:$0xf0] }
 0x241   :  { %3308 = vmatpush.bf16.msrb.mxu0 %v7008_v59  ;;  %3322 = vmatpush.bf16.msrb.mxu1 %v7136_v3  ;;  %v7068_v59 = vor.u32 %v8444_v17, %v7067_v52 }
 0x242   :  { %3281 = vmatpush.bf16.msra.mxu2 %v6988_v8  ;;  %v7053_v8 = vld [vmem:[#allocation12 + $0x150] sm:$0xf0] }
 0x243   :  { %3295 = vmatpush.bf16.msra.mxu3 %v7116_v9  ;;  %v2743_v9 = vld [vmem:[%s9436_s1] sm:$0xff] }
 0x245   :  { %3309 = vmatpush.bf16.msrb.mxu0 %v6992_v15  ;;  %3323 = vmatpush.bf16.msrb.mxu1 %v7120_v37  ;;  %v7035_v15 = vld [vmem:[#allocation12 + $0x120] sm:$0xf]  ;;  %v6909_v37 = vld [vmem:[#allocation12 + $0x30] sm:$0xf0] }
 0x246   :  { %3282 = vmatpush.bf16.msra.mxu2 %v6972_v25  ;;  %v7036_v26 = vor.u32 %v8436_v18, %v7035_v15  ;;  %v8451_v15 = vld [vmem:[#allocation12 + $0x1ac] sm:$0xf]  ;;  %v6963_v18 = vld [vmem:[#allocation12 + $0x88] sm:$0xf] }
 0x247   :  { %3296 = vmatpush.bf16.msra.mxu3 %v7100_v30  ;;  %v8400_v30 = vld [vmem:[#allocation12 + $0xc] sm:$0xf0] }
 0x249   :  { %3310 = vmatpush.bf16.msrb.mxu0 %v6976_v28  ;;  %3324 = vmatpush.bf16.msrb.mxu1 %v7104_v34  ;;  %v8432_v34 = vld [vmem:[#allocation12 + $0x10c] sm:$0xf0] }
 0x24a   :  { %3283 = vmatpush.bf16.msra.mxu2 %v6956_v43  ;;  %v7020_v44 = vor.u32 %v8432_v34, %v7019_v32  ;;  %v7075_v32 = vld [vmem:[#allocation12 + $0x168] sm:$0xf]  ;;  %v8445_v34 = vld [vmem:[#allocation12 + $0x174] sm:$0xf0] }
 0x24d   :  { %3325 = vmatpush.bf16.msrb.mxu1 %v7088_v53 }
 0x2ad   :  { %v2686_v22 = vpop.f32.mrf.mxu0 }
 0x2ae   :  { %v2687_v48 = vadd.f32 %v2686_v22, %v2513_v38  ;;  %v7083_v22 = vld [vmem:[#allocation12 + $0x180] sm:$0xf] }
 0x2af   :  { %v7084_v47 = vor.u32 %v8448_v35, %v7083_v22  ;;  %v8398_v22 = vld [vmem:[#allocation12 + $0x4] sm:$0xf]  ;;  %v6893_v35 = vld [vmem:[#allocation12 + $0x10] sm:$0xf0] }
 0x2b0   :  { %v6896_v45 = vor.u32 %v8398_v22, %v6893_v35  ;;  %v8411_v22 = vld [vmem:[#allocation12 + $0x6c] sm:$0xf]  ;;  %v6949_v35 = vld [vmem:[#allocation12 + $0x78] sm:$0xf0] }
 0x2b1   :  { %3297 = vmatpush.bf16.msra.mxu3 %v7084_v47 }
 0x2b3   :  { %v2714_v49 = vpop.f32.mrf.mxu2 }
 0x2b4   :  { %v2715_v1 = vadd.f32 %v2714_v49, %v2514_v11  ;;  %v6939_v49 = vld [vmem:[#allocation12 + $0x60] sm:$0xf] }
 0x2b5   :  { %v2688_v56 = vpop.f32.mrf.mxu0  ;;  %3298 = vmatpush.bf16.msra.mxu3 %v7068_v59  ;;  %v8457_v59 = vld [vmem:[#allocation12 + $0x1d4] sm:$0xf0] }
 0x2b6   :  { %v2689_v13 = vadd.f32 %v2688_v56, %v2513_v38  ;;  %v6957_v38 = vld [vmem:[#allocation12 + $0x90] sm:$0xf0] }
 0x2bb   :  { %v2716_v27 = vpop.f32.mrf.mxu2 }
 0x2bc   :  { %v2717_v39 = vadd.f32 %v2716_v27, %v2514_v11  ;;  %v8442_v11 = vld [vmem:[#allocation12 + $0x164] sm:$0xf]  ;;  %v6891_v27 = vld [vmem:[#allocation12] sm:$0xf] }
 0x2bd   :  { %v2700_v50 = vpop.f32.mrf.mxu1  ;;  %v7072_v4 = vor.u32 %v8442_v11, %v7069_v54  ;;  %v7144_v11 = vor.u32 %v8459_v57, %v7141_v31  ;;  %v6995_v54 = vld [vmem:[#allocation12 + $0xc8] sm:$0xf] }
 0x2be   :  { %v9294_v51 = vadd.f32 %v2700_v50, %v2687_v48  ;;  %v6960_v48 = vor.u32 %v8414_v36, %v6957_v38  ;;  %v8412_v50 = vld [vmem:[#allocation12 + $0x6c] sm:$0xf0]  ;;  %v6892_v36 = vor.u32 %v8400_v30, %v6891_v27  ;;  %v8430_v38 = vld [vmem:[#allocation12 + $0x104] sm:$0xf]  ;;  %v7093_v27 = vld [vmem:[#allocation12 + $0x198] sm:$0xf0] }
 0x2bf   :  { %v6940_v56 = vor.u32 %v8412_v50, %v6939_v49  ;;  %3326 = vmatpush.bf16.msrb.mxu1 %v7072_v4  ;;  %v8429_v49 = vld [vmem:[#allocation12 + $0xf4] sm:$0xf0]  ;;  %v7139_v50 = vld [vmem:[#allocation12 + $0x1e8] sm:$0xf]  ;;  %v7125_v4 = vld [vmem:[#allocation12 + $0x1d8] sm:$0xf0] }
 0x2c0   :  { %2733 = vst [vmem:[%s9450_s15] sm:$0xff] %v9294_v51  ;;  %3311 = vmatpush.bf16.msrb.mxu0 %v6960_v48  ;;  %v7011_v48 = vld [vmem:[#allocation12 + $0xe8] sm:$0xf] }
 0x2c1   :  { %3284 = vmatpush.bf16.msra.mxu2 %v6940_v56  ;;  %v7012_v52 = vor.u32 %v8429_v49, %v7011_v48  ;;  %v7123_v56 = vld [vmem:[#allocation12 + $0x1c8] sm:$0xf] }
 0x2c2   :  { %v7043_v31 = vld [vmem:[#allocation12 + $0x128] sm:$0xf] }
 0x2c3   :  { %v2728_v7 = vpop.f32.mrf.mxu3 }
 0x2c4   :  { %v2729_v14 = vadd.f32 %v2728_v7, %v2715_v1  ;;  %v8440_v1 = vld [vmem:[#allocation12 + $0x14c] sm:$0xf0]  ;;  %v8438_v7 = vld [vmem:[#allocation12 + $0x144] sm:$0xf]  ;;  %3312 = vmatpush.bf16.msrb.mxu0 %v6944_v60  ;;  %v8423_v60 = vld [vmem:[#allocation12 + $0xcc] sm:$0xf] }
 0x2c5   :  { %v2702_v19 = vpop.f32.mrf.mxu1  ;;  %v7052_v62 = vor.u32 %v8440_v1, %v7051_v63  ;;  %v7056_v16 = vor.u32 %v8438_v7, %v7053_v8  ;;  %3285 = vmatpush.bf16.msra.mxu2 %v6924_v10  ;;  %v7124_v63 = vor.u32 %v8457_v59, %v7123_v56  ;;  %v7000_v1 = vor.u32 %v8423_v60, %v6997_v61  ;;  %v8421_v7 = vld [vmem:[#allocation12 + $0xb4] sm:$0xf0]  ;;  %v7107_v8 = vld [vmem:[#allocation12 + $0x1a8] sm:$0xf]  ;;  %v6917_v56 = vld [vmem:[#allocation12 + $0x38] sm:$0xf0] }
 0x2c6   :  { %2735 = vst [vmem:[%s9451_s16] sm:$0xff] %v2729_v14  ;;  %v2737_v24 = vmul.f32 0.5, %v2729_v14  ;;  %v9305_v2 = vadd.f32 %v2702_v19, %v2689_v13  ;;  %v6907_v13 = vld [vmem:[#allocation12 + $0x20] sm:$0xf]  ;;  %v8404_v14 = vld [vmem:[#allocation12 + $0x2c] sm:$0xf0] }
 0x2c7   :  { %v8402_v19 = vld [vmem:[#allocation12 + $0x24] sm:$0xf]  ;;  %3299 = vmatpush.bf16.msra.mxu3 %v7052_v62  ;;  %3327 = vmatpush.bf16.msrb.mxu1 %v7056_v16  ;;  %v8453_v10 = vld [vmem:[#allocation12 + $0x1b4] sm:$0xf0]  ;;  %v8419_v62 = vld [vmem:[#allocation12 + $0xac] sm:$0xf] }
 0x2c8   :  { %2734 = vst [vmem:[%s9450_s15 + $0x8] sm:$0xff] %v9305_v2  ;;  %v2739_v40 = vmul.f32 1.442695, %v2737_v24  ;;  %v6908_v24 = vor.u32 %v8404_v14, %v6907_v13  ;;  %3313 = vmatpush.bf16.msrb.mxu0 %v6928_v12  ;;  %v6912_v41 = vor.u32 %v8402_v19, %v6909_v37  ;;  %v6981_v12 = vld [vmem:[#allocation12 + $0xb8] sm:$0xf0]  ;;  %v7108_v13 = vor.u32 %v8453_v10, %v7107_v8 }
 0x2c9   :  { %v6984_v14 = vor.u32 %v8419_v62, %v6981_v12  ;;  %v8417_v19 = vld [vmem:[#allocation12 + $0x94] sm:$0xf0]  ;;  %v7091_v37 = vld [vmem:[#allocation12 + $0x188] sm:$0xf]  ;;  %v7045_v59 = vld [vmem:[#allocation12 + $0x138] sm:$0xf0] }
 0x2ca   :  { %8700 = vpow2.f32 %v2739_v40  ;;  %3286 = vmatpush.bf16.msra.mxu2 %v6908_v24  ;;  %v6964_v20 = vor.u32 %v8417_v19, %v6963_v18  ;;  %v6965_v24 = vld [vmem:[#allocation12 + $0x98] sm:$0xf0]  ;;  %v8431_v8 = vld [vmem:[#allocation12 + $0x10c] sm:$0xf] }
 0x2cb   :  { %v2730_v46 = vpop.f32.mrf.mxu3  ;;  %3300 = vmatpush.bf16.msra.mxu3 %v7036_v26  ;;  %3328 = vmatpush.bf16.msrb.mxu1 %v7040_v29  ;;  %v8413_v29 = vld [vmem:[#allocation12 + $0x74] sm:$0xf0] }
 0x2cc   :  { %v2731_v0 = vadd.f32 %v2730_v46, %v2717_v39  ;;  %v7021_v39 = vld [vmem:[#allocation12 + $0x110] sm:$0xf0]  ;;  %3314 = vmatpush.bf16.msrb.mxu0 %v6912_v41  ;;  %v8447_v41 = vld [vmem:[#allocation12 + $0x18c] sm:$0xf] }
 0x2cd   :  { %v7024_v47 = vor.u32 %v8430_v38, %v7021_v39  ;;  %v7096_v30 = vor.u32 %v8447_v41, %v7093_v27  ;;  %v6952_v38 = vor.u32 %v8411_v22, %v6949_v35  ;;  %v8443_v39 = vld [vmem:[#allocation12 + $0x16c] sm:$0xf]  ;;  %v7343_v41 = vld [vmem:[#allocation13 + $0x188] sm:$0xf]  ;;  %v8514_v27 = vld [vmem:[#allocation13 + $0x1a0] sm:$0xf0] }
 0x2ce   :  { %2736 = vst [vmem:[%s9451_s16 + $0x8] sm:$0xff] %v2731_v0  ;;  %v2738_v55 = vmul.f32 0.5, %v2731_v0  ;;  %3287 = vmatpush.bf16.msra.mxu2 %v6892_v36  ;;  %v8427_v0 = vld [vmem:[#allocation12 + $0xec] sm:$0xf]  ;;  %v7076_v36 = vor.u32 %v8445_v34, %v7075_v32  ;;  %v8682_v32 = vld [vmem:[#allocation13 + $0x6e0] sm:$0xf0] }
 0x2cf   :  { %3301 = vmatpush.bf16.msra.mxu3 %v7020_v44  ;;  %3329 = vmatpush.bf16.msrb.mxu1 %v7024_v47  ;;  %v8441_v47 = vld [vmem:[#allocation12 + $0x154] sm:$0xf0]  ;;  %v7791_v22 = vld [vmem:[#allocation13 + $0x508] sm:$0xf]  ;;  %v8626_v35 = vld [vmem:[#allocation13 + $0x520] sm:$0xf0] }
 0x2d0   :  { %v2741_v3 = vmul.f32 1.442695, %v2738_v55  ;;  %v8701_v23 = vpop.eup %8700  ;;  %3315 = vmatpush.bf16.msrb.mxu0 %v6896_v45  ;;  %v8425_v55 = vld [vmem:[#allocation12 + $0xd4] sm:$0xf0] }
 0x2d1   :  { %v2745_v25 = vmul.f32 %v8701_v23, %v2743_v9  ;;  %v6996_v58 = vor.u32 %v8425_v55, %v6995_v54  ;;  %v6980_v9 = vor.u32 %v8421_v7, %v6979_v6  ;;  %v7109_v23 = vld [vmem:[#allocation12 + $0x1b8] sm:$0xf0]  ;;  %v8409_v45 = vld [vmem:[#allocation12 + $0x54] sm:$0xf0]  ;;  %v8403_v54 = vld [vmem:[#allocation12 + $0x2c] sm:$0xf] }
 0x2d2   :  { %8702 = vpow2.f32 %v2741_v3  ;;  %3336 = vmatpush.bf16.msrb.mxu2 %v7012_v52  ;;  %v8455_v3 = vld [vmem:[#allocation12 + $0x1cc] sm:$0xf]  ;;  %v7112_v16 = vor.u32 %v8451_v15, %v7109_v23  ;;  %v6933_v52 = vld [vmem:[#allocation12 + $0x58] sm:$0xf0]  ;;  %v6920_v61 = vor.u32 %v8403_v54, %v6917_v56  ;;  %v7959_v54 = vld [vmem:[#allocation13 + $0x658] sm:$0xf] }
 0x2d3   :  { %v2747_v40 = vadd.f32 %v2745_v25, %v9294_v51  ;;  %v8461_v51 = vld [vmem:[#allocation12 + $0x1f4] sm:$0xf0]  ;;  %v7128_v5 = vor.u32 %v8455_v3, %v7125_v4  ;;  %v7092_v25 = vor.u32 %v8449_v42, %v7091_v37  ;;  %v7027_v3 = vld [vmem:[#allocation12 + $0x108] sm:$0xf]  ;;  %v8399_v6 = vld [vmem:[#allocation12 + $0xc] sm:$0xf] }
 0x2d4   :  { %v7140_v53 = vor.u32 %v8461_v51, %v7139_v50  ;;  %v8407_v50 = vld [vmem:[#allocation12 + $0x4c] sm:$0xf]  ;;  %v6901_v7 = vld [vmem:[#allocation12 + $0x18] sm:$0xf0]  ;;  %v8668_v56 = vld [vmem:[#allocation13 + $0x670] sm:$0xf0] }
 0x2d5   :  { %v8439_v51 = vld [vmem:[#allocation12 + $0x14c] sm:$0xf]  ;;  %v6904_v12 = vor.u32 %v8399_v6, %v6901_v7  ;;  %v7931_v6 = vld [vmem:[#allocation13 + $0x620] sm:$0xf] }
 0x2d6   :  { %3350 = vmatpush.bf16.msrb.mxu3 %v7140_v53  ;;  %3337 = vmatpush.bf16.msrb.mxu2 %v6996_v58  ;;  %v6915_v53 = vld [vmem:[#allocation12 + $0x28] sm:$0xf]  ;;  %v8435_v58 = vld [vmem:[#allocation12 + $0x12c] sm:$0xf] }
 0x2d7   :  { %v7048_v4 = vor.u32 %v8435_v58, %v7045_v59  ;;  %v7735_v58 = vld [vmem:[#allocation13 + $0x498] sm:$0xf]  ;;  %v8612_v59 = vld [vmem:[#allocation13 + $0x4b0] sm:$0xf0] }
 0x2d8   :  { %v8703_v28 = vpop.eup %8702  ;;  %v7736_v7 = vor.u32 %v8612_v59, %v7735_v58 }
 0x2d9   :  { %v2746_v33 = vmul.f32 %v8703_v28, %v2744_v21  ;;  %v8415_v21 = vld [vmem:[#allocation12 + $0x8c] sm:$0xf]  ;;  %v6947_v28 = vld [vmem:[#allocation12 + $0x68] sm:$0xf] }
 0x2da   :  { %3351 = vmatpush.bf16.msrb.mxu3 %v7124_v63  ;;  %3338 = vmatpush.bf16.msrb.mxu2 %v6980_v9  ;;  %v6968_v26 = vor.u32 %v8415_v21, %v6965_v24  ;;  %v6899_v63 = vld [vmem:[#allocation12 + $0x8] sm:$0xf]  ;;  %v7029_v9 = vld [vmem:[#allocation12 + $0x118] sm:$0xf0] }
 0x2db   :  { %v2748_v43 = vadd.f32 %v2746_v33, %v9305_v2  ;;  %v7013_v2 = vld [vmem:[#allocation12 + $0xf8] sm:$0xf0]  ;;  %v6948_v33 = vor.u32 %v8413_v29, %v6947_v28  ;;  %v7567_v21 = vld [vmem:[#allocation13 + $0x348] sm:$0xf] }
 0x2dc   :  { %v7016_v17 = vor.u32 %v8427_v0, %v7013_v2  ;;  %v6936_v0 = vor.u32 %v8407_v50, %v6933_v52  ;;  %v7061_v2 = vld [vmem:[#allocation12 + $0x158] sm:$0xf0]  ;;  %v8015_v29 = vld [vmem:[#allocation13 + $0x6c8] sm:$0xf]  ;;  %v8675_v50 = vld [vmem:[#allocation13 + $0x6a8] sm:$0xf0] }
 0x2dd   :  { %v2749_v46 = vpack.c.bf16 %v2748_v43, %v2747_v40  ;;  %v7077_v40 = vld [vmem:[#allocation12 + $0x178] sm:$0xf0]  ;;  %v6931_v43 = vld [vmem:[#allocation12 + $0x48] sm:$0xf]  ;;  %v7064_v57 = vor.u32 %v8439_v51, %v7061_v2  ;;  %v7763_v52 = vld [vmem:[#allocation13 + $0x4d0] sm:$0xf] }
 0x2de   :  { %3352 = vmatpush.bf16.msrb.mxu3 %v7108_v13  ;;  %3339 = vmatpush.bf16.msrb.mxu2 %v6964_v20  ;;  %v7080_v44 = vor.u32 %v8443_v39, %v7077_v40  ;;  %v6932_v48 = vor.u32 %v8409_v45, %v6931_v43  ;;  %v7032_v13 = vor.u32 %v8431_v8, %v7029_v9  ;;  %v7539_v40 = vld [vmem:[#allocation13 + $0x310] sm:$0xf]  ;;  %v8563_v43 = vld [vmem:[#allocation13 + $0x328] sm:$0xf0]  ;;  %v7511_v2 = vld [vmem:[#allocation13 + $0x2d8] sm:$0xf] }
 0x2df   :  { %2860 = vmatmul.bf16.vlgmr.msra.gmra.mxu0 %v2749_v46  ;;  %2874 = vmatmul.bf16.vlgmr.msra.gmra.mxu1 %v2749_v46  ;;  %v7059_v46 = vld [vmem:[#allocation12 + $0x148] sm:$0xf]  ;;  %v7315_v45 = vld [vmem:[#allocation13 + $0x150] sm:$0xf]  ;;  %v8619_v51 = vld [vmem:[#allocation13 + $0x4e8] sm:$0xf0] }
 0x2e0   :  { %3364 = vmatpush.bf16.msra.mxu0 %v7016_v17  ;;  %3378 = vmatpush.bf16.msra.mxu1 %v7144_v11  ;;  %v7060_v49 = vor.u32 %v8441_v47, %v7059_v46  ;;  %v8405_v17 = vld [vmem:[#allocation12 + $0x34] sm:$0xf0]  ;;  %v8507_v46 = vld [vmem:[#allocation13 + $0x168] sm:$0xf0]  ;;  %v8016_v47 = vor.u32 %v8682_v32, %v8015_v29  ;;  %v8661_v8 = vld [vmem:[#allocation13 + $0x638] sm:$0xf0] }
 0x2e1   :  { %v8437_v11 = vld [vmem:[#allocation12 + $0x134] sm:$0xf0]  ;;  %v6916_v55 = vor.u32 %v8405_v17, %v6915_v53  ;;  %v8556_v53 = vld [vmem:[#allocation13 + $0x2f0] sm:$0xf0]  ;;  %v7316_v17 = vor.u32 %v8507_v46, %v7315_v45  ;;  %v7707_v9 = vld [vmem:[#allocation13 + $0x460] sm:$0xf] }
 0x2e2   :  { %3353 = vmatpush.bf16.msrb.mxu3 %v7092_v25  ;;  %3340 = vmatpush.bf16.msrb.mxu2 %v6948_v33  ;;  %v7044_v60 = vor.u32 %v8437_v11, %v7043_v31  ;;  %v8500_v31 = vld [vmem:[#allocation13 + $0x130] sm:$0xf0]  ;;  %v7875_v29 = vld [vmem:[#allocation13 + $0x5b0] sm:$0xf]  ;;  %v8647_v32 = vld [vmem:[#allocation13 + $0x5c8] sm:$0xf0] }
 0x2e3   :  { %v8640_v45 = vld [vmem:[#allocation13 + $0x590] sm:$0xf0] }
 0x2e4   :  { %3365 = vmatpush.bf16.msra.mxu0 %v7000_v1  ;;  %3379 = vmatpush.bf16.msra.mxu1 %v7128_v5  ;;  %v8401_v1 = vld [vmem:[#allocation12 + $0x14] sm:$0xf0] }
 0x2e5   :  { %v8433_v5 = vld [vmem:[#allocation12 + $0x114] sm:$0xf0]  ;;  %v6900_v10 = vor.u32 %v8401_v1, %v6899_v63  ;;  %v8549_v63 = vld [vmem:[#allocation13 + $0x2b8] sm:$0xf0] }
 0x2e6   :  { %3354 = vmatpush.bf16.msrb.mxu3 %v7076_v36  ;;  %3341 = vmatpush.bf16.msrb.mxu2 %v6932_v48  ;;  %v7028_v62 = vor.u32 %v8433_v5, %v7027_v3  ;;  %v7987_v48 = vld [vmem:[#allocation13 + $0x690] sm:$0xf]  ;;  %v7259_v3 = vld [vmem:[#allocation13 + $0xe0] sm:$0xf]  ;;  %v7960_v5 = vor.u32 %v8668_v56, %v7959_v54 }
 0x2e7   :  { %v7988_v11 = vor.u32 %v8675_v50, %v7987_v48  ;;  %v8465_v50 = vld [vmem:[#allocation13 + $0x18] sm:$0xf0]  ;;  %v7541_v54 = vld [vmem:[#allocation13 + $0x32c] sm:$0xf0] }
 0x2e8   :  { %3366 = vmatpush.bf16.msra.mxu0 %v6984_v14  ;;  %3380 = vmatpush.bf16.msra.mxu1 %v7112_v16  ;;  %v2766_v14 = vld [vmem:[#allocation10] sm:$0x3]  ;;  %v7317_v56 = vld [vmem:[#allocation13 + $0x16c] sm:$0xf0] }
 0x2e9   :  { %v2768_v16 = vperm.slane %v2766_v14, 0  ;;  %v2769_v18 = vperm.slane %v2766_v14, 1 }
 0x2ea   :  { %3355 = vmatpush.bf16.msrb.mxu3 %v7060_v49  ;;  %3342 = vmatpush.bf16.msrb.mxu2 %v6916_v55  ;;  %v7792_v49 = vor.u32 %v8626_v35, %v7791_v22  ;;  %v7764_v55 = vor.u32 %v8619_v51, %v7763_v52  ;;  %v8528_v35 = vld [vmem:[#allocation13 + $0x210] sm:$0xf0]  ;;  %v7569_v51 = vld [vmem:[#allocation13 + $0x364] sm:$0xf0] }
 0x2ec   :  { %3367 = vmatpush.bf16.msra.mxu0 %v6968_v26  ;;  %3381 = vmatpush.bf16.msra.mxu1 %v7096_v30  ;;  %v8570_v26 = vld [vmem:[#allocation13 + $0x360] sm:$0xf0] }
 0x2ed   :  { %v7568_v39 = vor.u32 %v8570_v26, %v7567_v21  ;;  %v8535_v26 = vld [vmem:[#allocation13 + $0x248] sm:$0xf0] }
 0x2ee   :  { %3356 = vmatpush.bf16.msrb.mxu3 %v7044_v60  ;;  %3343 = vmatpush.bf16.msrb.mxu2 %v6900_v10  ;;  %v7512_v60 = vor.u32 %v8556_v53, %v7511_v2  ;;  %v8605_v10 = vld [vmem:[#allocation13 + $0x478] sm:$0xf0]  ;;  %v7345_v2 = vld [vmem:[#allocation13 + $0x1a4] sm:$0xf0] }
 0x2f0   :  { %3368 = vmatpush.bf16.msra.mxu0 %v6952_v38  ;;  %3382 = vmatpush.bf16.msra.mxu1 %v7080_v44  ;;  %v7344_v44 = vor.u32 %v8514_v27, %v7343_v41  ;;  %v7203_v41 = vld [vmem:[#allocation13 + $0x70] sm:$0xf]  ;;  %v8479_v27 = vld [vmem:[#allocation13 + $0x88] sm:$0xf0] }
 0x2f1   :  { %v7204_v22 = vor.u32 %v8479_v27, %v7203_v41  ;;  %v7429_v41 = vld [vmem:[#allocation13 + $0x24c] sm:$0xf0] }
 0x2f2   :  { %3357 = vmatpush.bf16.msrb.mxu3 %v7028_v62 }
 0x2f4   :  { %3369 = vmatpush.bf16.msra.mxu0 %v6936_v0  ;;  %3383 = vmatpush.bf16.msra.mxu1 %v7064_v57  ;;  %v7540_v0 = vor.u32 %v8563_v43, %v7539_v40  ;;  %v7287_v57 = vld [vmem:[#allocation13 + $0x118] sm:$0xf]  ;;  %v8472_v40 = vld [vmem:[#allocation13 + $0x50] sm:$0xf0]  ;;  %v7876_v43 = vor.u32 %v8647_v32, %v7875_v29  ;;  %v7595_v29 = vld [vmem:[#allocation13 + $0x380] sm:$0xf] }
 0x2f5   :  { %v7288_v1 = vor.u32 %v8500_v31, %v7287_v57  ;;  %v8560_v31 = vld [vmem:[#allocation13 + $0x314] sm:$0xf] }
 0x2f6   :  { %v7544_v58 = vor.u32 %v8560_v31, %v7541_v54 }
 0x2f8   :  { %3370 = vmatpush.bf16.msra.mxu0 %v6920_v61  ;;  %3384 = vmatpush.bf16.msra.mxu1 %v7048_v4  ;;  %v7483_v61 = vld [vmem:[#allocation13 + $0x2a0] sm:$0xf]  ;;  %v8493_v4 = vld [vmem:[#allocation13 + $0xf8] sm:$0xf0] }
 0x2f9   :  { %v7484_v62 = vor.u32 %v8549_v63, %v7483_v61  ;;  %v7260_v14 = vor.u32 %v8493_v4, %v7259_v3  ;;  %v7513_v61 = vld [vmem:[#allocation13 + $0x2f4] sm:$0xf0]  ;;  %v7485_v3 = vld [vmem:[#allocation13 + $0x2bc] sm:$0xf0] }
 0x2fc   :  { %3371 = vmatpush.bf16.msra.mxu0 %v6904_v12  ;;  %3385 = vmatpush.bf16.msra.mxu1 %v7032_v13  ;;  %v7455_v12 = vld [vmem:[#allocation13 + $0x268] sm:$0xf]  ;;  %v8542_v13 = vld [vmem:[#allocation13 + $0x280] sm:$0xf0] }
 0x2fd   :  { %v7456_v21 = vor.u32 %v8542_v13, %v7455_v12  ;;  %v8633_v12 = vld [vmem:[#allocation13 + $0x558] sm:$0xf0] }
 0x35c   :  { %v2861_v15 = vpop.f32.mrf.mxu0  ;;  %v2875_v23 = vpop.f32.mrf.mxu1 }
 0x35d   :  { %v2862_v19 = vadd.f32 %v2861_v15, %v2768_v16  ;;  %v2876_v37 = vadd.f32 %v2875_v23, %v2769_v18  ;;  %v7231_v15 = vld [vmem:[#allocation13 + $0xa8] sm:$0xf]  ;;  %v8486_v23 = vld [vmem:[#allocation13 + $0xc0] sm:$0xf0] }
 0x35f   :  { %v2880_v30 = vmax.f32 %v2862_v19, 0.0  ;;  %v2881_v28 = vmax.f32 %v2876_v37, 0.0  ;;  %v7708_v19 = vor.u32 %v8605_v10, %v7707_v9  ;;  %v8654_v37 = vld [vmem:[#allocation13 + $0x600] sm:$0xf0]  ;;  %v7289_v9 = vld [vmem:[#allocation13 + $0x134] sm:$0xf0] }
 0x364   :  { %v2863_v20 = vpop.f32.mrf.mxu0  ;;  %v2877_v42 = vpop.f32.mrf.mxu1 }
 0x365   :  { %v2864_v24 = vadd.f32 %v2863_v20, %v2768_v16  ;;  %v2878_v25 = vadd.f32 %v2877_v42, %v2769_v18  ;;  %v7932_v16 = vor.u32 %v8661_v8, %v7931_v6  ;;  %v7903_v18 = vld [vmem:[#allocation13 + $0x5e8] sm:$0xf]  ;;  %v8598_v42 = vld [vmem:[#allocation13 + $0x440] sm:$0xf0]  ;;  %v8591_v6 = vld [vmem:[#allocation13 + $0x408] sm:$0xf0] }
 0x366   :  { %v7679_v20 = vld [vmem:[#allocation13 + $0x428] sm:$0xf]  ;;  %v8497_v8 = vld [vmem:[#allocation13 + $0x11c] sm:$0xf] }
 0x367   :  { %v2882_v33 = vmax.f32 %v2864_v24, 0.0  ;;  %v2883_v34 = vmax.f32 %v2878_v25, 0.0  ;;  %v7427_v24 = vld [vmem:[#allocation13 + $0x230] sm:$0xf]  ;;  %v7232_v25 = vor.u32 %v8486_v23, %v7231_v15  ;;  %v7292_v10 = vor.u32 %v8497_v8, %v7289_v9  ;;  %v7457_v15 = vld [vmem:[#allocation13 + $0x284] sm:$0xf0] }
 0x368   :  { %v8679_v23 = vld [vmem:[#allocation13 + $0x6cc] sm:$0xf]  ;;  %v7709_v8 = vld [vmem:[#allocation13 + $0x47c] sm:$0xf0] }
 0x369   :  { %v9324_v36 = vpack.c.bf16 %v2882_v33, %v2880_v30  ;;  %v9326_v38 = vpack.c.bf16 %v2883_v34, %v2881_v28  ;;  %v7904_v30 = vor.u32 %v8654_v37, %v7903_v18  ;;  %v7680_v28 = vor.u32 %v8598_v42, %v7679_v20  ;;  %v7399_v34 = vld [vmem:[#allocation13 + $0x1f8] sm:$0xf]  ;;  %v8017_v18 = vld [vmem:[#allocation13 + $0x6e4] sm:$0xf0]  ;;  %v8584_v37 = vld [vmem:[#allocation13 + $0x3d0] sm:$0xf0] }
 0x36a   :  { %v7428_v33 = vor.u32 %v8535_v26, %v7427_v24  ;;  %v7400_v46 = vor.u32 %v8528_v35, %v7399_v34  ;;  %v8020_v20 = vor.u32 %v8679_v23, %v8017_v18  ;;  %v7261_v24 = vld [vmem:[#allocation13 + $0xfc] sm:$0xf0]  ;;  %v8532_v26 = vld [vmem:[#allocation13 + $0x234] sm:$0xf]  ;;  %v8483_v34 = vld [vmem:[#allocation13 + $0xac] sm:$0xf] }
 0x36b   :  { %3288 = vmatmul.bf16.vlgmr.msra.gmra.mxu2 %v9324_v36  ;;  %3302 = vmatmul.bf16.vlgmr.msra.gmra.mxu3 %v9326_v38  ;;  %v7432_v27 = vor.u32 %v8532_v26, %v7429_v41  ;;  %v8637_v23 = vld [vmem:[#allocation13 + $0x57c] sm:$0xf] }
 0x36c   :  { %3316 = vmatmul.bf16.vlgmr.msrb.gmra.mxu0 %v9324_v36  ;;  %3330 = vmatmul.bf16.vlgmr.msrb.gmra.mxu1 %v9326_v38 }
 0x36d   :  { %4842 = vmatpush.bf16.msra.mxu3 %v7568_v39  ;;  %4828 = vmatpush.bf16.msra.mxu2 %v7344_v44  ;;  %v7175_v39 = vld [vmem:[#allocation13 + $0x38] sm:$0xf] }
 0x36e   :  { %4870 = vmatpush.bf16.msrb.mxu1 %v8016_v47  ;;  %4856 = vmatpush.bf16.msrb.mxu0 %v7792_v49  ;;  %v7847_v44 = vld [vmem:[#allocation13 + $0x578] sm:$0xf]  ;;  %v7371_v47 = vld [vmem:[#allocation13 + $0x1c0] sm:$0xf]  ;;  %v7176_v48 = vor.u32 %v8472_v40, %v7175_v39  ;;  %v8623_v40 = vld [vmem:[#allocation13 + $0x50c] sm:$0xf] }
 0x36f   :  { %v7147_v49 = vld [vmem:[#allocation13] sm:$0xf]  ;;  %v7848_v52 = vor.u32 %v8640_v45, %v7847_v44  ;;  %v8525_v45 = vld [vmem:[#allocation13 + $0x1fc] sm:$0xf] }
 0x371   :  { %4843 = vmatpush.bf16.msra.mxu3 %v7540_v0  ;;  %4829 = vmatpush.bf16.msra.mxu2 %v7316_v17  ;;  %v8511_v0 = vld [vmem:[#allocation13 + $0x18c] sm:$0xf]  ;;  %v7148_v17 = vor.u32 %v8465_v50, %v7147_v49  ;;  %v8476_v49 = vld [vmem:[#allocation13 + $0x74] sm:$0xf]  ;;  %v7205_v50 = vld [vmem:[#allocation13 + $0x8c] sm:$0xf0] }
 0x372   :  { %4871 = vmatpush.bf16.msrb.mxu1 %v7988_v11  ;;  %4857 = vmatpush.bf16.msrb.mxu0 %v7764_v55  ;;  %v7348_v11 = vor.u32 %v8511_v0, %v7345_v2  ;;  %v8504_v55 = vld [vmem:[#allocation13 + $0x154] sm:$0xf]  ;;  %v7765_v0 = vld [vmem:[#allocation13 + $0x4ec] sm:$0xf0] }
 0x373   :  { %v7320_v59 = vor.u32 %v8504_v55, %v7317_v56  ;;  %v8469_v55 = vld [vmem:[#allocation13 + $0x3c] sm:$0xf]  ;;  %v7177_v56 = vld [vmem:[#allocation13 + $0x54] sm:$0xf0] }
 0x375   :  { %4844 = vmatpush.bf16.msra.mxu3 %v7512_v60  ;;  %4830 = vmatpush.bf16.msra.mxu2 %v7288_v1  ;;  %v8553_v60 = vld [vmem:[#allocation13 + $0x2dc] sm:$0xf]  ;;  %v8546_v1 = vld [vmem:[#allocation13 + $0x2a4] sm:$0xf] }
 0x376   :  { %4872 = vmatpush.bf16.msrb.mxu1 %v7960_v5  ;;  %4858 = vmatpush.bf16.msrb.mxu0 %v7736_v7  ;;  %v7516_v63 = vor.u32 %v8553_v60, %v7513_v61  ;;  %v7488_v4 = vor.u32 %v8546_v1, %v7485_v3  ;;  %v7651_v5 = vld [vmem:[#allocation13 + $0x3f0] sm:$0xf]  ;;  %v7737_v60 = vld [vmem:[#allocation13 + $0x4b4] sm:$0xf0]  ;;  %v7905_v1 = vld [vmem:[#allocation13 + $0x604] sm:$0xf0] }
 0x377   :  { %v7652_v7 = vor.u32 %v8591_v6, %v7651_v5  ;;  %v7149_v5 = vld [vmem:[#allocation13 + $0x1c] sm:$0xf0]  ;;  %v8602_v6 = vld [vmem:[#allocation13 + $0x464] sm:$0xf] }
 0x378   :  { %v7712_v9 = vor.u32 %v8602_v6, %v7709_v8  ;;  %v7323_v6 = vld [vmem:[#allocation13 + $0x158] sm:$0xf] }
 0x379   :  { %4845 = vmatpush.bf16.msra.mxu3 %v7484_v62  ;;  %4831 = vmatpush.bf16.msra.mxu2 %v7260_v14  ;;  %v7819_v62 = vld [vmem:[#allocation13 + $0x540] sm:$0xf]  ;;  %v8539_v14 = vld [vmem:[#allocation13 + $0x26c] sm:$0xf] }
 0x37a   :  { %4873 = vmatpush.bf16.msrb.mxu1 %v7932_v16  ;;  %4859 = vmatpush.bf16.msrb.mxu0 %v7708_v19  ;;  %v7820_v13 = vor.u32 %v8633_v12, %v7819_v62  ;;  %v7460_v16 = vor.u32 %v8539_v14, %v7457_v15  ;;  %v7623_v19 = vld [vmem:[#allocation13 + $0x3b8] sm:$0xf]  ;;  %v7877_v62 = vld [vmem:[#allocation13 + $0x5cc] sm:$0xf0]  ;;  %v7681_v14 = vld [vmem:[#allocation13 + $0x444] sm:$0xf0] }
 0x37b   :  { %3344 = vmatmul.bf16.vlgmr.msrb.gmra.mxu2 %v9324_v36  ;;  %3358 = vmatmul.bf16.vlgmr.msrb.gmra.mxu3 %v9326_v38  ;;  %v7624_v42 = vor.u32 %v8584_v37, %v7623_v19  ;;  %v8588_v19 = vld [vmem:[#allocation13 + $0x3f4] sm:$0xf]  ;;  %v7653_v37 = vld [vmem:[#allocation13 + $0x40c] sm:$0xf0] }
 0x37c   :  { %3372 = vmatmul.bf16.vlgmr.msra.gmra.mxu0 %v9324_v36  ;;  %3386 = vmatmul.bf16.vlgmr.msra.gmra.mxu1 %v9326_v38  ;;  %v8521_v36 = vld [vmem:[#allocation13 + $0x1d8] sm:$0xf0]  ;;  %v8567_v38 = vld [vmem:[#allocation13 + $0x34c] sm:$0xf] }
 0x37d   :  { %4846 = vmatpush.bf16.msra.mxu3 %v7456_v21  ;;  %4832 = vmatpush.bf16.msra.mxu2 %v7232_v25  ;;  %v7372_v53 = vor.u32 %v8521_v36, %v7371_v47  ;;  %v7572_v57 = vor.u32 %v8567_v38, %v7569_v51  ;;  %v8490_v21 = vld [vmem:[#allocation13 + $0xe4] sm:$0xf]  ;;  %v8665_v47 = vld [vmem:[#allocation13 + $0x65c] sm:$0xf]  ;;  %v7208_v51 = vor.u32 %v8476_v49, %v7205_v50 }
 0x37e   :  { %4874 = vmatpush.bf16.msrb.mxu1 %v7904_v30  ;;  %4860 = vmatpush.bf16.msrb.mxu0 %v7680_v28  ;;  %v7264_v25 = vor.u32 %v8490_v21, %v7261_v24  ;;  %v8672_v30 = vld [vmem:[#allocation13 + $0x694] sm:$0xf]  ;;  %v7989_v28 = vld [vmem:[#allocation13 + $0x6ac] sm:$0xf0]  ;;  %v8630_v21 = vld [vmem:[#allocation13 + $0x544] sm:$0xf] }
 0x37f   :  { %v7992_v32 = vor.u32 %v8672_v30, %v7989_v28  ;;  %v7821_v24 = vld [vmem:[#allocation13 + $0x55c] sm:$0xf0]  ;;  %v7625_v30 = vld [vmem:[#allocation13 + $0x3d4] sm:$0xf0] }
 0x381   :  { %4847 = vmatpush.bf16.msra.mxu3 %v7428_v33  ;;  %4833 = vmatpush.bf16.msra.mxu2 %v7204_v22  ;;  %v8577_v33 = vld [vmem:[#allocation13 + $0x398] sm:$0xf0]  ;;  %v7233_v22 = vld [vmem:[#allocation13 + $0xc4] sm:$0xf0] }
 0x382   :  { %4875 = vmatpush.bf16.msrb.mxu1 %v7876_v43  ;;  %4861 = vmatpush.bf16.msrb.mxu0 %v7652_v7  ;;  %v7596_v35 = vor.u32 %v8577_v33, %v7595_v29  ;;  %v7236_v39 = vor.u32 %v8483_v34, %v7233_v22  ;;  %v7793_v43 = vld [vmem:[#allocation13 + $0x524] sm:$0xf0]  ;;  %v7597_v33 = vld [vmem:[#allocation13 + $0x39c] sm:$0xf0] }
 0x383   :  { %v7796_v44 = vor.u32 %v8623_v40, %v7793_v43 }
 0x385   :  { %4848 = vmatpush.bf16.msra.mxu3 %v7400_v46  ;;  %4834 = vmatpush.bf16.msra.mxu2 %v7176_v48  ;;  %v7401_v46 = vld [vmem:[#allocation13 + $0x214] sm:$0xf0] }
 0x386   :  { %4876 = vmatpush.bf16.msrb.mxu1 %v7848_v52  ;;  %4862 = vmatpush.bf16.msrb.mxu0 %v7624_v42  ;;  %v7404_v36 = vor.u32 %v8525_v45, %v7401_v46  ;;  %v7961_v48 = vld [vmem:[#allocation13 + $0x674] sm:$0xf0]  ;;  %v8616_v52 = vld [vmem:[#allocation13 + $0x4d4] sm:$0xf] }
 0x387   :  { %v7964_v38 = vor.u32 %v8665_v47, %v7961_v48  ;;  %v7768_v2 = vor.u32 %v8616_v52, %v7765_v0  ;;  %v9339_v42 = vld [vmem:[%s9446_s11] sm:$0xf]  ;;  %v7575_v48 = vld [vmem:[#allocation13 + $0x350] sm:$0xf] }
 0x388   :  { %v2953_v28 = vperm.slane %v9339_v42, 1  ;;  %v2952_v40 = vperm.slane %v9339_v42, 0 }
 0x389   :  { %4849 = vmatpush.bf16.msra.mxu3 %v7372_v53  ;;  %4835 = vmatpush.bf16.msra.mxu2 %v7148_v17  ;;  %v8518_v53 = vld [vmem:[#allocation13 + $0x1c4] sm:$0xf]  ;;  %v7373_v17 = vld [vmem:[#allocation13 + $0x1dc] sm:$0xf0] }
 0x38a   :  { %4877 = vmatpush.bf16.msrb.mxu1 %v7820_v13  ;;  %4863 = vmatpush.bf16.msrb.mxu0 %v7596_v35  ;;  %v7376_v31 = vor.u32 %v8518_v53, %v7373_v17  ;;  %v8595_v13 = vld [vmem:[#allocation13 + $0x42c] sm:$0xf] }
 0x38b   :  { %v7684_v15 = vor.u32 %v8595_v13, %v7681_v14  ;;  %v7491_v14 = vld [vmem:[#allocation13 + $0x2a8] sm:$0xf] }
 0x38d   :  { %4898 = vmatpush.bf16.msrb.mxu3 %v7572_v57  ;;  %4884 = vmatpush.bf16.msrb.mxu2 %v7348_v11  ;;  %v8658_v57 = vld [vmem:[#allocation13 + $0x624] sm:$0xf]  ;;  %v7933_v11 = vld [vmem:[#allocation13 + $0x63c] sm:$0xf0] }
 0x38e   :  { %4926 = vmatpush.bf16.msra.mxu1 %v8020_v20  ;;  %4912 = vmatpush.bf16.msra.mxu0 %v7796_v44  ;;  %v7936_v54 = vor.u32 %v8658_v57, %v7933_v11  ;;  %v7656_v20 = vor.u32 %v8588_v19, %v7653_v37  ;;  %v7547_v57 = vld [vmem:[#allocation13 + $0x318] sm:$0xf] }
 0x391   :  { %4899 = vmatpush.bf16.msrb.mxu3 %v7544_v58  ;;  %4885 = vmatpush.bf16.msrb.mxu2 %v7320_v59  ;;  %v8609_v58 = vld [vmem:[#allocation13 + $0x49c] sm:$0xf]  ;;  %v7180_v59 = vor.u32 %v8469_v55, %v7177_v56  ;;  %v7351_v56 = vld [vmem:[#allocation13 + $0x190] sm:$0xf] }
 0x392   :  { %4927 = vmatpush.bf16.msra.mxu1 %v7992_v32  ;;  %4913 = vmatpush.bf16.msra.mxu0 %v7768_v2  ;;  %v7740_v61 = vor.u32 %v8609_v58, %v7737_v60  ;;  %v8574_v32 = vld [vmem:[#allocation13 + $0x384] sm:$0xf]  ;;  %v8515_v58 = vld [vmem:[#allocation13 + $0x1a8] sm:$0xf0] }
 0x395   :  { %4900 = vmatpush.bf16.msrb.mxu3 %v7516_v63  ;;  %4886 = vmatpush.bf16.msrb.mxu2 %v7292_v10  ;;  %v8651_v63 = vld [vmem:[#allocation13 + $0x5ec] sm:$0xf]  ;;  %v8644_v10 = vld [vmem:[#allocation13 + $0x5b4] sm:$0xf] }
 0x396   :  { %4928 = vmatpush.bf16.msra.mxu1 %v7964_v38  ;;  %v7908_v3 = vor.u32 %v8651_v63, %v7905_v1  ;;  %4914 = vmatpush.bf16.msra.mxu0 %v7740_v61  ;;  %v7880_v12 = vor.u32 %v8644_v10, %v7877_v62  ;;  %v8571_v38 = vld [vmem:[#allocation13 + $0x368] sm:$0xf0]  ;;  %v7352_v1 = vor.u32 %v8515_v58, %v7351_v56  ;;  %v2954_v62 = vperm.slane %v9339_v42, 2 }
 0x397   :  { %v7576_v53 = vor.u32 %v8571_v38, %v7575_v48  ;;  %v8676_v48 = vld [vmem:[#allocation13 + $0x6b0] sm:$0xf0] }
 0x399   :  { %4901 = vmatpush.bf16.msrb.mxu3 %v7488_v4  ;;  %4887 = vmatpush.bf16.msrb.mxu2 %v7264_v25  ;;  %v8462_v4 = vld [vmem:[#allocation13 + $0x4] sm:$0xf]  ;;  %v7824_v25 = vor.u32 %v8630_v21, %v7821_v24 }
 0x39a   :  { %4929 = vmatpush.bf16.msra.mxu1 %v7936_v54  ;;  %v7152_v7 = vor.u32 %v8462_v4, %v7149_v5  ;;  %4915 = vmatpush.bf16.msra.mxu0 %v7712_v9  ;;  %v8557_v4 = vld [vmem:[#allocation13 + $0x2f8] sm:$0xf0] }
 0x39d   :  { %4902 = vmatpush.bf16.msrb.mxu3 %v7460_v16  ;;  %4888 = vmatpush.bf16.msrb.mxu2 %v7236_v39  ;;  %v7849_v16 = vld [vmem:[#allocation13 + $0x594] sm:$0xf0]  ;;  %v7600_v39 = vor.u32 %v8574_v32, %v7597_v33 }
 0x39e   :  { %4930 = vmatpush.bf16.msra.mxu1 %v7908_v3  ;;  %v7852_v18 = vor.u32 %v8637_v23, %v7849_v16  ;;  %4916 = vmatpush.bf16.msra.mxu0 %v7684_v15  ;;  %v7519_v3 = vld [vmem:[#allocation13 + $0x2e0] sm:$0xf]  ;;  %v8550_v15 = vld [vmem:[#allocation13 + $0x2c0] sm:$0xf0] }
 0x39f   :  { %v7295_v16 = vld [vmem:[#allocation13 + $0x120] sm:$0xf]  ;;  %v7492_v24 = vor.u32 %v8550_v15, %v7491_v14  ;;  %v8473_v15 = vld [vmem:[#allocation13 + $0x58] sm:$0xf0] }
 0x3a0   :  { %v7183_v14 = vld [vmem:[#allocation13 + $0x40] sm:$0xf] }
 0x3a1   :  { %4903 = vmatpush.bf16.msrb.mxu3 %v7432_v27  ;;  %4889 = vmatpush.bf16.msrb.mxu2 %v7208_v51  ;;  %v8581_v27 = vld [vmem:[#allocation13 + $0x3bc] sm:$0xf] }
 0x3a2   :  { %4931 = vmatpush.bf16.msra.mxu1 %v7880_v12  ;;  %4917 = vmatpush.bf16.msra.mxu0 %v7656_v20  ;;  %v7628_v29 = vor.u32 %v8581_v27, %v7625_v30  ;;  %v7520_v12 = vor.u32 %v8557_v4, %v7519_v3  ;;  %v8023_v27 = vld [vmem:[#allocation13 + $0x6d0] sm:$0xf]  ;;  %v8683_v30 = vld [vmem:[#allocation13 + $0x6e8] sm:$0xf0] }
 0x3a5   :  { %4904 = vmatpush.bf16.msrb.mxu3 %v7404_v36  ;;  %4890 = vmatpush.bf16.msrb.mxu2 %v7180_v59  ;;  %v2955_v59 = vperm.slane %v9339_v42, 3 }
 0x3a6   :  { %4932 = vmatpush.bf16.msra.mxu1 %v7852_v18  ;;  %4918 = vmatpush.bf16.msra.mxu0 %v7628_v29  ;;  %v8501_v18 = vld [vmem:[#allocation13 + $0x138] sm:$0xf0]  ;;  %v8494_v29 = vld [vmem:[#allocation13 + $0x100] sm:$0xf0] }
 0x3a7   :  { %v7296_v42 = vor.u32 %v8501_v18, %v7295_v16  ;;  %v8613_v16 = vld [vmem:[#allocation13 + $0x4b8] sm:$0xf0] }
 0x3a9   :  { %4905 = vmatpush.bf16.msrb.mxu3 %v7376_v31  ;;  %4891 = vmatpush.bf16.msrb.mxu2 %v7152_v7  ;;  %v8564_v31 = vld [vmem:[#allocation13 + $0x330] sm:$0xf0] }
 0x3aa   :  { %4933 = vmatpush.bf16.msra.mxu1 %v7824_v25  ;;  %4919 = vmatpush.bf16.msra.mxu0 %v7600_v39  ;;  %v7548_v63 = vor.u32 %v8564_v31, %v7547_v57  ;;  %v8508_v7 = vld [vmem:[#allocation13 + $0x170] sm:$0xf0]  ;;  %v7463_v25 = vld [vmem:[#allocation13 + $0x270] sm:$0xf]  ;;  %v7407_v31 = vld [vmem:[#allocation13 + $0x200] sm:$0xf] }
 0x3ab   :  { %v7324_v13 = vor.u32 %v8508_v7, %v7323_v6  ;;  %v7379_v6 = vld [vmem:[#allocation13 + $0x1c8] sm:$0xf]  ;;  %v8522_v7 = vld [vmem:[#allocation13 + $0x1e0] sm:$0xf0] }
 0x3ac   :  { %v7380_v18 = vor.u32 %v8522_v7, %v7379_v6  ;;  %v8025_v6 = vld [vmem:[#allocation13 + $0x6ec] sm:$0xf0] }
 0x3e9   :  { %v3317_v26 = vpop.f32.mrf.mxu0  ;;  %v3331_v41 = vpop.f32.mrf.mxu1 }
 0x3ea   :  { %v3318_v34 = vadd.f32 %v3317_v26, %v2953_v28 }
 0x3ec   :  { %v3332_v45 = vadd.f32 %v3331_v41, %v3318_v34  ;;  %v8543_v41 = vld [vmem:[#allocation13 + $0x288] sm:$0xf0] }
 0x3ed   :  { %v7464_v39 = vor.u32 %v8543_v41, %v7463_v25  ;;  %v7155_v41 = vld [vmem:[#allocation13 + $0x8] sm:$0xf] }
 0x3ee   :  { %v3289_v22 = vpop.f32.mrf.mxu2  ;;  %v3303_v35 = vpop.f32.mrf.mxu3  ;;  %v3393_v49 = vmax.f32 %v3332_v45, 0.0 }
 0x3ef   :  { %v3290_v47 = vadd.f32 %v3289_v22, %v2952_v40 }
 0x3f1   :  { %v3319_v43 = vpop.f32.mrf.mxu0  ;;  %v3333_v44 = vpop.f32.mrf.mxu1  ;;  %v3304_v0 = vadd.f32 %v3303_v35, %v3290_v47  ;;  %v8536_v47 = vld [vmem:[#allocation13 + $0x250] sm:$0xf0] }
 0x3f2   :  { %v3320_v46 = vadd.f32 %v3319_v43, %v2953_v28  ;;  %v7267_v28 = vld [vmem:[#allocation13 + $0xe8] sm:$0xf]  ;;  %v7435_v43 = vld [vmem:[#allocation13 + $0x238] sm:$0xf] }
 0x3f3   :  { %v3392_v60 = vmax.f32 %v3304_v0, 0.0 }
 0x3f4   :  { %v3334_v36 = vadd.f32 %v3333_v44, %v3320_v46  ;;  %v7268_v46 = vor.u32 %v8494_v29, %v7267_v28  ;;  %v8606_v28 = vld [vmem:[#allocation13 + $0x480] sm:$0xf0] }
 0x3f6   :  { %v3397_v50 = vmax.f32 %v3334_v36, 0.0  ;;  %v3291_v52 = vpop.f32.mrf.mxu2  ;;  %v3305_v51 = vpop.f32.mrf.mxu3  ;;  %v7995_v36 = vld [vmem:[#allocation13 + $0x698] sm:$0xf] }
 0x3f7   :  { %v3292_v2 = vadd.f32 %v3291_v52, %v2952_v40  ;;  %v8024_v40 = vor.u32 %v8683_v30, %v8023_v27  ;;  %v7799_v52 = vld [vmem:[#allocation13 + $0x510] sm:$0xf]  ;;  %v7996_v57 = vor.u32 %v8676_v48, %v7995_v36  ;;  %v8466_v27 = vld [vmem:[#allocation13 + $0x20] sm:$0xf0]  ;;  %v7715_v30 = vld [vmem:[#allocation13 + $0x468] sm:$0xf] }
 0x3f8   :  { %v9343_v17 = vpack.c.bf16 %v3397_v50, %v3393_v49  ;;  %v7239_v49 = vld [vmem:[#allocation13 + $0xb0] sm:$0xf]  ;;  %v8487_v50 = vld [vmem:[#allocation13 + $0xc8] sm:$0xf0] }
 0x3f9   :  { %v3306_v11 = vadd.f32 %v3305_v51, %v3292_v2  ;;  %v3373_v54 = vpop.f32.mrf.mxu0  ;;  %v3387_v55 = vpop.f32.mrf.mxu1  ;;  %v8627_v51 = vld [vmem:[#allocation13 + $0x528] sm:$0xf0]  ;;  %v7240_v58 = vor.u32 %v8487_v50, %v7239_v49  ;;  %v7325_v49 = vld [vmem:[#allocation13 + $0x174] sm:$0xf0] }
 0x3fa   :  { %4850 = vmatmul.bf16.vlgmr.msra.gmra.mxu3 %v9343_v17  ;;  %v3374_v8 = vadd.f32 %v3373_v54, %v2955_v59  ;;  %v7967_v54 = vld [vmem:[#allocation13 + $0x660] sm:$0xf]  ;;  %v8599_v36 = vld [vmem:[#allocation13 + $0x448] sm:$0xf0] }
 0x3fb   :  { %v3396_v61 = vmax.f32 %v3306_v11, 0.0  ;;  %4954 = vmatpush.bf16.msra.mxu3 %v7576_v53  ;;  %v7436_v53 = vor.u32 %v8536_v47, %v7435_v43  ;;  %v8529_v11 = vld [vmem:[#allocation13 + $0x218] sm:$0xf0]  ;;  %v8554_v43 = vld [vmem:[#allocation13 + $0x2e4] sm:$0xf] }
 0x3fc   :  { %v3388_v19 = vadd.f32 %v3387_v55, %v3374_v8  ;;  %v8669_v55 = vld [vmem:[#allocation13 + $0x678] sm:$0xf0]  ;;  %v7408_v3 = vor.u32 %v8529_v11, %v7407_v31  ;;  %v7939_v8 = vld [vmem:[#allocation13 + $0x628] sm:$0xf]  ;;  %v7687_v47 = vld [vmem:[#allocation13 + $0x430] sm:$0xf] }
 0x3fd   :  { %v9347_v5 = vpack.c.bf16 %v3396_v61, %v3392_v60  ;;  %v7211_v60 = vld [vmem:[#allocation13 + $0x78] sm:$0xf]  ;;  %v8480_v61 = vld [vmem:[#allocation13 + $0x90] sm:$0xf0]  ;;  %v7968_v4 = vor.u32 %v8669_v55, %v7967_v54  ;;  %v8498_v55 = vld [vmem:[#allocation13 + $0x124] sm:$0xf] }
 0x3fe   :  { %v3345_v9 = vpop.f32.mrf.mxu2  ;;  %v3359_v10 = vpop.f32.mrf.mxu3  ;;  %v3395_v32 = vmax.f32 %v3388_v19, 0.0  ;;  %v7659_v31 = vld [vmem:[#allocation13 + $0x3f8] sm:$0xf]  ;;  %v8592_v11 = vld [vmem:[#allocation13 + $0x410] sm:$0xf0] }
 0x3ff   :  { %4955 = vmatpush.bf16.msra.mxu3 %v7548_v63  ;;  %4836 = vmatmul.bf16.vlgmr.msra.gmra.mxu2 %v9347_v5  ;;  %v3346_v20 = vadd.f32 %v3345_v9, %v2954_v62  ;;  %v7771_v63 = vld [vmem:[#allocation13 + $0x4d8] sm:$0xf]  ;;  %v8662_v9 = vld [vmem:[#allocation13 + $0x640] sm:$0xf0] }
 0x400   :  { %4940 = vmatpush.bf16.msra.mxu2 %v7352_v1  ;;  %v8620_v1 = vld [vmem:[#allocation13 + $0x4f0] sm:$0xf0]  ;;  %v7940_v19 = vor.u32 %v8662_v9, %v7939_v8  ;;  %v7631_v8 = vld [vmem:[#allocation13 + $0x3c0] sm:$0xf]  ;;  %v8585_v9 = vld [vmem:[#allocation13 + $0x3d8] sm:$0xf0] }
 0x401   :  { %v3375_v23 = vpop.f32.mrf.mxu0  ;;  %v3389_v21 = vpop.f32.mrf.mxu1  ;;  %v3360_v22 = vadd.f32 %v3359_v10, %v3346_v20  ;;  %v7212_v10 = vor.u32 %v8480_v61, %v7211_v60  ;;  %v7911_v20 = vld [vmem:[#allocation13 + $0x5f0] sm:$0xf]  ;;  %v7827_v60 = vld [vmem:[#allocation13 + $0x548] sm:$0xf]  ;;  %v8634_v61 = vld [vmem:[#allocation13 + $0x560] sm:$0xf0] }
 0x402   :  { %v3376_v37 = vadd.f32 %v3375_v23, %v2955_v59  ;;  %v7800_v59 = vor.u32 %v8627_v51, %v7799_v52  ;;  %v7743_v23 = vld [vmem:[#allocation13 + $0x4a0] sm:$0xf]  ;;  %v8641_v51 = vld [vmem:[#allocation13 + $0x598] sm:$0xf0] }
 0x403   :  { %4956 = vmatpush.bf16.msra.mxu3 %v7520_v12  ;;  %v3394_v0 = vmax.f32 %v3360_v22, 0.0  ;;  %v8568_v12 = vld [vmem:[#allocation13 + $0x354] sm:$0xf]  ;;  %v7744_v25 = vor.u32 %v8613_v16, %v7743_v23  ;;  %v7883_v22 = vld [vmem:[#allocation13 + $0x5b8] sm:$0xf]  ;;  %v7632_v23 = vor.u32 %v8585_v9, %v7631_v8 }
 0x404   :  { %v3390_v26 = vadd.f32 %v3389_v21, %v3376_v37  ;;  %4941 = vmatpush.bf16.msra.mxu2 %v7324_v13  ;;  %v7577_v13 = vld [vmem:[#allocation13 + $0x36c] sm:$0xf0]  ;;  %v8655_v21 = vld [vmem:[#allocation13 + $0x608] sm:$0xf0]  ;;  %v7855_v52 = vld [vmem:[#allocation13 + $0x580] sm:$0xf] }
 0x405   :  { %v7580_v37 = vor.u32 %v8568_v12, %v7577_v13  ;;  %v7912_v29 = vor.u32 %v8655_v21, %v7911_v20  ;;  %v7856_v54 = vor.u32 %v8641_v51, %v7855_v52  ;;  %v7269_v12 = vld [vmem:[#allocation13 + $0x104] sm:$0xf0]  ;;  %v7437_v16 = vld [vmem:[#allocation13 + $0x254] sm:$0xf0]  ;;  %v8578_v21 = vld [vmem:[#allocation13 + $0x3a0] sm:$0xf0] }
 0x406   :  { %v3399_v33 = vmax.f32 %v3390_v26, 0.0  ;;  %v3347_v34 = vpop.f32.mrf.mxu2  ;;  %v3361_v45 = vpop.f32.mrf.mxu3  ;;  %v8561_v26 = vld [vmem:[#allocation13 + $0x31c] sm:$0xf]  ;;  %v7603_v20 = vld [vmem:[#allocation13 + $0x388] sm:$0xf] }
 0x407   :  { %4957 = vmatpush.bf16.msra.mxu3 %v7492_v24  ;;  %v3348_v35 = vadd.f32 %v3347_v34, %v2954_v62  ;;  %v7772_v62 = vor.u32 %v8620_v1, %v7771_v63  ;;  %v7184_v24 = vor.u32 %v8473_v15, %v7183_v14  ;;  %v8540_v63 = vld [vmem:[#allocation13 + $0x274] sm:$0xf]  ;;  %v7660_v1 = vor.u32 %v8592_v11, %v7659_v31  ;;  %v8533_v15 = vld [vmem:[#allocation13 + $0x23c] sm:$0xf]  ;;  %v7583_v52 = vld [vmem:[#allocation13 + $0x358] sm:$0xf] }
 0x408   :  { %v9351_v44 = vpack.c.bf16 %v3399_v33, %v3395_v32  ;;  %4942 = vmatpush.bf16.msra.mxu2 %v7296_v42  ;;  %v7549_v42 = vld [vmem:[#allocation13 + $0x334] sm:$0xf0]  ;;  %v8512_v32 = vld [vmem:[#allocation13 + $0x194] sm:$0xf]  ;;  %v7353_v33 = vld [vmem:[#allocation13 + $0x1ac] sm:$0xf0] }
 0x409   :  { %v3362_v38 = vadd.f32 %v3361_v45, %v3348_v35  ;;  %v7552_v34 = vor.u32 %v8561_v26, %v7549_v42  ;;  %v8648_v35 = vld [vmem:[#allocation13 + $0x5d0] sm:$0xf0]  ;;  %v7521_v45 = vld [vmem:[#allocation13 + $0x2fc] sm:$0xf0]  ;;  %v7801_v42 = vld [vmem:[#allocation13 + $0x52c] sm:$0xf0] }
 0x40a   :  { %4878 = vmatmul.bf16.vlgmr.msrb.gmra.mxu1 %v9351_v44  ;;  %4906 = vmatmul.bf16.vlgmr.msrb.gmra.mxu3 %v9343_v17  ;;  %v7884_v48 = vor.u32 %v8648_v35, %v7883_v22  ;;  %v7524_v50 = vor.u32 %v8554_v43, %v7521_v45  ;;  %v8624_v26 = vld [vmem:[#allocation13 + $0x514] sm:$0xf]  ;;  %v8477_v35 = vld [vmem:[#allocation13 + $0x7c] sm:$0xf]  ;;  %v7773_v43 = vld [vmem:[#allocation13 + $0x4f4] sm:$0xf0] }
 0x40b   :  { %v3398_v2 = vmax.f32 %v3362_v38, 0.0  ;;  %4958 = vmatpush.bf16.msra.mxu3 %v7464_v39  ;;  %4982 = vmatpush.bf16.msrb.mxu1 %v8024_v40  ;;  %v7156_v39 = vor.u32 %v8466_v27, %v7155_v41  ;;  %v7716_v40 = vor.u32 %v8606_v28, %v7715_v30  ;;  %v8505_v38 = vld [vmem:[#allocation13 + $0x15c] sm:$0xf]  ;;  %v7440_v41 = vor.u32 %v8533_v15, %v7437_v16  ;;  %v8526_v30 = vld [vmem:[#allocation13 + $0x204] sm:$0xf] }
 0x40c   :  { %4943 = vmatpush.bf16.msra.mxu2 %v7268_v46  ;;  %v7356_v46 = vor.u32 %v8512_v32, %v7353_v33  ;;  %v7604_v28 = vor.u32 %v8578_v21, %v7603_v20  ;;  %v8666_v32 = vld [vmem:[#allocation13 + $0x664] sm:$0xf]  ;;  %v7969_v33 = vld [vmem:[#allocation13 + $0x67c] sm:$0xf0]  ;;  %v7804_v22 = vor.u32 %v8624_v26, %v7801_v42  ;;  %v8572_v51 = vld [vmem:[#allocation13 + $0x370] sm:$0xf0] }
 0x40d   :  { %v9355_v56 = vpack.c.bf16 %v3398_v2, %v3394_v0  ;;  %v7688_v0 = vor.u32 %v8599_v36, %v7687_v47  ;;  %v8547_v2 = vld [vmem:[#allocation13 + $0x2ac] sm:$0xf]  ;;  %v7381_v36 = vld [vmem:[#allocation13 + $0x1e4] sm:$0xf0]  ;;  %v7359_v8 = vld [vmem:[#allocation13 + $0x198] sm:$0xf] }
 0x40e   :  { %v8519_v47 = vld [vmem:[#allocation13 + $0x1cc] sm:$0xf]  ;;  %v8516_v9 = vld [vmem:[#allocation13 + $0x1b0] sm:$0xf0]  ;;  %v7527_v15 = vld [vmem:[#allocation13 + $0x2e8] sm:$0xf] }
 0x40f   :  { %4959 = vmatpush.bf16.msra.mxu3 %v7436_v53  ;;  %4983 = vmatpush.bf16.msrb.mxu1 %v7996_v57  ;;  %v7493_v53 = vld [vmem:[#allocation13 + $0x2c4] sm:$0xf0]  ;;  %v7328_v57 = vor.u32 %v8505_v38, %v7325_v49  ;;  %v7384_v31 = vor.u32 %v8519_v47, %v7381_v36  ;;  %v7360_v16 = vor.u32 %v8516_v9, %v7359_v8  ;;  %v7331_v20 = vld [vmem:[#allocation13 + $0x160] sm:$0xf]  ;;  %v8509_v21 = vld [vmem:[#allocation13 + $0x178] sm:$0xf0] }
 0x410   :  { %4864 = vmatmul.bf16.vlgmr.msrb.gmra.mxu0 %v9355_v56  ;;  %4892 = vmatmul.bf16.vlgmr.msrb.gmra.mxu2 %v9347_v5  ;;  %v7941_v38 = vld [vmem:[#allocation13 + $0x644] sm:$0xf0]  ;;  %v7857_v26 = vld [vmem:[#allocation13 + $0x59c] sm:$0xf0]  ;;  %v8684_v47 = vld [vmem:[#allocation13 + $0x6f0] sm:$0xf0] }
 0x411   :  { %4944 = vmatpush.bf16.msra.mxu2 %v7240_v58  ;;  %4968 = vmatpush.bf16.msrb.mxu0 %v7800_v59  ;;  %v7297_v58 = vld [vmem:[#allocation13 + $0x13c] sm:$0xf0]  ;;  %v7496_v59 = vor.u32 %v8547_v2, %v7493_v53  ;;  %v8610_v53 = vld [vmem:[#allocation13 + $0x4a4] sm:$0xf] }
 0x412   :  { %v7300_v7 = vor.u32 %v8498_v55, %v7297_v58  ;;  %v7185_v2 = vld [vmem:[#allocation13 + $0x5c] sm:$0xf0]  ;;  %v8652_v55 = vld [vmem:[#allocation13 + $0x5f4] sm:$0xf]  ;;  %v7913_v58 = vld [vmem:[#allocation13 + $0x60c] sm:$0xf0] }
 0x413   :  { %4960 = vmatpush.bf16.msra.mxu3 %v7408_v3  ;;  %4984 = vmatpush.bf16.msrb.mxu1 %v7968_v4  ;;  %v7465_v3 = vld [vmem:[#allocation13 + $0x28c] sm:$0xf0]  ;;  %v8680_v4 = vld [vmem:[#allocation13 + $0x6d4] sm:$0xf] }
 0x414   :  { %v7468_v13 = vor.u32 %v8540_v63, %v7465_v3  ;;  %v8028_v14 = vor.u32 %v8680_v4, %v8025_v6  ;;  %v8565_v63 = vld [vmem:[#allocation13 + $0x338] sm:$0xf0]  ;;  %v7157_v3 = vld [vmem:[#allocation13 + $0x24] sm:$0xf0]  ;;  %v8603_v4 = vld [vmem:[#allocation13 + $0x46c] sm:$0xf] }
 0x415   :  { %4945 = vmatpush.bf16.msra.mxu2 %v7212_v10  ;;  %4969 = vmatpush.bf16.msrb.mxu0 %v7772_v62  ;;  %v7828_v10 = vor.u32 %v8634_v61, %v7827_v60  ;;  %v8491_v62 = vld [vmem:[#allocation13 + $0xec] sm:$0xf]  ;;  %v7555_v61 = vld [vmem:[#allocation13 + $0x320] sm:$0xf]  ;;  %v7717_v6 = vld [vmem:[#allocation13 + $0x484] sm:$0xf0] }
 0x417   :  { %4961 = vmatpush.bf16.msra.mxu3 %v7380_v18  ;;  %4985 = vmatpush.bf16.msrb.mxu1 %v7940_v19  ;;  %v8673_v18 = vld [vmem:[#allocation13 + $0x69c] sm:$0xf]  ;;  %v7997_v19 = vld [vmem:[#allocation13 + $0x6b4] sm:$0xf0] }
 0x418   :  { %v8000_v27 = vor.u32 %v8673_v18, %v7997_v19  ;;  %v8596_v18 = vld [vmem:[#allocation13 + $0x434] sm:$0xf]  ;;  %v7689_v19 = vld [vmem:[#allocation13 + $0x44c] sm:$0xf0] }
 0x419   :  { %4946 = vmatpush.bf16.msra.mxu2 %v7184_v24  ;;  %4970 = vmatpush.bf16.msrb.mxu0 %v7744_v25  ;;  %v8484_v24 = vld [vmem:[#allocation13 + $0xb4] sm:$0xf]  ;;  %v7241_v25 = vld [vmem:[#allocation13 + $0xcc] sm:$0xf0]  ;;  %v7692_v42 = vor.u32 %v8596_v18, %v7689_v19  ;;  %v8523_v19 = vld [vmem:[#allocation13 + $0x1e8] sm:$0xf0] }
 0x41a   :  { %4934 = vmatmul.bf16.vlgmr.msra.gmra.mxu1 %v9351_v44  ;;  %4962 = vmatmul.bf16.vlgmr.msra.gmra.mxu3 %v9343_v17 }
 0x41b   :  { %5010 = vmatpush.bf16.msrb.mxu3 %v7580_v37  ;;  %4986 = vmatpush.bf16.msrb.mxu1 %v7912_v29  ;;  %v7272_v37 = vor.u32 %v8491_v62, %v7269_v12  ;;  %v7409_v29 = vld [vmem:[#allocation13 + $0x21c] sm:$0xf0]  ;;  %v8645_v62 = vld [vmem:[#allocation13 + $0x5bc] sm:$0xf]  ;;  %v7885_v12 = vld [vmem:[#allocation13 + $0x5d4] sm:$0xf0] }
 0x41c   :  { %v7412_v45 = vor.u32 %v8526_v30, %v7409_v29  ;;  %v7332_v30 = vor.u32 %v8509_v21, %v7331_v20  ;;  %v7661_v29 = vld [vmem:[#allocation13 + $0x414] sm:$0xf0]  ;;  %v8663_v20 = vld [vmem:[#allocation13 + $0x648] sm:$0xf0] }
 0x41d   :  { %4947 = vmatpush.bf16.msra.mxu2 %v7156_v39  ;;  %4971 = vmatpush.bf16.msrb.mxu0 %v7716_v40  ;;  %v7213_v39 = vld [vmem:[#allocation13 + $0x94] sm:$0xf0]  ;;  %v8617_v40 = vld [vmem:[#allocation13 + $0x4dc] sm:$0xf] }
 0x41e   :  { %v7216_v49 = vor.u32 %v8477_v35, %v7213_v39  ;;  %v8631_v35 = vld [vmem:[#allocation13 + $0x54c] sm:$0xf]  ;;  %v7829_v39 = vld [vmem:[#allocation13 + $0x564] sm:$0xf0] }
 0x41f   :  { %5011 = vmatpush.bf16.msrb.mxu3 %v7552_v34  ;;  %4987 = vmatpush.bf16.msrb.mxu1 %v7884_v48  ;;  %v7244_v34 = vor.u32 %v8484_v24, %v7241_v25  ;;  %v8659_v48 = vld [vmem:[#allocation13 + $0x62c] sm:$0xf]  ;;  %v8638_v25 = vld [vmem:[#allocation13 + $0x584] sm:$0xf] }
 0x420   :  { %4920 = vmatmul.bf16.vlgmr.msra.gmra.mxu0 %v9355_v56  ;;  %4948 = vmatmul.bf16.vlgmr.msra.gmra.mxu2 %v9347_v5  ;;  %v7944_v11 = vor.u32 %v8659_v48, %v7941_v38  ;;  %v8582_v48 = vld [vmem:[#allocation13 + $0x3c4] sm:$0xf]  ;;  %v7633_v38 = vld [vmem:[#allocation13 + $0x3dc] sm:$0xf0] }
 0x421   :  { %4996 = vmatpush.bf16.msrb.mxu2 %v7356_v46  ;;  %4972 = vmatpush.bf16.msrb.mxu0 %v7688_v0  ;;  %v7972_v46 = vor.u32 %v8666_v32, %v7969_v33  ;;  %v8470_v0 = vld [vmem:[#allocation13 + $0x44] sm:$0xf]  ;;  %v7860_v32 = vor.u32 %v8638_v25, %v7857_v26  ;;  %v7303_v33 = vld [vmem:[#allocation13 + $0x128] sm:$0xf]  ;;  %v8569_v25 = vld [vmem:[#allocation13 + $0x35c] sm:$0xf] }
 0x422   :  { %v7585_v26 = vld [vmem:[#allocation13 + $0x374] sm:$0xf0] }
 0x423   :  { %5012 = vmatpush.bf16.msrb.mxu3 %v7524_v50  ;;  %4988 = vmatpush.bf16.msrb.mxu1 %v7856_v54  ;;  %v7776_v50 = vor.u32 %v8617_v40, %v7773_v43  ;;  %v7584_v54 = vor.u32 %v8572_v51, %v7583_v52  ;;  %v7471_v40 = vld [vmem:[#allocation13 + $0x278] sm:$0xf]  ;;  %v8495_v52 = vld [vmem:[#allocation13 + $0x108] sm:$0xf0] }
 0x425   :  { %4997 = vmatpush.bf16.msrb.mxu2 %v7328_v57  ;;  %4973 = vmatpush.bf16.msrb.mxu0 %v7660_v1  ;;  %v7745_v57 = vld [vmem:[#allocation13 + $0x4bc] sm:$0xf0]  ;;  %v8463_v1 = vld [vmem:[#allocation13 + $0xc] sm:$0xf] }
 0x426   :  { %v7748_v60 = vor.u32 %v8610_v53, %v7745_v57  ;;  %v7636_v53 = vor.u32 %v8582_v48, %v7633_v38  ;;  %v8537_v57 = vld [vmem:[#allocation13 + $0x258] sm:$0xf0]  ;;  %v7361_v48 = vld [vmem:[#allocation13 + $0x1b4] sm:$0xf0] }
 0x427   :  { %5013 = vmatpush.bf16.msrb.mxu3 %v7496_v59  ;;  %4989 = vmatpush.bf16.msrb.mxu1 %v7828_v10  ;;  %v7188_v59 = vor.u32 %v8470_v0, %v7185_v2  ;;  %v7556_v10 = vor.u32 %v8565_v63, %v7555_v61  ;;  %v7443_v2 = vld [vmem:[#allocation13 + $0x240] sm:$0xf]  ;;  %v7807_v61 = vld [vmem:[#allocation13 + $0x518] sm:$0xf]  ;;  %v8628_v63 = vld [vmem:[#allocation13 + $0x530] sm:$0xf0] }
 0x428   :  { %v7808_v9 = vor.u32 %v8628_v63, %v7807_v61  ;;  %v7863_v61 = vld [vmem:[#allocation13 + $0x588] sm:$0xf]  ;;  %v8642_v63 = vld [vmem:[#allocation13 + $0x5a0] sm:$0xf0] }
 0x429   :  { %4998 = vmatpush.bf16.msrb.mxu2 %v7300_v7  ;;  %4974 = vmatpush.bf16.msrb.mxu0 %v7632_v23  ;;  %v7916_v7 = vor.u32 %v8652_v55, %v7913_v58  ;;  %v8558_v23 = vld [vmem:[#allocation13 + $0x300] sm:$0xf0]  ;;  %v8575_v55 = vld [vmem:[#allocation13 + $0x38c] sm:$0xf]  ;;  %v7605_v58 = vld [vmem:[#allocation13 + $0x3a4] sm:$0xf0] }
 0x42a   :  { %4990 = vmatmul.bf16.vlgmr.msrb.gmra.mxu1 %v9351_v44  ;;  %v7528_v24 = vor.u32 %v8558_v23, %v7527_v15  ;;  %v8621_v15 = vld [vmem:[#allocation13 + $0x4f8] sm:$0xf0] }
 0x42b   :  { %5014 = vmatpush.bf16.msrb.mxu3 %v7468_v13  ;;  %5038 = vmatpush.bf16.msra.mxu1 %v8028_v14  ;;  %v7160_v13 = vor.u32 %v8463_v1, %v7157_v3  ;;  %v7720_v14 = vor.u32 %v8603_v4, %v7717_v6  ;;  %v7444_v1 = vor.u32 %v8537_v57, %v7443_v2  ;;  %v7415_v6 = vld [vmem:[#allocation13 + $0x208] sm:$0xf]  ;;  %v8555_v2 = vld [vmem:[#allocation13 + $0x2ec] sm:$0xf] }
 0x42c   :  { %v7608_v4 = vor.u32 %v8575_v55, %v7605_v58  ;;  %v7529_v57 = vld [vmem:[#allocation13 + $0x304] sm:$0xf0]  ;;  %v7333_v55 = vld [vmem:[#allocation13 + $0x17c] sm:$0xf0] }
 0x42d   :  { %4999 = vmatpush.bf16.msrb.mxu2 %v7272_v37  ;;  %4975 = vmatpush.bf16.msrb.mxu0 %v7604_v28  ;;  %v7888_v37 = vor.u32 %v8645_v62, %v7885_v12  ;;  %v8589_v28 = vld [vmem:[#allocation13 + $0x3fc] sm:$0xf]  ;;  %v8670_v62 = vld [vmem:[#allocation13 + $0x680] sm:$0xf0]  ;;  %v7219_v12 = vld [vmem:[#allocation13 + $0x80] sm:$0xf] }
 0x42e   :  { %v7664_v43 = vor.u32 %v8589_v28, %v7661_v29 }
 0x42f   :  { %5015 = vmatpush.bf16.msrb.mxu3 %v7440_v41  ;;  %5039 = vmatpush.bf16.msra.mxu1 %v8000_v27  ;;  %v7499_v41 = vld [vmem:[#allocation13 + $0x2b0] sm:$0xf]  ;;  %v8551_v27 = vld [vmem:[#allocation13 + $0x2c8] sm:$0xf0] }
 0x430   :  { %4976 = vmatmul.bf16.vlgmr.msrb.gmra.mxu0 %v9355_v56 }
 0x431   :  { %5000 = vmatpush.bf16.msrb.mxu2 %v7244_v34  ;;  %5024 = vmatpush.bf16.msra.mxu0 %v7804_v22  ;;  %v8502_v34 = vld [vmem:[#allocation13 + $0x140] sm:$0xf0]  ;;  %v7500_v22 = vor.u32 %v8551_v27, %v7499_v41  ;;  %v7751_v27 = vld [vmem:[#allocation13 + $0x4a8] sm:$0xf] }
 0x432   :  { %v7304_v36 = vor.u32 %v8502_v34, %v7303_v33  ;;  %v8474_v41 = vld [vmem:[#allocation13 + $0x60] sm:$0xf0]  ;;  %v7919_v33 = vld [vmem:[#allocation13 + $0x5f8] sm:$0xf]  ;;  %v8656_v34 = vld [vmem:[#allocation13 + $0x610] sm:$0xf0] }
 0x433   :  { %5016 = vmatpush.bf16.msrb.mxu3 %v7412_v45  ;;  %5040 = vmatpush.bf16.msra.mxu1 %v7972_v46  ;;  %v8544_v45 = vld [vmem:[#allocation13 + $0x290] sm:$0xf0]  ;;  %v8031_v46 = vld [vmem:[#allocation13 + $0x6d8] sm:$0xf]  ;;  %v7920_v38 = vor.u32 %v8656_v34, %v7919_v33  ;;  %v7611_v33 = vld [vmem:[#allocation13 + $0x390] sm:$0xf] }
 0x434   :  { %v7472_v51 = vor.u32 %v8544_v45, %v7471_v40  ;;  %v8032_v0 = vor.u32 %v8684_v47, %v8031_v46  ;;  %v7557_v40 = vld [vmem:[#allocation13 + $0x33c] sm:$0xf0]  ;;  %v8467_v45 = vld [vmem:[#allocation13 + $0x28] sm:$0xf0]  ;;  %v7723_v46 = vld [vmem:[#allocation13 + $0x470] sm:$0xf] }
 0x435   :  { %5001 = vmatpush.bf16.msrb.mxu2 %v7216_v49  ;;  %5025 = vmatpush.bf16.msra.mxu0 %v7776_v50  ;;  %v7832_v49 = vor.u32 %v8631_v35, %v7829_v39  ;;  %v7275_v50 = vld [vmem:[#allocation13 + $0xf0] sm:$0xf]  ;;  %v8562_v39 = vld [vmem:[#allocation13 + $0x324] sm:$0xf]  ;;  %v8607_v47 = vld [vmem:[#allocation13 + $0x488] sm:$0xf0] }
 0x436   :  { %v8579_v34 = vld [vmem:[#allocation13 + $0x3a8] sm:$0xf0] }
 0x437   :  { %5017 = vmatpush.bf16.msrb.mxu3 %v7384_v31  ;;  %5041 = vmatpush.bf16.msra.mxu1 %v7944_v11  ;;  %v8003_v31 = vld [vmem:[#allocation13 + $0x6a0] sm:$0xf]  ;;  %v8677_v11 = vld [vmem:[#allocation13 + $0x6b8] sm:$0xf0] }
 0x438   :  { %v8004_v3 = vor.u32 %v8677_v11, %v8003_v31  ;;  %v7695_v31 = vld [vmem:[#allocation13 + $0x438] sm:$0xf]  ;;  %v8600_v11 = vld [vmem:[#allocation13 + $0x450] sm:$0xf0] }
 0x439   :  { %5002 = vmatpush.bf16.msrb.mxu2 %v7188_v59  ;;  %5026 = vmatpush.bf16.msra.mxu0 %v7748_v60  ;;  %v7247_v59 = vld [vmem:[#allocation13 + $0xb8] sm:$0xf]  ;;  %v8488_v60 = vld [vmem:[#allocation13 + $0xd0] sm:$0xf0] }
 0x43a   :  { %5018 = vmatmul.bf16.vlgmr.msrb.gmra.mxu3 %v9343_v17  ;;  %v7248_v8 = vor.u32 %v8488_v60, %v7247_v59  ;;  %v7532_v59 = vor.u32 %v8555_v2, %v7529_v57  ;;  %v7696_v60 = vor.u32 %v8600_v11, %v7695_v31  ;;  %v7781_v2 = vld [vmem:[#allocation13 + $0x4fc] sm:$0xf0]  ;;  %v8520_v57 = vld [vmem:[#allocation13 + $0x1d4] sm:$0xf] }
 0x43b   :  { %5066 = vmatpush.bf16.msra.mxu3 %v7584_v54  ;;  %5042 = vmatpush.bf16.msra.mxu1 %v7916_v7  ;;  %v7276_v54 = vor.u32 %v8495_v52, %v7275_v50  ;;  %v8530_v7 = vld [vmem:[#allocation13 + $0x220] sm:$0xf0]  ;;  %v7724_v52 = vor.u32 %v8607_v47, %v7723_v46  ;;  %v7612_v46 = vor.u32 %v8579_v34, %v7611_v33 }
 0x43c   :  { %v7416_v23 = vor.u32 %v8530_v7, %v7415_v6  ;;  %v7667_v6 = vld [vmem:[#allocation13 + $0x400] sm:$0xf]  ;;  %v8593_v7 = vld [vmem:[#allocation13 + $0x418] sm:$0xf0]  ;;  %v8510_v33 = vld [vmem:[#allocation13 + $0x180] sm:$0xf0] }
 0x43d   :  { %5003 = vmatpush.bf16.msrb.mxu2 %v7160_v13  ;;  %5027 = vmatpush.bf16.msra.mxu0 %v7720_v14  ;;  %v8481_v13 = vld [vmem:[#allocation13 + $0x98] sm:$0xf0]  ;;  %v7779_v14 = vld [vmem:[#allocation13 + $0x4e0] sm:$0xf] }
 0x43e   :  { %v7220_v21 = vor.u32 %v8481_v13, %v7219_v12  ;;  %v7668_v13 = vor.u32 %v8593_v7, %v7667_v6 }
 0x43f   :  { %5067 = vmatpush.bf16.msra.mxu3 %v7556_v10  ;;  %5043 = vmatpush.bf16.msra.mxu1 %v7888_v37  ;;  %v7975_v10 = vld [vmem:[#allocation13 + $0x668] sm:$0xf]  ;;  %v7947_v37 = vld [vmem:[#allocation13 + $0x630] sm:$0xf] }
 0x440   :  { %5004 = vmatmul.bf16.vlgmr.msrb.gmra.mxu2 %v9347_v5  ;;  %v7976_v18 = vor.u32 %v8670_v62, %v7975_v10  ;;  %v7948_v29 = vor.u32 %v8663_v20, %v7947_v37  ;;  %v7864_v10 = vor.u32 %v8642_v63, %v7863_v61  ;;  %v7835_v62 = vld [vmem:[#allocation13 + $0x550] sm:$0xf]  ;;  %v7639_v37 = vld [vmem:[#allocation13 + $0x3c8] sm:$0xf]  ;;  %v8586_v20 = vld [vmem:[#allocation13 + $0x3e0] sm:$0xf0] }
 0x441   :  { %5052 = vmatpush.bf16.msra.mxu2 %v7360_v16  ;;  %5028 = vmatpush.bf16.msra.mxu0 %v7692_v42  ;;  %v7387_v16 = vld [vmem:[#allocation13 + $0x1d0] sm:$0xf]  ;;  %v7191_v42 = vld [vmem:[#allocation13 + $0x48] sm:$0xf]  ;;  %v8573_v61 = vld [vmem:[#allocation13 + $0x378] sm:$0xf0] }
 0x442   :  { %v7388_v28 = vor.u32 %v8523_v19, %v7387_v16  ;;  %v8033_v19 = vld [vmem:[#allocation13 + $0x6f4] sm:$0xf0]  ;;  %v8471_v63 = vld [vmem:[#allocation13 + $0x4c] sm:$0xf] }
 0x443   :  { %5068 = vmatpush.bf16.msra.mxu3 %v7528_v24  ;;  %5044 = vmatpush.bf16.msra.mxu1 %v7860_v32  ;;  %v7780_v24 = vor.u32 %v8621_v15, %v7779_v14  ;;  %v7588_v32 = vor.u32 %v8569_v25, %v7585_v26  ;;  %v8635_v14 = vld [vmem:[#allocation13 + $0x568] sm:$0xf0]  ;;  %v8541_v15 = vld [vmem:[#allocation13 + $0x27c] sm:$0xf] }
 0x444   :  { %v7836_v25 = vor.u32 %v8635_v14, %v7835_v62  ;;  %v8566_v14 = vld [vmem:[#allocation13 + $0x340] sm:$0xf0] }
 0x445   :  { %5053 = vmatpush.bf16.msra.mxu2 %v7332_v30  ;;  %5029 = vmatpush.bf16.msra.mxu0 %v7664_v43  ;;  %v8614_v30 = vld [vmem:[#allocation13 + $0x4c0] sm:$0xf0]  ;;  %v7163_v43 = vld [vmem:[#allocation13 + $0x10] sm:$0xf] }
 0x446   :  { %v7752_v35 = vor.u32 %v8614_v30, %v7751_v27  ;;  %v7164_v50 = vor.u32 %v8467_v45, %v7163_v43  ;;  %v7445_v27 = vld [vmem:[#allocation13 + $0x25c] sm:$0xf0]  ;;  %v7640_v30 = vor.u32 %v8586_v20, %v7639_v37  ;;  %v8517_v37 = vld [vmem:[#allocation13 + $0x1b8] sm:$0xf0] }
 0x447   :  { %5069 = vmatpush.bf16.msra.mxu3 %v7500_v22  ;;  %5045 = vmatpush.bf16.msra.mxu1 %v7832_v49  ;;  %v7192_v22 = vor.u32 %v8474_v41, %v7191_v42  ;;  %v7560_v49 = vor.u32 %v8562_v39, %v7557_v40  ;;  %v8534_v41 = vld [vmem:[#allocation13 + $0x244] sm:$0xf]  ;;  %v8625_v39 = vld [vmem:[#allocation13 + $0x51c] sm:$0xf]  ;;  %v7809_v40 = vld [vmem:[#allocation13 + $0x534] sm:$0xf0] }
 0x448   :  { %v7448_v43 = vor.u32 %v8534_v41, %v7445_v27  ;;  %v7535_v41 = vld [vmem:[#allocation13 + $0x2f0] sm:$0xf] }
 0x449   :  { %5054 = vmatpush.bf16.msra.mxu2 %v7304_v36  ;;  %5030 = vmatpush.bf16.msra.mxu0 %v7636_v53  ;;  %v8513_v36 = vld [vmem:[#allocation13 + $0x19c] sm:$0xf] }
 0x44a   :  { %5046 = vmatmul.bf16.vlgmr.msra.gmra.mxu1 %v9351_v44  ;;  %v7364_v53 = vor.u32 %v8513_v36, %v7361_v48  ;;  %v8527_v36 = vld [vmem:[#allocation13 + $0x20c] sm:$0xf]  ;;  %v7417_v48 = vld [vmem:[#allocation13 + $0x224] sm:$0xf0] }
 0x44b   :  { %5070 = vmatpush.bf16.msra.mxu3 %v7472_v51  ;;  %5094 = vmatpush.bf16.msrb.mxu1 %v8032_v0  ;;  %v7891_v51 = vld [vmem:[#allocation13 + $0x5c0] sm:$0xf]  ;;  %v8649_v0 = vld [vmem:[#allocation13 + $0x5d8] sm:$0xf0] }
 0x44c   :  { %v7892_v58 = vor.u32 %v8649_v0, %v7891_v51  ;;  %v7221_v51 = vld [vmem:[#allocation13 + $0x9c] sm:$0xf0]  ;;  %v8618_v0 = vld [vmem:[#allocation13 + $0x4e4] sm:$0xf] }
 0x44d   :  { %5055 = vmatpush.bf16.msra.mxu2 %v7276_v54  ;;  %5031 = vmatpush.bf16.msra.mxu0 %v7608_v4  ;;  %v8506_v54 = vld [vmem:[#allocation13 + $0x164] sm:$0xf]  ;;  %v7501_v4 = vld [vmem:[#allocation13 + $0x2cc] sm:$0xf0] }
 0x44f   :  { %5071 = vmatpush.bf16.msra.mxu3 %v7444_v1  ;;  %5095 = vmatpush.bf16.msrb.mxu1 %v8004_v3  ;;  %v8548_v1 = vld [vmem:[#allocation13 + $0x2b4] sm:$0xf]  ;;  %v7336_v3 = vor.u32 %v8506_v54, %v7333_v55  ;;  %v7389_v54 = vld [vmem:[#allocation13 + $0x1ec] sm:$0xf0] }
 0x450   :  { %5032 = vmatmul.bf16.vlgmr.msra.gmra.mxu0 %v9355_v56  ;;  %v7504_v12 = vor.u32 %v8548_v1, %v7501_v4  ;;  %v8660_v55 = vld [vmem:[#allocation13 + $0x634] sm:$0xf]  ;;  %v7193_v1 = vld [vmem:[#allocation13 + $0x64] sm:$0xf0]  ;;  %v7392_v6 = vor.u32 %v8520_v57, %v7389_v54  ;;  %v8583_v54 = vld [vmem:[#allocation13 + $0x3cc] sm:$0xf] }
 0x451   :  { %5056 = vmatpush.bf16.msra.mxu2 %v7248_v8  ;;  %5080 = vmatpush.bf16.msrb.mxu0 %v7808_v9  ;;  %v8499_v8 = vld [vmem:[#allocation13 + $0x12c] sm:$0xf]  ;;  %v7305_v9 = vld [vmem:[#allocation13 + $0x144] sm:$0xf0]  ;;  %v7196_v62 = vor.u32 %v8471_v63, %v7193_v1 }
 0x452   :  { %v7308_v16 = vor.u32 %v8499_v8, %v7305_v9  ;;  %v7753_v4 = vld [vmem:[#allocation13 + $0x4c4] sm:$0xf0]  ;;  %v8653_v9 = vld [vmem:[#allocation13 + $0x5fc] sm:$0xf] }
 0x453   :  { %5072 = vmatpush.bf16.msra.mxu3 %v7416_v23  ;;  %5096 = vmatpush.bf16.msrb.mxu1 %v7976_v18  ;;  %v7473_v23 = vld [vmem:[#allocation13 + $0x294] sm:$0xf0]  ;;  %v8681_v18 = vld [vmem:[#allocation13 + $0x6dc] sm:$0xf]  ;;  %v7451_v1 = vld [vmem:[#allocation13 + $0x248] sm:$0xf] }
 0x454   :  { %v7476_v26 = vor.u32 %v8541_v15, %v7473_v23  ;;  %v8036_v42 = vor.u32 %v8681_v18, %v8033_v19  ;;  %v8464_v15 = vld [vmem:[#allocation13 + $0x14] sm:$0xf]  ;;  %v7165_v23 = vld [vmem:[#allocation13 + $0x2c] sm:$0xf0]  ;;  %v7367_v19 = vld [vmem:[#allocation13 + $0x1a0] sm:$0xf] }
 0x455   :  { %5057 = vmatpush.bf16.msra.mxu2 %v7220_v21  ;;  %5081 = vmatpush.bf16.msrb.mxu0 %v7780_v24  ;;  %v8492_v21 = vld [vmem:[#allocation13 + $0xf4] sm:$0xf]  ;;  %v7277_v24 = vld [vmem:[#allocation13 + $0x10c] sm:$0xf0]  ;;  %v7368_v27 = vor.u32 %v8517_v37, %v7367_v19 }
 0x456   :  { %v7725_v18 = vld [vmem:[#allocation13 + $0x48c] sm:$0xf0] }
 0x457   :  { %5073 = vmatpush.bf16.msra.mxu3 %v7388_v28  ;;  %5097 = vmatpush.bf16.msrb.mxu1 %v7948_v29  ;;  %v7280_v28 = vor.u32 %v8492_v21, %v7277_v24  ;;  %v8674_v29 = vld [vmem:[#allocation13 + $0x6a4] sm:$0xf]  ;;  %v7168_v24 = vor.u32 %v8464_v15, %v7165_v23 }
 0x459   :  { %5058 = vmatpush.bf16.msra.mxu2 %v7192_v22  ;;  %5082 = vmatpush.bf16.msrb.mxu0 %v7752_v35  ;;  %v8485_v22 = vld [vmem:[#allocation13 + $0xbc] sm:$0xf]  ;;  %v7249_v35 = vld [vmem:[#allocation13 + $0xd4] sm:$0xf0] }
 0x45a   :  { %5074 = vmatmul.bf16.vlgmr.msra.gmra.mxu3 %v9343_v17  ;;  %v7252_v47 = vor.u32 %v8485_v22, %v7249_v35 }
 0x45b   :  { %5122 = vmatpush.bf16.msrb.mxu3 %v7588_v32  ;;  %5098 = vmatpush.bf16.msrb.mxu1 %v7920_v38  ;;  %v8005_v32 = vld [vmem:[#allocation13 + $0x6bc] sm:$0xf0]  ;;  %v8667_v38 = vld [vmem:[#allocation13 + $0x66c] sm:$0xf] }
 0x45c   :  { %v8008_v45 = vor.u32 %v8674_v29, %v8005_v32  ;;  %v7697_v29 = vld [vmem:[#allocation13 + $0x454] sm:$0xf0]  ;;  %v7339_v32 = vld [vmem:[#allocation13 + $0x168] sm:$0xf] }
 0x45d   :  { %5059 = vmatpush.bf16.msra.mxu2 %v7164_v50  ;;  %5083 = vmatpush.bf16.msrb.mxu0 %v7724_v52  ;;  %v7977_v50 = vld [vmem:[#allocation13 + $0x684] sm:$0xf0]  ;;  %v8478_v52 = vld [vmem:[#allocation13 + $0x84] sm:$0xf] }
 0x45e   :  { %v7980_v31 = vor.u32 %v8667_v38, %v7977_v50  ;;  %v7224_v11 = vor.u32 %v8478_v52, %v7221_v51  ;;  %v8503_v38 = vld [vmem:[#allocation13 + $0x148] sm:$0xf0]  ;;  %v8632_v50 = vld [vmem:[#allocation13 + $0x554] sm:$0xf] }
 0x45f   :  { %5123 = vmatpush.bf16.msrb.mxu3 %v7560_v49  ;;  %5099 = vmatpush.bf16.msrb.mxu1 %v7892_v58  ;;  %v7812_v49 = vor.u32 %v8625_v39, %v7809_v40  ;;  %v7949_v58 = vld [vmem:[#allocation13 + $0x64c] sm:$0xf0]  ;;  %v8639_v39 = vld [vmem:[#allocation13 + $0x58c] sm:$0xf]  ;;  %v7865_v40 = vld [vmem:[#allocation13 + $0x5a4] sm:$0xf0] }
 0x460   :  { %5060 = vmatmul.bf16.vlgmr.msra.gmra.mxu2 %v9347_v5  ;;  %v7952_v7 = vor.u32 %v8660_v55, %v7949_v58  ;;  %v7641_v55 = vld [vmem:[#allocation13 + $0x3e4] sm:$0xf0]  ;;  %v7283_v58 = vld [vmem:[#allocation13 + $0xf8] sm:$0xf] }
 0x461   :  { %5108 = vmatpush.bf16.msrb.mxu2 %v7364_v53  ;;  %5084 = vmatpush.bf16.msrb.mxu0 %v7696_v60  ;;  %v7420_v53 = vor.u32 %v8527_v36, %v7417_v48  ;;  %v7591_v60 = vld [vmem:[#allocation13 + $0x360] sm:$0xf]  ;;  %v7311_v48 = vld [vmem:[#allocation13 + $0x130] sm:$0xf] }
 0x462   :  { %v7592_v8 = vor.u32 %v8573_v61, %v7591_v60  ;;  %v7669_v36 = vld [vmem:[#allocation13 + $0x41c] sm:$0xf0]  ;;  %v7312_v57 = vor.u32 %v8503_v38, %v7311_v48  ;;  %v7759_v48 = vld [vmem:[#allocation13 + $0x4b0] sm:$0xf]  ;;  %v8615_v38 = vld [vmem:[#allocation13 + $0x4c8] sm:$0xf0] }
 0x463   :  { %5124 = vmatpush.bf16.msrb.mxu3 %v7532_v59  ;;  %5100 = vmatpush.bf16.msrb.mxu1 %v7864_v10  ;;  %v7784_v59 = vor.u32 %v8618_v0, %v7781_v2  ;;  %v7921_v10 = vld [vmem:[#allocation13 + $0x614] sm:$0xf0]  ;;  %v7837_v0 = vld [vmem:[#allocation13 + $0x56c] sm:$0xf0]  ;;  %v7479_v2 = vld [vmem:[#allocation13 + $0x280] sm:$0xf] }
 0x464   :  { %v7924_v20 = vor.u32 %v8653_v9, %v7921_v10  ;;  %v7840_v60 = vor.u32 %v8632_v50, %v7837_v0  ;;  %v8576_v9 = vld [vmem:[#allocation13 + $0x394] sm:$0xf]  ;;  %v7613_v10 = vld [vmem:[#allocation13 + $0x3ac] sm:$0xf0]  ;;  %v7927_v0 = vld [vmem:[#allocation13 + $0x600] sm:$0xf] }
 0x465   :  { %5109 = vmatpush.bf16.msrb.mxu2 %v7336_v3  ;;  %5085 = vmatpush.bf16.msrb.mxu0 %v7668_v13  ;;  %v8611_v3 = vld [vmem:[#allocation13 + $0x4ac] sm:$0xf]  ;;  %v7563_v13 = vld [vmem:[#allocation13 + $0x328] sm:$0xf]  ;;  %v7616_v37 = vor.u32 %v8576_v9, %v7613_v10  ;;  %v7703_v9 = vld [vmem:[#allocation13 + $0x440] sm:$0xf] }
 0x466   :  { %v7564_v21 = vor.u32 %v8566_v14, %v7563_v13  ;;  %v7815_v13 = vld [vmem:[#allocation13 + $0x520] sm:$0xf]  ;;  %v8629_v14 = vld [vmem:[#allocation13 + $0x538] sm:$0xf0] }
 0x467   :  { %5125 = vmatpush.bf16.msrb.mxu3 %v7504_v12  ;;  %5101 = vmatpush.bf16.msrb.mxu1 %v7836_v25  ;;  %v7756_v12 = vor.u32 %v8611_v3, %v7753_v4  ;;  %v8538_v3 = vld [vmem:[#allocation13 + $0x260] sm:$0xf0]  ;;  %v7644_v4 = vor.u32 %v8583_v54, %v7641_v55  ;;  %v7731_v55 = vld [vmem:[#allocation13 + $0x478] sm:$0xf]  ;;  %v8601_v10 = vld [vmem:[#allocation13 + $0x458] sm:$0xf0] }
 0x468   :  { %v7452_v15 = vor.u32 %v8538_v3, %v7451_v1 }
 0x469   :  { %5110 = vmatpush.bf16.msrb.mxu2 %v7308_v16  ;;  %5086 = vmatpush.bf16.msrb.mxu0 %v7640_v30  ;;  %v8604_v16 = vld [vmem:[#allocation13 + $0x474] sm:$0xf]  ;;  %v8559_v30 = vld [vmem:[#allocation13 + $0x308] sm:$0xf0] }
 0x46a   :  { %5102 = vmatmul.bf16.vlgmr.msrb.gmra.mxu1 %v9351_v44  ;;  %v7728_v25 = vor.u32 %v8604_v16, %v7725_v18  ;;  %v7536_v22 = vor.u32 %v8559_v30, %v7535_v41  ;;  %v9378_v16 = vld [vmem:[%s9448_s13] sm:$0xff]  ;;  %v7227_v41 = vld [vmem:[#allocation13 + $0x88] sm:$0xf] }
 0x46b   :  { %5126 = vmatpush.bf16.msrb.mxu3 %v7476_v26  ;;  %5150 = vmatpush.bf16.msra.mxu1 %v8036_v42  ;;  %v8646_v26 = vld [vmem:[#allocation13 + $0x5c4] sm:$0xf]  ;;  %v7893_v42 = vld [vmem:[#allocation13 + $0x5dc] sm:$0xf0]  ;;  %v3662_v30 = vperm.slane %v9378_v16, 0 }
 0x46c   :  { %v7896_v34 = vor.u32 %v8646_v26, %v7893_v42  ;;  %v7816_v26 = vor.u32 %v8629_v14, %v7815_v13  ;;  %v8671_v42 = vld [vmem:[#allocation13 + $0x688] sm:$0xf0]  ;;  %v7704_v14 = vor.u32 %v8601_v10, %v7703_v9 }
 0x46d   :  { %5111 = vmatpush.bf16.msrb.mxu2 %v7280_v28  ;;  %5087 = vmatpush.bf16.msrb.mxu0 %v7612_v46  ;;  %v8597_v28 = vld [vmem:[#allocation13 + $0x43c] sm:$0xf]  ;;  %v8552_v46 = vld [vmem:[#allocation13 + $0x2d0] sm:$0xf0] }
 0x46e   :  { %v7700_v35 = vor.u32 %v8597_v28, %v7697_v29  ;;  %v7787_v28 = vld [vmem:[#allocation13 + $0x4e8] sm:$0xf]  ;;  %v8622_v29 = vld [vmem:[#allocation13 + $0x500] sm:$0xf0] }
 0x46f   :  { %5127 = vmatpush.bf16.msrb.mxu3 %v7448_v43  ;;  %5151 = vmatpush.bf16.msra.mxu1 %v8008_v45  ;;  %v7507_v43 = vld [vmem:[#allocation13 + $0x2b8] sm:$0xf]  ;;  %v7340_v45 = vor.u32 %v8510_v33, %v7339_v32 }
 0x470   :  { %5088 = vmatmul.bf16.vlgmr.msrb.gmra.mxu0 %v9355_v56  ;;  %v7508_v52 = vor.u32 %v8552_v46, %v7507_v43  ;;  %v7788_v43 = vor.u32 %v8622_v29, %v7787_v28  ;;  %v7199_v46 = vld [vmem:[#allocation13 + $0x50] sm:$0xf]  ;;  %v8587_v29 = vld [vmem:[#allocation13 + $0x3e8] sm:$0xf0] }
 0x471   :  { %5112 = vmatpush.bf16.msrb.mxu2 %v7252_v47  ;;  %5136 = vmatpush.bf16.msra.mxu0 %v7812_v49  ;;  %v8590_v47 = vld [vmem:[#allocation13 + $0x404] sm:$0xf]  ;;  %v7868_v49 = vor.u32 %v8639_v39, %v7865_v40  ;;  %v7955_v39 = vld [vmem:[#allocation13 + $0x638] sm:$0xf]  ;;  %v7647_v28 = vld [vmem:[#allocation13 + $0x3d0] sm:$0xf] }
 0x472   :  { %v7672_v51 = vor.u32 %v8590_v47, %v7669_v36  ;;  %v8475_v47 = vld [vmem:[#allocation13 + $0x68] sm:$0xf0] }
 0x473   :  { %5128 = vmatpush.bf16.msrb.mxu3 %v7420_v53  ;;  %5152 = vmatpush.bf16.msra.mxu1 %v7980_v31  ;;  %v8545_v53 = vld [vmem:[#allocation13 + $0x298] sm:$0xf0]  ;;  %v8039_v31 = vld [vmem:[#allocation13 + $0x6e0] sm:$0xf] }
 0x474   :  { %v7480_v61 = vor.u32 %v8545_v53, %v7479_v2  ;;  %v7760_v2 = vor.u32 %v8615_v38, %v7759_v48  ;;  %v8657_v53 = vld [vmem:[#allocation13 + $0x618] sm:$0xf0] }
 0x475   :  { %5113 = vmatpush.bf16.msrb.mxu2 %v7224_v11  ;;  %5137 = vmatpush.bf16.msra.mxu0 %v7784_v59  ;;  %v8685_v11 = vld [vmem:[#allocation13 + $0x6f8] sm:$0xf0]  ;;  %v8496_v59 = vld [vmem:[#allocation13 + $0x110] sm:$0xf0] }
 0x476   :  { %v8040_v63 = vor.u32 %v8685_v11, %v8039_v31  ;;  %v8468_v31 = vld [vmem:[#allocation13 + $0x30] sm:$0xf0] }
 0x477   :  { %5129 = vmatpush.bf16.msrb.mxu3 %v7392_v6  ;;  %5153 = vmatpush.bf16.msra.mxu1 %v7952_v7  ;;  %v7284_v6 = vor.u32 %v8496_v59, %v7283_v58  ;;  %v8011_v7 = vld [vmem:[#allocation13 + $0x6a8] sm:$0xf]  ;;  %v8608_v58 = vld [vmem:[#allocation13 + $0x490] sm:$0xf0] }
 0x478   :  { %v7732_v3 = vor.u32 %v8608_v58, %v7731_v55 }
 0x479   :  { %5114 = vmatpush.bf16.msrb.mxu2 %v7196_v62  ;;  %5138 = vmatpush.bf16.msra.mxu0 %v7756_v12  ;;  %v7255_v62 = vld [vmem:[#allocation13 + $0xc0] sm:$0xf]  ;;  %v8489_v12 = vld [vmem:[#allocation13 + $0xd8] sm:$0xf0] }
 0x47a   :  { %5130 = vmatmul.bf16.vlgmr.msrb.gmra.mxu3 %v9343_v17 }
 0x47b   :  { %5178 = vmatpush.bf16.msra.mxu3 %v7592_v8  ;;  %5154 = vmatpush.bf16.msra.mxu1 %v7924_v20  ;;  %v8678_v8 = vld [vmem:[#allocation13 + $0x6c0] sm:$0xf0]  ;;  %v7256_v20 = vor.u32 %v8489_v12, %v7255_v62 }
 0x47c   :  { %v8012_v23 = vor.u32 %v8678_v8, %v8011_v7 }
 0x47d   :  { %5115 = vmatpush.bf16.msrb.mxu2 %v7168_v24  ;;  %5139 = vmatpush.bf16.msra.mxu0 %v7728_v25  ;;  %v4851_v18 = vpop.f32.mrf.mxu3  ;;  %v8531_v24 = vld [vmem:[#allocation13 + $0x228] sm:$0xf0]  ;;  %v7983_v25 = vld [vmem:[#allocation13 + $0x670] sm:$0xf] }
 0x47e   :  { %v7984_v33 = vor.u32 %v8671_v42, %v7983_v25  ;;  %v7843_v42 = vld [vmem:[#allocation13 + $0x558] sm:$0xf] }
 0x47f   :  { %5179 = vmatpush.bf16.msra.mxu3 %v7564_v21  ;;  %5155 = vmatpush.bf16.msra.mxu1 %v7896_v34  ;;  %v7423_v21 = vld [vmem:[#allocation13 + $0x210] sm:$0xf] }
 0x480   :  { %5116 = vmatmul.bf16.vlgmr.msrb.gmra.mxu2 %v9347_v5  ;;  %v7424_v32 = vor.u32 %v8531_v24, %v7423_v21 }
 0x481   :  { %5164 = vmatpush.bf16.msra.mxu2 %v7368_v27  ;;  %5140 = vmatpush.bf16.msra.mxu0 %v7700_v35  ;;  %v8482_v27 = vld [vmem:[#allocation13 + $0xa0] sm:$0xf0]  ;;  %v8524_v35 = vld [vmem:[#allocation13 + $0x1f0] sm:$0xf0] }
 0x482   :  { %v4837_v19 = vpop.f32.mrf.mxu2  ;;  %v7228_v34 = vor.u32 %v8482_v27, %v7227_v41  ;;  %v8636_v41 = vld [vmem:[#allocation13 + $0x570] sm:$0xf0] }
 0x483   :  { %5180 = vmatpush.bf16.msra.mxu3 %v7536_v22  ;;  %5156 = vmatpush.bf16.msra.mxu1 %v7868_v49  ;;  %v7395_v22 = vld [vmem:[#allocation13 + $0x1d8] sm:$0xf]  ;;  %v4838_v36 = vadd.f32 %v4837_v19, %v3662_v30 }
 0x484   :  { %v7396_v49 = vor.u32 %v8524_v35, %v7395_v22  ;;  %v7844_v22 = vor.u32 %v8636_v41, %v7843_v42 }
 0x485   :  { %5165 = vmatpush.bf16.msra.mxu2 %v7340_v45  ;;  %5141 = vmatpush.bf16.msra.mxu0 %v7672_v51  ;;  %v8664_v45 = vld [vmem:[#allocation13 + $0x650] sm:$0xf0]  ;;  %v7200_v51 = vor.u32 %v8475_v47, %v7199_v46  ;;  %v4853_v11 = vpop.f32.mrf.mxu3  ;;  %v4852_v54 = vadd.f32 %v4851_v18, %v4838_v36  ;;  %v3663_v18 = vperm.slane %v9378_v16, 1 }
 0x486   :  { %v7956_v50 = vor.u32 %v8664_v45, %v7955_v39  ;;  %v7648_v39 = vor.u32 %v8587_v29, %v7647_v28  ;;  %v8580_v45 = vld [vmem:[#allocation13 + $0x3b0] sm:$0xf0] }
 0x487   :  { %5181 = vmatpush.bf16.msra.mxu3 %v7508_v52  ;;  %5157 = vmatpush.bf16.msra.mxu1 %v7840_v60  ;;  %v4879_v40 = vpop.f32.mrf.mxu1 }
 0x489   :  { %5166 = vmatpush.bf16.msra.mxu2 %v7312_v57  ;;  %5142 = vmatpush.bf16.msra.mxu0 %v7644_v4  ;;  %v7171_v57 = vld [vmem:[#allocation13 + $0x18] sm:$0xf]  ;;  %v7899_v4 = vld [vmem:[#allocation13 + $0x5c8] sm:$0xf] }
 0x48a   :  { %5158 = vmatmul.bf16.vlgmr.msra.gmra.mxu1 %v9351_v44  ;;  %v4839_v52 = vpop.f32.mrf.mxu2 }
 0x48b   :  { %5182 = vmatpush.bf16.msra.mxu3 %v7480_v61  ;;  %5206 = vmatpush.bf16.msrb.mxu1 %v8040_v63  ;;  %v7928_v61 = vor.u32 %v8657_v53, %v7927_v0  ;;  %v7172_v63 = vor.u32 %v8468_v31, %v7171_v57  ;;  %v4840_v7 = vadd.f32 %v4839_v52, %v3662_v30 }
 0x48d   :  { %5167 = vmatpush.bf16.msra.mxu2 %v7284_v6  ;;  %5143 = vmatpush.bf16.msra.mxu0 %v7616_v37  ;;  %v4865_v59 = vpop.f32.mrf.mxu0  ;;  %v8650_v6 = vld [vmem:[#allocation13 + $0x5e0] sm:$0xf0]  ;;  %v4854_v19 = vadd.f32 %v4853_v11, %v4840_v7  ;;  %v7675_v37 = vld [vmem:[#allocation13 + $0x408] sm:$0xf]  ;;  %v4907_v21 = vpop.f32.mrf.mxu3  ;;  %v3664_v11 = vperm.slane %v9378_v16, 2 }
 0x48e   :  { %v4866_v60 = vadd.f32 %v4865_v59, %v4852_v54  ;;  %v7900_v12 = vor.u32 %v8650_v6, %v7899_v4 }
 0x48f   :  { %5183 = vmatpush.bf16.msra.mxu3 %v7452_v15  ;;  %5207 = vmatpush.bf16.msrb.mxu1 %v8012_v23  ;;  %v4881_v1 = vpop.f32.mrf.mxu1  ;;  %v7871_v15 = vld [vmem:[#allocation13 + $0x590] sm:$0xf]  ;;  %v8643_v23 = vld [vmem:[#allocation13 + $0x5a8] sm:$0xf0] }
 0x490   :  { %5144 = vmatmul.bf16.vlgmr.msra.gmra.mxu0 %v9355_v56  ;;  %v4880_v8 = vadd.f32 %v4879_v40, %v4866_v60  ;;  %v7872_v25 = vor.u32 %v8643_v23, %v7871_v15 }
 0x491   :  { %5168 = vmatpush.bf16.msra.mxu2 %v7256_v20  ;;  %5192 = vmatpush.bf16.msrb.mxu0 %v7816_v26  ;;  %v8594_v20 = vld [vmem:[#allocation13 + $0x420] sm:$0xf0] }
 0x492   :  { %v8041_v62 = vmul.f32 -1.442695, %v4880_v8  ;;  %v7676_v26 = vor.u32 %v8594_v20, %v7675_v37 }
 0x493   :  { %5184 = vmatpush.bf16.msra.mxu3 %v7424_v32  ;;  %5208 = vmatpush.bf16.msrb.mxu1 %v7984_v33  ;;  %v4893_v13 = vpop.f32.mrf.mxu2 }
 0x494   :  { %8704 = vpow2.f32 %v8041_v62  ;;  %v4894_v27 = vadd.f32 %v4893_v13, %v3663_v18 }
 0x495   :  { %5169 = vmatpush.bf16.msra.mxu2 %v7228_v34  ;;  %5193 = vmatpush.bf16.msrb.mxu0 %v7788_v43  ;;  %v7619_v43 = vld [vmem:[#allocation13 + $0x398] sm:$0xf]  ;;  %v4909_v48 = vpop.f32.mrf.mxu3 }
 0x496   :  { %v4908_v40 = vadd.f32 %v4907_v21, %v4894_v27  ;;  %v7620_v36 = vor.u32 %v8580_v45, %v7619_v43 }
 0x497   :  { %5185 = vmatpush.bf16.msra.mxu3 %v7396_v49  ;;  %5209 = vmatpush.bf16.msrb.mxu1 %v7956_v50  ;;  %v4935_v32 = vpop.f32.mrf.mxu1 }
 0x499   :  { %5170 = vmatpush.bf16.msra.mxu2 %v7200_v51  ;;  %5194 = vmatpush.bf16.msrb.mxu0 %v7760_v2 }
 0x49a   :  { %5186 = vmatmul.bf16.vlgmr.msra.gmra.mxu3 %v9343_v17  ;;  %v4867_v17 = vpop.f32.mrf.mxu0  ;;  %v8705_v33 = vpop.eup %8704 }
 0x49b   :  { %5210 = vmatpush.bf16.msrb.mxu1 %v7928_v61  ;;  %v4868_v24 = vadd.f32 %v4867_v17, %v4854_v19  ;;  %v5262_v35 = vadd.f32 1.0, %v8705_v33 }
 0x49d   :  { %5171 = vmatpush.bf16.msra.mxu2 %v7172_v63  ;;  %5195 = vmatpush.bf16.msrb.mxu0 %v7732_v3  ;;  %v4882_v30 = vadd.f32 %v4881_v1, %v4868_v24  ;;  %v5287_v59 = vand.u32 2147483648, %v5262_v35  ;;  %v5285_v60 = vand.u32 2147483647, %v5262_v35  ;;  %vm5281_vm1 = vweird.f32 %v5262_v35  ;;  %v4963_v4 = vpop.f32.mrf.mxu3 }
 0x49f   :  { %5211 = vmatpush.bf16.msrb.mxu1 %v7900_v12  ;;  %v8048_v34 = vmul.f32 -1.442695, %v4882_v30  ;;  %v4937_v2 = vpop.f32.mrf.mxu1  ;;  %v5288_v8 = vor.u32 1.1754944e-38, %v5287_v59  ;;  %vm5286_vm3 = vcmp.eq.f32.partialorder %v5285_v60, 8.507059e+37 }
 0x4a0   :  { %5172 = vmatmul.bf16.vlgmr.msra.gmra.mxu2 %v9347_v5  ;;  %v4895_v5 = vpop.f32.mrf.mxu2 }
 0x4a1   :  { %5196 = vmatpush.bf16.msrb.mxu0 %v7704_v14  ;;  %8706 = vpow2.f32 %v8048_v34  ;;  %v4896_v38 = vadd.f32 %v4895_v5, %v3663_v18 }
 0x4a2   :  { %8708 = vrcp.f32 %v5262_v35  ;;  %v4921_v46 = vpop.f32.mrf.mxu0 }
 0x4a3   :  { %5212 = vmatpush.bf16.msrb.mxu1 %v7872_v25  ;;  %v4922_v47 = vadd.f32 %v4921_v46, %v4908_v40  ;;  %v4910_v31 = vadd.f32 %v4909_v48, %v4896_v38 }
 0x4a5   :  { %5197 = vmatpush.bf16.msrb.mxu0 %v7676_v26  ;;  %v4936_v49 = vadd.f32 %v4935_v32, %v4922_v47  ;;  %v4965_v29 = vpop.f32.mrf.mxu3 }
 0x4a7   :  { %5213 = vmatpush.bf16.msrb.mxu1 %v7844_v22  ;;  %v8707_v50 = vpop.eup %8706  ;;  %v8042_v52 = vmul.f32 -1.442695, %v4936_v49  ;;  %v4991_v12 = vpop.f32.mrf.mxu1 }
 0x4a8   :  { %v8709_v51 = vpop.eup %8708  ;;  %v5269_v0 = vadd.f32 1.0, %v8707_v50  ;;  %v4949_v57 = vpop.f32.mrf.mxu2 }
 0x4a9   :  { %5198 = vmatpush.bf16.msrb.mxu0 %v7648_v39  ;;  %v5277_v53 = vmul.f32 %v8709_v51, %v5262_v35  ;;  %8710 = vpow2.f32 %v8042_v52  ;;  %vm5282_vm0 = vweird.f32 %v8709_v51  ;;  %v4950_v63 = vadd.f32 %v4949_v57, %v3664_v11 }
 0x4aa   :  { %5214 = vmatmul.bf16.vlgmr.msrb.gmra.mxu1 %v9351_v44  ;;  %8712 = vrcp.f32 %v5269_v0  ;;  %v4923_v54 = vpop.f32.mrf.mxu0  ;;  %vm5283_vm2 = vmor %vm5281_vm1, %vm5282_vm0  ;;  %v5392_v18 = vand.u32 2147483648, %v5269_v0  ;;  %v5390_v20 = vand.u32 2147483647, %v5269_v0  ;;  %vm5386_vm5 = vweird.f32 %v5269_v0 }
 0x4ab   :  { %v5278_v55 = vsub.f32 1.0, %v5277_v53  ;;  %v4924_v58 = vadd.f32 %v4923_v54, %v4910_v31  ;;  %v4964_v13 = vadd.f32 %v4963_v4, %v4950_v63 }
 0x4ac   :  { %v5393_v42 = vor.u32 1.1754944e-38, %v5392_v18  ;;  %vm5391_vm7 = vcmp.eq.f32.partialorder %v5390_v20, 8.507059e+37 }
 0x4ad   :  { %5199 = vmatpush.bf16.msrb.mxu0 %v7620_v36  ;;  %v5279_v44 = vmul.f32 %v8709_v51, %v5278_v55  ;;  %v4938_v61 = vadd.f32 %v4937_v2, %v4924_v58 }
 0x4af   :  { %v8711_v1 = vpop.eup %8710  ;;  %v5280_v3 = vadd.f32 %v8709_v51, %v5279_v44  ;;  %v8049_v6 = vmul.f32 -1.442695, %v4938_v61  ;;  %v4993_v43 = vpop.f32.mrf.mxu1 }
 0x4b0   :  { %5200 = vmatmul.bf16.vlgmr.msrb.gmra.mxu0 %v9355_v56  ;;  %v8713_v7 = vpop.eup %8712  ;;  %v5263_v9 = vadd.f32 1.0, %v8711_v1  ;;  %v4951_v15 = vpop.f32.mrf.mxu2 }
 0x4b1   :  { %v5284_v10 = vsel %vm5283_vm2, %v8709_v51, %v5280_v3  ;;  %v5382_v62 = vmul.f32 %v8713_v7, %v5269_v0  ;;  %8714 = vpow2.f32 %v8049_v6  ;;  %vm5387_vm4 = vweird.f32 %v8713_v7 }
 0x4b2   :  { %v5289_v56 = vsel %vm5286_vm3, %v5288_v8, %v5284_v10  ;;  %8716 = vrcp.f32 %v5263_v9  ;;  %v4977_v23 = vpop.f32.mrf.mxu0  ;;  %v4952_v17 = vadd.f32 %v4951_v15, %v3664_v11  ;;  %vm5388_vm6 = vmor %vm5386_vm5, %vm5387_vm4  ;;  %v5302_v35 = vand.u32 2147483648, %v5263_v9 }
 0x4b3   :  { %5486 = vst [vmem:[%s9449_s14] sm:$0xff] %v5289_v56  ;;  %v5383_v14 = vsub.f32 1.0, %v5382_v62  ;;  %v4978_v19 = vadd.f32 %v4977_v23, %v4964_v13  ;;  %v5300_v40 = vand.u32 2147483647, %v5263_v9  ;;  %vm5296_vm9 = vweird.f32 %v5263_v9 }
 0x4b4   :  { %v4966_v33 = vadd.f32 %v4965_v29, %v4952_v17  ;;  %v5303_v36 = vor.u32 1.1754944e-38, %v5302_v35  ;;  %v3665_v11 = vperm.slane %v9378_v16, 3 }
 0x4b5   :  { %v5384_v37 = vmul.f32 %v8713_v7, %v5383_v14  ;;  %v4992_v21 = vadd.f32 %v4991_v12, %v4978_v19  ;;  %vm5301_vm11 = vcmp.eq.f32.partialorder %v5300_v40, 8.507059e+37 }
 0x4b7   :  { %v8715_v24 = vpop.eup %8714  ;;  %v5385_v25 = vadd.f32 %v8713_v7, %v5384_v37  ;;  %v8043_v27 = vmul.f32 -1.442695, %v4992_v21 }
 0x4b8   :  { %v8717_v26 = vpop.eup %8716  ;;  %v5270_v41 = vadd.f32 1.0, %v8715_v24 }
 0x4b9   :  { %v5389_v30 = vsel %vm5388_vm6, %v8713_v7, %v5385_v25  ;;  %v5292_v28 = vmul.f32 %v8717_v26, %v5263_v9  ;;  %vm5297_vm8 = vweird.f32 %v8717_v26 }
 0x4ba   :  { %v5394_v32 = vsel %vm5391_vm7, %v5393_v42, %v5389_v30  ;;  %8718 = vrcp.f32 %v5270_v41  ;;  %v4979_v22 = vpop.f32.mrf.mxu0  ;;  %vm5298_vm10 = vmor %vm5296_vm9, %vm5297_vm8  ;;  %v5407_v2 = vand.u32 2147483648, %v5270_v41  ;;  %v5405_v57 = vand.u32 2147483647, %v5270_v41 }
 0x4bb   :  { %5493 = vst [vmem:[%s9449_s14 + $0x38] sm:$0xff] %v5394_v32  ;;  %v5293_v34 = vsub.f32 1.0, %v5292_v28  ;;  %8720 = vpow2.f32 %v8043_v27  ;;  %v4980_v5 = vadd.f32 %v4979_v22, %v4966_v33  ;;  %vm5401_vm13 = vweird.f32 %v5270_v41 }
 0x4bc   :  { %v5408_v58 = vor.u32 1.1754944e-38, %v5407_v2  ;;  %vm5406_vm15 = vcmp.eq.f32.partialorder %v5405_v57, 8.507059e+37 }
 0x4bd   :  { %v5294_v39 = vmul.f32 %v8717_v26, %v5293_v34  ;;  %v4994_v45 = vadd.f32 %v4993_v43, %v4980_v5  ;;  %v5019_v3 = vpop.f32.mrf.mxu3 }
 0x4bf   :  { %v5295_v46 = vadd.f32 %v8717_v26, %v5294_v39  ;;  %v8050_v48 = vmul.f32 -1.442695, %v4994_v45  ;;  %v3666_v45 = vperm.slane %v9378_v16, 4 }
 0x4c0   :  { %v8719_v47 = vpop.eup %8718 }
 0x4c1   :  { %v8721_v38 = vpop.eup %8720  ;;  %v5299_v49 = vsel %vm5298_vm10, %v8717_v26, %v5295_v46  ;;  %v5397_v50 = vmul.f32 %v8719_v47, %v5270_v41  ;;  %8722 = vpow2.f32 %v8050_v48  ;;  %vm5402_vm12 = vweird.f32 %v8719_v47 }
 0x4c2   :  { %v5304_v52 = vsel %vm5301_vm11, %v5303_v36, %v5299_v49  ;;  %v5264_v51 = vadd.f32 1.0, %v8721_v38  ;;  %vm5403_vm14 = vmor %vm5401_vm13, %vm5402_vm12 }
 0x4c3   :  { %5487 = vst [vmem:[%s9449_s14 + $0x8] sm:$0xff] %v5304_v52  ;;  %v5398_v0 = vsub.f32 1.0, %v5397_v50  ;;  %v5005_v31 = vpop.f32.mrf.mxu2 }
 0x4c4   :  { %8724 = vrcp.f32 %v5264_v51  ;;  %v5006_v63 = vadd.f32 %v5005_v31, %v3665_v11  ;;  %v5317_v6 = vand.u32 2147483648, %v5264_v51  ;;  %v5315_v10 = vand.u32 2147483647, %v5264_v51 }
 0x4c5   :  { %v5399_v53 = vmul.f32 %v8719_v47, %v5398_v0  ;;  %vm5311_vm1 = vweird.f32 %v5264_v51  ;;  %v5021_v26 = vpop.f32.mrf.mxu3 }
 0x4c6   :  { %v5020_v8 = vadd.f32 %v5019_v3, %v5006_v63  ;;  %v5318_v15 = vor.u32 1.1754944e-38, %v5317_v6  ;;  %vm5316_vm3 = vcmp.eq.f32.partialorder %v5315_v10, 8.507059e+37 }
 0x4c7   :  { %v5400_v54 = vadd.f32 %v8719_v47, %v5399_v53  ;;  %v8723_v55 = vpop.eup %8722  ;;  %v5047_v7 = vpop.f32.mrf.mxu1 }
 0x4c8   :  { %v5271_v44 = vadd.f32 1.0, %v8723_v55 }
 0x4c9   :  { %v5404_v59 = vsel %vm5403_vm14, %v8719_v47, %v5400_v54 }
 0x4ca   :  { %v8725_v60 = vpop.eup %8724  ;;  %v5409_v61 = vsel %vm5406_vm15, %v5408_v58, %v5404_v59  ;;  %8726 = vrcp.f32 %v5271_v44  ;;  %v5420_v24 = vand.u32 2147483647, %v5271_v44  ;;  %v5422_v25 = vand.u32 2147483648, %v5271_v44 }
 0x4cb   :  { %5494 = vst [vmem:[%s9449_s14 + $0x40] sm:$0xff] %v5409_v61  ;;  %v5307_v1 = vmul.f32 %v8725_v60, %v5264_v51  ;;  %vm5312_vm0 = vweird.f32 %v8725_v60  ;;  %v5007_v62 = vpop.f32.mrf.mxu2  ;;  %vm5416_vm5 = vweird.f32 %v5271_v44 }
 0x4cc   :  { %vm5313_vm2 = vmor %vm5311_vm1, %vm5312_vm0  ;;  %v5008_v18 = vadd.f32 %v5007_v62, %v3665_v11  ;;  %v5423_v29 = vor.u32 1.1754944e-38, %v5422_v25  ;;  %vm5421_vm7 = vcmp.eq.f32.partialorder %v5420_v24, 8.507059e+37 }
 0x4cd   :  { %v5308_v4 = vsub.f32 1.0, %v5307_v1  ;;  %v5033_v56 = vpop.f32.mrf.mxu0 }
 0x4ce   :  { %v5034_v12 = vadd.f32 %v5033_v56, %v5020_v8  ;;  %v5022_v41 = vadd.f32 %v5021_v26, %v5008_v18 }
 0x4cf   :  { %v5309_v9 = vmul.f32 %v8725_v60, %v5308_v4  ;;  %v5049_v32 = vpop.f32.mrf.mxu1 }
 0x4d0   :  { %v8727_v13 = vpop.eup %8726  ;;  %v5048_v19 = vadd.f32 %v5047_v7, %v5034_v12 }
 0x4d1   :  { %v5310_v14 = vadd.f32 %v8725_v60, %v5309_v9  ;;  %v5412_v23 = vmul.f32 %v8727_v13, %v5271_v44  ;;  %vm5417_vm4 = vweird.f32 %v8727_v13 }
 0x4d2   :  { %v8044_v21 = vmul.f32 -1.442695, %v5048_v19  ;;  %vm5418_vm6 = vmor %vm5416_vm5, %vm5417_vm4 }
 0x4d3   :  { %v5314_v37 = vsel %vm5313_vm2, %v8725_v60, %v5310_v14  ;;  %v5413_v17 = vsub.f32 1.0, %v5412_v23 }
 0x4d4   :  { %v5319_v20 = vsel %vm5316_vm3, %v5318_v15, %v5314_v37  ;;  %8728 = vpow2.f32 %v8044_v21 }
 0x4d5   :  { %5488 = vst [vmem:[%s9449_s14 + $0x10] sm:$0xff] %v5319_v20  ;;  %v5414_v42 = vmul.f32 %v8727_v13, %v5413_v17  ;;  %v5035_v27 = vpop.f32.mrf.mxu0  ;;  %v3667_v17 = vperm.slane %v9378_v16, 5 }
 0x4d6   :  { %v5036_v28 = vadd.f32 %v5035_v27, %v5022_v41 }
 0x4d7   :  { %v5415_v30 = vadd.f32 %v8727_v13, %v5414_v42 }
 0x4d8   :  { %v5050_v34 = vadd.f32 %v5049_v32, %v5036_v28 }
 0x4d9   :  { %v5419_v33 = vsel %vm5418_vm6, %v8727_v13, %v5415_v30 }
 0x4da   :  { %v5424_v22 = vsel %vm5421_vm7, %v5423_v29, %v5419_v33  ;;  %v8729_v35 = vpop.eup %8728  ;;  %v8051_v5 = vmul.f32 -1.442695, %v5050_v34 }
 0x4db   :  { %5495 = vst [vmem:[%s9449_s14 + $0x48] sm:$0xff] %v5424_v22  ;;  %v5265_v39 = vadd.f32 1.0, %v8729_v35 }
 0x4dc   :  { %8730 = vpow2.f32 %v8051_v5 }
 0x4dd   :  { %8732 = vrcp.f32 %v5265_v39  ;;  %v5332_v49 = vand.u32 2147483648, %v5265_v39  ;;  %v5075_v50 = vpop.f32.mrf.mxu3  ;;  %v5330_v51 = vand.u32 2147483647, %v5265_v39  ;;  %vm5326_vm9 = vweird.f32 %v5265_v39 }
 0x4df   :  { %v5333_v31 = vor.u32 1.1754944e-38, %v5332_v49  ;;  %vm5331_vm11 = vcmp.eq.f32.partialorder %v5330_v51, 8.507059e+37 }
 0x4e2   :  { %v8731_v43 = vpop.eup %8730 }
 0x4e3   :  { %v5061_v40 = vpop.f32.mrf.mxu2  ;;  %v8733_v46 = vpop.eup %8732  ;;  %v5272_v47 = vadd.f32 1.0, %v8731_v43 }
 0x4e4   :  { %v5322_v36 = vmul.f32 %v8733_v46, %v5265_v39  ;;  %v5062_v38 = vadd.f32 %v5061_v40, %v3666_v45  ;;  %vm5327_vm8 = vweird.f32 %v8733_v46 }
 0x4e5   :  { %8734 = vrcp.f32 %v5272_v47  ;;  %vm5328_vm10 = vmor %vm5326_vm9, %vm5327_vm8  ;;  %v5437_v1 = vand.u32 2147483648, %v5272_v47  ;;  %v5435_v4 = vand.u32 2147483647, %v5272_v47  ;;  %v5077_v7 = vpop.f32.mrf.mxu3  ;;  %vm5431_vm13 = vweird.f32 %v5272_v47 }
 0x4e6   :  { %v5323_v48 = vsub.f32 1.0, %v5322_v36  ;;  %v5076_v53 = vadd.f32 %v5075_v50, %v5062_v38 }
 0x4e7   :  { %v5103_v2 = vpop.f32.mrf.mxu1  ;;  %v5438_v10 = vor.u32 1.1754944e-38, %v5437_v1  ;;  %vm5436_vm15 = vcmp.eq.f32.partialorder %v5435_v4, 8.507059e+37 }
 0x4e8   :  { %v5324_v52 = vmul.f32 %v8733_v46, %v5323_v48 }
 0x4ea   :  { %v5325_v0 = vadd.f32 %v8733_v46, %v5324_v52 }
 0x4eb   :  { %v8735_v57 = vpop.eup %8734  ;;  %v5063_v11 = vpop.f32.mrf.mxu2 }
 0x4ec   :  { %v5329_v55 = vsel %vm5328_vm10, %v8733_v46, %v5325_v0  ;;  %v5427_v58 = vmul.f32 %v8735_v57, %v5272_v47  ;;  %v5064_v61 = vadd.f32 %v5063_v11, %v3666_v45  ;;  %vm5432_vm12 = vweird.f32 %v8735_v57 }
 0x4ed   :  { %v5089_v54 = vpop.f32.mrf.mxu0  ;;  %v5334_v44 = vsel %vm5331_vm11, %v5333_v31, %v5329_v55  ;;  %vm5433_vm14 = vmor %vm5431_vm13, %vm5432_vm12 }
 0x4ee   :  { %v5090_v59 = vadd.f32 %v5089_v54, %v5076_v53  ;;  %5489 = vst [vmem:[%s9449_s14 + $0x18] sm:$0xff] %v5334_v44  ;;  %v5428_v60 = vsub.f32 1.0, %v5427_v58  ;;  %v5078_v9 = vadd.f32 %v5077_v7, %v5064_v61  ;;  %v3668_v61 = vperm.slane %v9378_v16, 6 }
 0x4ef   :  { %v5105_v14 = vpop.f32.mrf.mxu1 }
 0x4f0   :  { %v5104_v63 = vadd.f32 %v5103_v2, %v5090_v59  ;;  %v5429_v3 = vmul.f32 %v8735_v57, %v5428_v60 }
 0x4f2   :  { %v8045_v6 = vmul.f32 -1.442695, %v5104_v63  ;;  %v5430_v8 = vadd.f32 %v8735_v57, %v5429_v3 }
 0x4f4   :  { %8736 = vpow2.f32 %v8045_v6  ;;  %v5434_v56 = vsel %vm5433_vm14, %v8735_v57, %v5430_v8 }
 0x4f5   :  { %v5091_v62 = vpop.f32.mrf.mxu0  ;;  %v5439_v13 = vsel %vm5436_vm15, %v5438_v10, %v5434_v56 }
 0x4f6   :  { %v5092_v12 = vadd.f32 %v5091_v62, %v5078_v9  ;;  %5496 = vst [vmem:[%s9449_s14 + $0x50] sm:$0xff] %v5439_v13 }
 0x4f8   :  { %v5106_v15 = vadd.f32 %v5105_v14, %v5092_v12 }
 0x4fa   :  { %v8737_v23 = vpop.eup %8736  ;;  %v8052_v18 = vmul.f32 -1.442695, %v5106_v15 }
 0x4fb   :  { %v5266_v19 = vadd.f32 1.0, %v8737_v23 }
 0x4fc   :  { %8738 = vpow2.f32 %v8052_v18 }
 0x4fd   :  { %8740 = vrcp.f32 %v5266_v19  ;;  %v5347_v41 = vand.u32 2147483648, %v5266_v19  ;;  %v5131_v27 = vpop.f32.mrf.mxu3  ;;  %v5345_v28 = vand.u32 2147483647, %v5266_v19  ;;  %vm5341_vm1 = vweird.f32 %v5266_v19 }
 0x4ff   :  { %v5348_v22 = vor.u32 1.1754944e-38, %v5347_v41  ;;  %vm5346_vm3 = vcmp.eq.f32.partialorder %v5345_v28, 8.507059e+37 }
 0x502   :  { %v8739_v20 = vpop.eup %8738 }
 0x503   :  { %v5117_v37 = vpop.f32.mrf.mxu2  ;;  %v8741_v21 = vpop.eup %8740  ;;  %v5273_v24 = vadd.f32 1.0, %v8739_v20 }
 0x504   :  { %v5337_v25 = vmul.f32 %v8741_v21, %v5266_v19  ;;  %v5118_v42 = vadd.f32 %v5117_v37, %v3667_v17  ;;  %vm5342_vm0 = vweird.f32 %v8741_v21 }
 0x505   :  { %8742 = vrcp.f32 %v5273_v24  ;;  %vm5343_vm2 = vmor %vm5341_vm1, %vm5342_vm0  ;;  %v5452_v48 = vand.u32 2147483648, %v5273_v24  ;;  %v5450_v49 = vand.u32 2147483647, %v5273_v24  ;;  %v5133_v52 = vpop.f32.mrf.mxu3  ;;  %vm5446_vm5 = vweird.f32 %v5273_v24 }
 0x506   :  { %v5338_v26 = vsub.f32 1.0, %v5337_v25  ;;  %v5132_v33 = vadd.f32 %v5131_v27, %v5118_v42 }
 0x507   :  { %v5159_v32 = vpop.f32.mrf.mxu1  ;;  %v5453_v2 = vor.u32 1.1754944e-38, %v5452_v48  ;;  %vm5451_vm7 = vcmp.eq.f32.partialorder %v5450_v49, 8.507059e+37 }
 0x508   :  { %v5339_v30 = vmul.f32 %v8741_v21, %v5338_v26 }
 0x50a   :  { %v5340_v29 = vadd.f32 %v8741_v21, %v5339_v30 }
 0x50b   :  { %v8743_v34 = vpop.eup %8742  ;;  %v5119_v35 = vpop.f32.mrf.mxu2 }
 0x50c   :  { %v5344_v39 = vsel %vm5343_vm2, %v8741_v21, %v5340_v29  ;;  %v5442_v40 = vmul.f32 %v8743_v34, %v5273_v24  ;;  %v5120_v47 = vadd.f32 %v5119_v35, %v3667_v17  ;;  %vm5447_vm4 = vweird.f32 %v8743_v34 }
 0x50d   :  { %v5145_v5 = vpop.f32.mrf.mxu0  ;;  %v5349_v45 = vsel %vm5346_vm3, %v5348_v22, %v5344_v39  ;;  %vm5448_vm6 = vmor %vm5446_vm5, %vm5447_vm4 }
 0x50e   :  { %v5146_v43 = vadd.f32 %v5145_v5, %v5132_v33  ;;  %5490 = vst [vmem:[%s9449_s14 + $0x20] sm:$0xff] %v5349_v45  ;;  %v5443_v46 = vsub.f32 1.0, %v5442_v40  ;;  %v5134_v0 = vadd.f32 %v5133_v52, %v5120_v47 }
 0x50f   :  { %v5161_v54 = vpop.f32.mrf.mxu1 }
 0x510   :  { %v5160_v36 = vadd.f32 %v5159_v32, %v5146_v43  ;;  %v5444_v38 = vmul.f32 %v8743_v34, %v5443_v46 }
 0x512   :  { %v8046_v50 = vmul.f32 -1.442695, %v5160_v36  ;;  %v5445_v51 = vadd.f32 %v8743_v34, %v5444_v38 }
 0x514   :  { %8744 = vpow2.f32 %v8046_v50  ;;  %v5449_v57 = vsel %vm5448_vm6, %v8743_v34, %v5445_v51 }
 0x515   :  { %v5147_v53 = vpop.f32.mrf.mxu0  ;;  %v5454_v11 = vsel %vm5451_vm7, %v5453_v2, %v5449_v57 }
 0x516   :  { %v5148_v31 = vadd.f32 %v5147_v53, %v5134_v0  ;;  %5497 = vst [vmem:[%s9449_s14 + $0x58] sm:$0xff] %v5454_v11 }
 0x518   :  { %v5162_v55 = vadd.f32 %v5161_v54, %v5148_v31 }
 0x51a   :  { %v8745_v58 = vpop.eup %8744  ;;  %v8053_v59 = vmul.f32 -1.442695, %v5162_v55 }
 0x51b   :  { %v5267_v44 = vadd.f32 1.0, %v8745_v58 }
 0x51c   :  { %8746 = vpow2.f32 %v8053_v59 }
 0x51d   :  { %8748 = vrcp.f32 %v5267_v44  ;;  %v5187_v8 = vpop.f32.mrf.mxu3  ;;  %v5362_v9 = vand.u32 2147483648, %v5267_v44  ;;  %v5360_v62 = vand.u32 2147483647, %v5267_v44  ;;  %vm5356_vm9 = vweird.f32 %v5267_v44 }
 0x51f   :  { %v5363_v16 = vor.u32 1.1754944e-38, %v5362_v9  ;;  %vm5361_vm11 = vcmp.eq.f32.partialorder %v5360_v62, 8.507059e+37 }
 0x522   :  { %v8747_v63 = vpop.eup %8746 }
 0x523   :  { %v5173_v60 = vpop.f32.mrf.mxu2  ;;  %v8749_v1 = vpop.eup %8748  ;;  %v5274_v3 = vadd.f32 1.0, %v8747_v63 }
 0x524   :  { %v5352_v4 = vmul.f32 %v8749_v1, %v5267_v44  ;;  %v5174_v6 = vadd.f32 %v5173_v60, %v3668_v61  ;;  %vm5357_vm8 = vweird.f32 %v8749_v1 }
 0x525   :  { %8750 = vrcp.f32 %v5274_v3  ;;  %vm5358_vm10 = vmor %vm5356_vm9, %vm5357_vm8  ;;  %v5467_v25 = vand.u32 2147483648, %v5274_v3  ;;  %v5465_v41 = vand.u32 2147483647, %v5274_v3  ;;  %v5189_v27 = vpop.f32.mrf.mxu3  ;;  %vm5461_vm13 = vweird.f32 %v5274_v3 }
 0x526   :  { %v5353_v7 = vsub.f32 1.0, %v5352_v4  ;;  %v5188_v12 = vadd.f32 %v5187_v8, %v5174_v6 }
 0x527   :  { %v5215_v56 = vpop.f32.mrf.mxu1  ;;  %v5468_v32 = vor.u32 1.1754944e-38, %v5467_v25  ;;  %vm5466_vm15 = vcmp.eq.f32.partialorder %v5465_v41, 8.507059e+37 }
 0x528   :  { %v5354_v10 = vmul.f32 %v8749_v1, %v5353_v7 }
 0x52a   :  { %v5355_v13 = vadd.f32 %v8749_v1, %v5354_v10 }
 0x52b   :  { %v5175_v14 = vpop.f32.mrf.mxu2  ;;  %v8751_v23 = vpop.eup %8750 }
 0x52c   :  { %v5359_v19 = vsel %vm5358_vm10, %v8749_v1, %v5355_v13  ;;  %v5457_v37 = vmul.f32 %v8751_v23, %v5274_v3  ;;  %v5176_v17 = vadd.f32 %v5175_v14, %v3668_v61  ;;  %vm5462_vm12 = vweird.f32 %v8751_v23 }
 0x52d   :  { %v5201_v15 = vpop.f32.mrf.mxu0  ;;  %v5364_v20 = vsel %vm5361_vm11, %v5363_v16, %v5359_v19  ;;  %vm5463_vm14 = vmor %vm5461_vm13, %vm5462_vm12 }
 0x52e   :  { %v5202_v18 = vadd.f32 %v5201_v15, %v5188_v12  ;;  %5491 = vst [vmem:[%s9449_s14 + $0x28] sm:$0xff] %v5364_v20  ;;  %v5458_v24 = vsub.f32 1.0, %v5457_v37  ;;  %v5190_v30 = vadd.f32 %v5189_v27, %v5176_v17 }
 0x52f   :  { %v5217_v22 = vpop.f32.mrf.mxu1 }
 0x530   :  { %v5216_v21 = vadd.f32 %v5215_v56, %v5202_v18  ;;  %v5459_v42 = vmul.f32 %v8751_v23, %v5458_v24 }
 0x532   :  { %v8047_v26 = vmul.f32 -1.442695, %v5216_v21  ;;  %v5460_v28 = vadd.f32 %v8751_v23, %v5459_v42 }
 0x534   :  { %8752 = vpow2.f32 %v8047_v26  ;;  %v5464_v34 = vsel %vm5463_vm14, %v8751_v23, %v5460_v28 }
 0x535   :  { %v5203_v29 = vpop.f32.mrf.mxu0  ;;  %v5469_v35 = vsel %vm5466_vm15, %v5468_v32, %v5464_v34 }
 0x536   :  { %v5204_v33 = vadd.f32 %v5203_v29, %v5190_v30  ;;  %5498 = vst [vmem:[%s9449_s14 + $0x60] sm:$0xff] %v5469_v35 }
 0x538   :  { %v5218_v5 = vadd.f32 %v5217_v22, %v5204_v33 }
 0x53a   :  { %v8753_v39 = vpop.eup %8752  ;;  %v8054_v40 = vmul.f32 -1.442695, %v5218_v5 }
 0x53b   :  { %v5268_v43 = vadd.f32 1.0, %v8753_v39 }
 0x53c   :  { %8754 = vpow2.f32 %v8054_v40 }
 0x53d   :  { %8756 = vrcp.f32 %v5268_v43  ;;  %v5377_v38 = vand.u32 2147483648, %v5268_v43  ;;  %v5375_v50 = vand.u32 2147483647, %v5268_v43  ;;  %vm5371_vm1 = vweird.f32 %v5268_v43 }
 0x53f   :  { %v5378_v0 = vor.u32 1.1754944e-38, %v5377_v38  ;;  %vm5376_vm3 = vcmp.eq.f32.partialorder %v5375_v50, 8.507059e+37 }
 0x542   :  { %v8755_v45 = vpop.eup %8754 }
 0x543   :  { %v8757_v46 = vpop.eup %8756  ;;  %v5275_v47 = vadd.f32 1.0, %v8755_v45 }
 0x544   :  { %v5367_v36 = vmul.f32 %v8757_v46, %v5268_v43  ;;  %vm5372_vm0 = vweird.f32 %v8757_v46 }
 0x545   :  { %8758 = vrcp.f32 %v5275_v47  ;;  %vm5373_vm2 = vmor %vm5371_vm1, %vm5372_vm0  ;;  %v5482_v11 = vand.u32 2147483648, %v5275_v47  ;;  %v5480_v55 = vand.u32 2147483647, %v5275_v47  ;;  %vm5476_vm5 = vweird.f32 %v5275_v47 }
 0x546   :  { %v5368_v48 = vsub.f32 1.0, %v5367_v36 }
 0x547   :  { %v5483_v59 = vor.u32 1.1754944e-38, %v5482_v11  ;;  %vm5481_vm7 = vcmp.eq.f32.partialorder %v5480_v55, 8.507059e+37 }
 0x548   :  { %v5369_v49 = vmul.f32 %v8757_v46, %v5368_v48 }
 0x54a   :  { %v5370_v52 = vadd.f32 %v8757_v46, %v5369_v49 }
 0x54b   :  { %v8759_v51 = vpop.eup %8758 }
 0x54c   :  { %v5374_v2 = vsel %vm5373_vm2, %v8757_v46, %v5370_v52  ;;  %v5472_v53 = vmul.f32 %v8759_v51, %v5275_v47  ;;  %vm5477_vm4 = vweird.f32 %v8759_v51 }
 0x54d   :  { %v5379_v57 = vsel %vm5376_vm3, %v5378_v0, %v5374_v2  ;;  %vm5478_vm6 = vmor %vm5476_vm5, %vm5477_vm4 }
 0x54e   :  { %5492 = vst [vmem:[%s9449_s14 + $0x30] sm:$0xff] %v5379_v57  ;;  %v5473_v31 = vsub.f32 1.0, %v5472_v53 }
 0x550   :  { %v5474_v54 = vmul.f32 %v8759_v51, %v5473_v31 }
 0x552   :  { %v5475_v58 = vadd.f32 %v8759_v51, %v5474_v54 }
 0x554   :  { %v5479_v44 = vsel %vm5478_vm6, %v8759_v51, %v5475_v58 }
 0x555   :  { %v5484_v60 = vsel %vm5481_vm7, %v5483_v59, %v5479_v44 }
 0x556   :  { %5499 = vst [vmem:[%s9449_s14 + $0x68] sm:$0xff] %v5484_v60 }
 0x557   :  { %5512 = vsyncpa [#allocation3], 1 }
 0x558   :  { %5513 = vsyncpa [#allocation5], 1 }
 0x559   :  { %5514 = vsyncpa [#allocation8], 1 }
 0x55a   :  { %5515 = vsyncpa [#allocation11], 1 }
 0x55b   :  { %5516 = vsyncpa [#allocation14], 1 }

</bundles_post_ra>
